<compile_context>
chip_gen: v6e
topology: v6e:2x2x1
jax: 0.10.0
libtpu: 0.0.40
codegen_flags: <defaults>
</compile_context>

<pallas_src>
import jax
import jax.numpy as jnp
from jax import lax
from jax.experimental import pallas as pl
from jax.experimental.pallas import tpu as pltpu

LATENT_DIM = 100
K_PAD = 128              # latent dim padded to a lane multiple
H1, H2, H3 = 256, 512, 1024
OUT = 200
OUT_PAD = 256            # output dim padded to a lane multiple
BN_EPS = 1e-5
LEAK = 0.2

N_CHUNKS = 4             # feature chunks for block 3 / row chunks for block 4
CH3 = H3 // N_CHUNKS     # 256 features per chunk


def _leaky_relu(x):
    return jnp.where(x > 0, x, LEAK * x)


def _dot_bf16(x_f32, w_bf16):
    # MXU matmul: bf16 operands, f32 accumulation.
    return jnp.dot(x_f32.astype(jnp.bfloat16), w_bf16,
                   preferred_element_type=jnp.float32)


def _batchnorm_train(x, gamma, beta):
    # Train-mode BatchNorm1d, biased batch variance, two-pass (x-mean)^2 form.
    mean = jnp.mean(x, axis=0, keepdims=True)
    xc = x - mean
    var = jnp.mean(xc * xc, axis=0, keepdims=True)
    return xc * (lax.rsqrt(var + BN_EPS) * gamma) + beta


def generator_kernel(z_ref,
                     w1_ref, b1_ref, g1_ref, be1_ref,
                     w2_hbm, b2_ref, g2_ref, be2_ref,
                     w3_hbm, s3_ref, b3_ref, g3_ref, be3_ref,
                     w4_hbm, s4_ref, b4_ref,
                     o_ref,
                     w2_vmem, w3_bufs, w4_bufs,
                     sem_w2, sem_w3, sem_w4):
    # ---- Issue every weight stream immediately so HBM traffic overlaps all
    # of blocks 1-2 and each earlier chunk's compute.  Issue order biases
    # arrival order toward what is needed first (w2, then chunk 0, 1, ...).
    w2_cp = pltpu.make_async_copy(w2_hbm, w2_vmem, sem_w2.at[0])
    w2_cp.start()
    w3_cps, w4_cps = [], []
    for c in range(N_CHUNKS):
        cp3 = pltpu.make_async_copy(w3_hbm.at[c], w3_bufs.at[c], sem_w3.at[c])
        cp4 = pltpu.make_async_copy(w4_hbm.at[c], w4_bufs.at[c], sem_w4.at[c])
        cp3.start()
        cp4.start()
        w3_cps.append(cp3)
        w4_cps.append(cp4)

    x = z_ref[...]                      # (B, K_PAD) f32, zero-padded K

    # ---- Block 1: Linear -> LeakyReLU -> BatchNorm (w1 small, auto-VMEM)
    x = _dot_bf16(x, w1_ref[...]) + b1_ref[...]
    x = _leaky_relu(x)
    x = _batchnorm_train(x, g1_ref[...], be1_ref[...])

    # ---- Block 2: wait only for w2, which streamed behind block 1.
    w2_cp.wait()
    x = _dot_bf16(x, w2_vmem[...]) + b2_ref[...]
    x = _leaky_relu(x)
    x = _batchnorm_train(x, g2_ref[...], be2_ref[...])

    h2_bf = x.astype(jnp.bfloat16)      # hoisted: reused by all 4 chunks

    # ---- Blocks 3 + 4, chunked over block-3 output features (== block-4
    # contraction rows).  BN stats are per-feature over the batch, so feature
    # chunks are exactly independent.  Block-4 output is accumulated.
    acc = jnp.zeros((x.shape[0], OUT_PAD), jnp.float32)
    for c in range(N_CHUNKS):
        lo, hi = c * CH3, (c + 1) * CH3
        w3_cps[c].wait()
        # int8 -> bf16 widen (exact for |q| <= 127), per-column scale applied
        # in the f32 epilogue after the MXU matmul.
        h = jnp.dot(h2_bf, w3_bufs[c].astype(jnp.bfloat16),
                    preferred_element_type=jnp.float32)
        h = h * s3_ref[:, lo:hi] + b3_ref[:, lo:hi]
        h = _leaky_relu(h)
        h = _batchnorm_train(h, g3_ref[:, lo:hi], be3_ref[:, lo:hi])

        w4_cps[c].wait()
        acc = acc + jnp.dot(h.astype(jnp.bfloat16),
                            w4_bufs[c].astype(jnp.bfloat16),
                            preferred_element_type=jnp.float32)

    # Output head epilogue: per-column w4 scale, bias, tanh.  Padded output
    # lanes carry zeros -> tanh(0) = 0; output tile is lane-dense (256).
    o_ref[...] = jnp.tanh(acc * s4_ref[...] + b4_ref[...])


def init_params(key, latent_dim=LATENT_DIM):
    """Deterministic f32 parameter init mimicking PyTorch Linear defaults
    (uniform(-1/sqrt(fan_in), 1/sqrt(fan_in))). BatchNorm gamma=1, beta=0."""
    dims = [(latent_dim, H1), (H1, H2), (H2, H3), (H3, OUT)]
    params = {}
    keys = jax.random.split(key, 2 * len(dims))
    for i, (fan_in, fan_out) in enumerate(dims):
        bound = 1.0 / jnp.sqrt(jnp.float32(fan_in))
        params[f"w{i+1}"] = jax.random.uniform(
            keys[2 * i], (fan_in, fan_out), jnp.float32, -bound, bound)
        params[f"b{i+1}"] = jax.random.uniform(
            keys[2 * i + 1], (1, fan_out), jnp.float32, -bound, bound)
    for i, h in enumerate([H1, H2, H3]):
        params[f"g{i+1}"] = jnp.ones((1, h), jnp.float32)
        params[f"be{i+1}"] = jnp.zeros((1, h), jnp.float32)
    return params


def _quantize_per_col(w):
    """Symmetric int8 quantization with one f32 scale per output column."""
    absmax = jnp.max(jnp.abs(w), axis=0, keepdims=True)
    scale = jnp.maximum(absmax, 1e-12) / 127.0
    q = jnp.clip(jnp.round(w / scale), -127.0, 127.0).astype(jnp.int8)
    return q, scale.astype(jnp.float32)


def pack_params(params):
    """One-time layout prep: bf16 small weights, int8 + per-column-scale big
    weights pre-chunked for contiguous DMAs, lane-aligned padding of the
    ragged 100-dim contraction (w1) and 200-dim output (w4/b4)."""
    bf16 = jnp.bfloat16
    packed = dict(params)
    packed["w1"] = jnp.pad(
        params["w1"], ((0, K_PAD - LATENT_DIM), (0, 0))).astype(bf16)
    packed["w2"] = params["w2"].astype(bf16)

    # w3: int8, pre-chunked along output features -> each chunk is one
    # contiguous (H2, CH3) DMA.
    w3q, s3 = _quantize_per_col(params["w3"])
    packed["w3q"] = w3q.reshape(H2, N_CHUNKS, CH3).transpose(1, 0, 2)
    packed["s3"] = s3

    # w4: pad output dim 200 -> 256, int8, chunked on contraction rows.
    w4_pad = jnp.pad(params["w4"], ((0, 0), (0, OUT_PAD - OUT)))
    w4q, s4 = _quantize_per_col(w4_pad)
    packed["w4q"] = w4q.reshape(N_CHUNKS, CH3, OUT_PAD)
    packed["s4"] = s4
    packed["b4"] = jnp.pad(params["b4"], ((0, 0), (0, OUT_PAD - OUT)))
    return packed


def generator_forward(z, packed):
    """z: (B, latent_dim) float32 -> (B, 1, 200) float32.  Requires B >= 2
    (PyTorch BatchNorm1d train mode also requires batch > 1)."""
    B = z.shape[0]
    z_p = jnp.pad(z, ((0, 0), (0, K_PAD - LATENT_DIM)))   # zero-pad K to 128

    args = (
        z_p,
        packed["w1"], packed["b1"], packed["g1"], packed["be1"],
        packed["w2"], packed["b2"], packed["g2"], packed["be2"],
        packed["w3q"], packed["s3"], packed["b3"], packed["g3"], packed["be3"],
        packed["w4q"], packed["s4"], packed["b4"],
    )

    vmem = pl.BlockSpec(memory_space=pltpu.MemorySpace.VMEM)
    hbm = pl.BlockSpec(memory_space=pl.ANY)   # streamed manually inside kernel
    in_specs = [
        vmem,                        # z
        vmem, vmem, vmem, vmem,      # w1, b1, g1, be1
        hbm,  vmem, vmem, vmem,      # w2 (HBM, manual DMA), b2, g2, be2
        hbm,  vmem, vmem, vmem, vmem,  # w3q (HBM, chunk DMAs), s3, b3, g3, be3
        hbm,  vmem, vmem,            # w4q (HBM, chunk DMAs), s4, b4
    ]

    flops = 2 * B * (K_PAD * H1 + H1 * H2 + H2 * H3 + H3 * OUT_PAD)
    bytes_accessed = (K_PAD * H1 * 2 + H1 * H2 * 2      # bf16 w1, w2
                      + H2 * H3 + H3 * OUT_PAD          # int8 w3, w4
                      + B * (K_PAD + OUT_PAD) * 4       # activations in/out
                      + 16 * (H1 + H2 + H3 + OUT_PAD))  # biases/BN/scales
    transcendentals = B * OUT_PAD + (H1 + H2 + H3)       # tanh + rsqrt

    out2d = pl.pallas_call(
        generator_kernel,
        out_shape=jax.ShapeDtypeStruct((B, OUT_PAD), jnp.float32),
        in_specs=in_specs,
        out_specs=vmem,
        scratch_shapes=[
            pltpu.VMEM((H1, H2), jnp.bfloat16),             # w2 landing buffer
            pltpu.VMEM((N_CHUNKS, H2, CH3), jnp.int8),      # w3 chunk buffers
            pltpu.VMEM((N_CHUNKS, CH3, OUT_PAD), jnp.int8),  # w4 chunk buffers
            pltpu.SemaphoreType.DMA((1,)),
            pltpu.SemaphoreType.DMA((N_CHUNKS,)),
            pltpu.SemaphoreType.DMA((N_CHUNKS,)),
        ],
        cost_estimate=pl.CostEstimate(
            flops=flops, transcendentals=transcendentals,
            bytes_accessed=bytes_accessed),
    )(*args)

    # PyTorch: x.unsqueeze(1) -> [batch, 1, seq_len]; drop the lane padding.
    return out2d[:, :OUT].reshape(B, 1, OUT)


def _reference_quantized(z, packed):
    """Pure-JAX mirror of the kernel math (bf16 MXU operands, int8 weights
    dequantized via post-matmul per-column scales, f32 elsewhere)."""
    bf16 = jnp.bfloat16
    z_p = jnp.pad(z, ((0, 0), (0, K_PAD - LATENT_DIM)))

    def bn(x, g, be):
        mean = jnp.mean(x, axis=0, keepdims=True)
        xc = x - mean
        var = jnp.mean(xc * xc, axis=0, keepdims=True)
        return xc * (lax.rsqrt(var + BN_EPS) * g) + be

    def block(x, w_bf, b, g, be):
        x = jnp.dot(x.astype(bf16), w_bf, preferred_element_type=jnp.float32) + b
        return bn(jnp.where(x > 0, x, LEAK * x), g, be)

    x = block(z_p, packed["w1"], packed["b1"], packed["g1"], packed["be1"])
    x = block(x, packed["w2"], packed["b2"], packed["g2"], packed["be2"])

    w3q = packed["w3q"].transpose(1, 0, 2).reshape(H2, H3).astype(bf16)
    h = jnp.dot(x.astype(bf16), w3q, preferred_element_type=jnp.float32)
    h = h * packed["s3"] + packed["b3"]
    h = bn(jnp.where(h > 0, h, LEAK * h), packed["g3"], packed["be3"])

    w4q = packed["w4q"].reshape(H3, OUT_PAD).astype(bf16)
    y = jnp.dot(h.astype(bf16), w4q, preferred_element_type=jnp.float32)
    y = y * packed["s4"] + packed["b4"]
    return jnp.tanh(y)[:, :OUT][:, None, :]


def _reference_f32(z, params):
    """Full-precision reference of the original PyTorch forward semantics."""
    x = z
    for i in range(1, 4):
        x = x @ params[f"w{i}"] + params[f"b{i}"]
        x = jnp.where(x > 0, x, LEAK * x)
        mean = jnp.mean(x, axis=0, keepdims=True)
        var = jnp.mean((x - mean) ** 2, axis=0, keepdims=True)
        x = (x - mean) / jnp.sqrt(var + BN_EPS) * params[f"g{i}"] + params[f"be{i}"]
    x = x @ params["w4"] + params["b4"]
    return jnp.tanh(x)[:, None, :]


if __name__ == "__main__":
    key = jax.random.PRNGKey(0)
    pkey, zkey = jax.random.split(key)
    params = init_params(pkey)
    packed = pack_params(params)

    B = 8  # BatchNorm1d(train) needs batch > 1
    z = jax.random.normal(zkey, (B, LATENT_DIM), dtype=jnp.float32)

    out = jax.block_until_ready(generator_forward(z, packed))
    assert out.shape == (B, 1, OUT), out.shape

    # Tight check against a reference that mirrors the kernel's quantized math.
    ref_q = _reference_quantized(z, packed)
    err_q = float(jnp.max(jnp.abs(out - ref_q)))
    assert err_q < 5e-3, f"kernel vs quantized reference max err {err_q}"

    # Loose check against the full-precision (PyTorch-semantics) forward:
    # covers bf16 activations + int8 weight quantization error end-to-end.
    ref_f = _reference_f32(z, params)
    err_f = float(jnp.max(jnp.abs(out - ref_f)))
    assert err_f < 8e-2, f"kernel vs f32 reference max err {err_f}"

    print("KERNEL_OK")
</pallas_src>

<mosaic_0001>
module attributes {stable_mosaic.version = 11 : i64} {
  func.func @generator_kernel(%arg0: memref<8x128xf32, #tpu.memory_space<vmem>>, %arg1: memref<128x256xbf16, #tpu.memory_space<vmem>>, %arg2: memref<1x256xf32, #tpu.memory_space<vmem>>, %arg3: memref<1x256xf32, #tpu.memory_space<vmem>>, %arg4: memref<1x256xf32, #tpu.memory_space<vmem>>, %arg5: memref<256x512xbf16, #tpu.memory_space<any>>, %arg6: memref<1x512xf32, #tpu.memory_space<vmem>>, %arg7: memref<1x512xf32, #tpu.memory_space<vmem>>, %arg8: memref<1x512xf32, #tpu.memory_space<vmem>>, %arg9: memref<4x512x256xi8, #tpu.memory_space<any>>, %arg10: memref<1x1024xf32, #tpu.memory_space<vmem>>, %arg11: memref<1x1024xf32, #tpu.memory_space<vmem>>, %arg12: memref<1x1024xf32, #tpu.memory_space<vmem>>, %arg13: memref<1x1024xf32, #tpu.memory_space<vmem>>, %arg14: memref<4x256x256xi8, #tpu.memory_space<any>>, %arg15: memref<1x256xf32, #tpu.memory_space<vmem>>, %arg16: memref<1x256xf32, #tpu.memory_space<vmem>>, %arg17: memref<8x256xf32, #tpu.memory_space<vmem>>, %arg18: memref<256x512xbf16, #tpu.memory_space<vmem>>, %arg19: memref<4x512x256xi8, #tpu.memory_space<vmem>>, %arg20: memref<4x256x256xi8, #tpu.memory_space<vmem>>, %arg21: memref<1x!tpu.dma_semaphore, #tpu.memory_space<semaphore_mem>>, %arg22: memref<4x!tpu.dma_semaphore, #tpu.memory_space<semaphore_mem>>, %arg23: memref<4x!tpu.dma_semaphore, #tpu.memory_space<semaphore_mem>>) attributes {dimension_semantics = [], scalar_prefetch = 0 : i64, scratch_operands = 6 : i64, tpu.core_type = #tpu.core_type<tc>} {
    %c0_i32 = arith.constant 0 : i32
    %0 = tpu.memref_slice %arg21[%c0_i32] : memref<1x!tpu.dma_semaphore, #tpu.memory_space<semaphore_mem>> -> memref<1x!tpu.dma_semaphore, #tpu.memory_space<semaphore_mem>>
    %1 = tpu.memref_squeeze %0 : memref<1x!tpu.dma_semaphore, #tpu.memory_space<semaphore_mem>> -> memref<!tpu.dma_semaphore, #tpu.memory_space<semaphore_mem>>
    tpu.enqueue_dma source(%arg5 : memref<256x512xbf16, #tpu.memory_space<any>>) target(%arg18 : memref<256x512xbf16, #tpu.memory_space<vmem>>) target_semaphore(%1 : memref<!tpu.dma_semaphore, #tpu.memory_space<semaphore_mem>>)
    %c0_i32_0 = arith.constant 0 : i32
    %c0_i32_1 = arith.constant 0 : i32
    %c0_i32_2 = arith.constant 0 : i32
    %c0_i32_3 = arith.constant 0 : i32
    %c0_i32_4 = arith.constant 0 : i32
    %2 = tpu.memref_slice %arg9[%c0_i32_0, %c0_i32_3, %c0_i32_4] : memref<4x512x256xi8, #tpu.memory_space<any>> -> memref<1x512x256xi8, #tpu.memory_space<any>>
    %3 = tpu.memref_squeeze %2 : memref<1x512x256xi8, #tpu.memory_space<any>> -> memref<512x256xi8, #tpu.memory_space<any>>
    %c0_i32_5 = arith.constant 0 : i32
    %c0_i32_6 = arith.constant 0 : i32
    %4 = tpu.memref_slice %arg19[%c0_i32_1, %c0_i32_5, %c0_i32_6] : memref<4x512x256xi8, #tpu.memory_space<vmem>> -> memref<1x512x256xi8, #tpu.memory_space<vmem>>
    %5 = tpu.memref_squeeze %4 : memref<1x512x256xi8, #tpu.memory_space<vmem>> -> memref<512x256xi8, #tpu.memory_space<vmem>>
    %6 = tpu.memref_slice %arg22[%c0_i32_2] : memref<4x!tpu.dma_semaphore, #tpu.memory_space<semaphore_mem>> -> memref<1x!tpu.dma_semaphore, #tpu.memory_space<semaphore_mem>>
    %7 = tpu.memref_squeeze %6 : memref<1x!tpu.dma_semaphore, #tpu.memory_space<semaphore_mem>> -> memref<!tpu.dma_semaphore, #tpu.memory_space<semaphore_mem>>
    tpu.enqueue_dma source(%3 : memref<512x256xi8, #tpu.memory_space<any>>) target(%5 : memref<512x256xi8, #tpu.memory_space<vmem>>) target_semaphore(%7 : memref<!tpu.dma_semaphore, #tpu.memory_space<semaphore_mem>>)
    %c0_i32_7 = arith.constant 0 : i32
    %c0_i32_8 = arith.constant 0 : i32
    %c0_i32_9 = arith.constant 0 : i32
    %c0_i32_10 = arith.constant 0 : i32
    %c0_i32_11 = arith.constant 0 : i32
    %8 = tpu.memref_slice %arg14[%c0_i32_7, %c0_i32_10, %c0_i32_11] : memref<4x256x256xi8, #tpu.memory_space<any>> -> memref<1x256x256xi8, #tpu.memory_space<any>>
    %9 = tpu.memref_squeeze %8 : memref<1x256x256xi8, #tpu.memory_space<any>> -> memref<256x256xi8, #tpu.memory_space<any>>
    %c0_i32_12 = arith.constant 0 : i32
    %c0_i32_13 = arith.constant 0 : i32
    %10 = tpu.memref_slice %arg20[%c0_i32_8, %c0_i32_12, %c0_i32_13] : memref<4x256x256xi8, #tpu.memory_space<vmem>> -> memref<1x256x256xi8, #tpu.memory_space<vmem>>
    %11 = tpu.memref_squeeze %10 : memref<1x256x256xi8, #tpu.memory_space<vmem>> -> memref<256x256xi8, #tpu.memory_space<vmem>>
    %12 = tpu.memref_slice %arg23[%c0_i32_9] : memref<4x!tpu.dma_semaphore, #tpu.memory_space<semaphore_mem>> -> memref<1x!tpu.dma_semaphore, #tpu.memory_space<semaphore_mem>>
    %13 = tpu.memref_squeeze %12 : memref<1x!tpu.dma_semaphore, #tpu.memory_space<semaphore_mem>> -> memref<!tpu.dma_semaphore, #tpu.memory_space<semaphore_mem>>
    tpu.enqueue_dma source(%9 : memref<256x256xi8, #tpu.memory_space<any>>) target(%11 : memref<256x256xi8, #tpu.memory_space<vmem>>) target_semaphore(%13 : memref<!tpu.dma_semaphore, #tpu.memory_space<semaphore_mem>>)
    %c1_i32 = arith.constant 1 : i32
    %c1_i32_14 = arith.constant 1 : i32
    %c1_i32_15 = arith.constant 1 : i32
    %c0_i32_16 = arith.constant 0 : i32
    %c0_i32_17 = arith.constant 0 : i32
    %14 = tpu.memref_slice %arg9[%c1_i32, %c0_i32_16, %c0_i32_17] : memref<4x512x256xi8, #tpu.memory_space<any>> -> memref<1x512x256xi8, #tpu.memory_space<any>>
    %15 = tpu.memref_squeeze %14 : memref<1x512x256xi8, #tpu.memory_space<any>> -> memref<512x256xi8, #tpu.memory_space<any>>
    %c0_i32_18 = arith.constant 0 : i32
    %c0_i32_19 = arith.constant 0 : i32
    %16 = tpu.memref_slice %arg19[%c1_i32_14, %c0_i32_18, %c0_i32_19] : memref<4x512x256xi8, #tpu.memory_space<vmem>> -> memref<1x512x256xi8, #tpu.memory_space<vmem>>
    %17 = tpu.memref_squeeze %16 : memref<1x512x256xi8, #tpu.memory_space<vmem>> -> memref<512x256xi8, #tpu.memory_space<vmem>>
    %18 = tpu.memref_slice %arg22[%c1_i32_15] : memref<4x!tpu.dma_semaphore, #tpu.memory_space<semaphore_mem>> -> memref<1x!tpu.dma_semaphore, #tpu.memory_space<semaphore_mem>>
    %19 = tpu.memref_squeeze %18 : memref<1x!tpu.dma_semaphore, #tpu.memory_space<semaphore_mem>> -> memref<!tpu.dma_semaphore, #tpu.memory_space<semaphore_mem>>
    tpu.enqueue_dma source(%15 : memref<512x256xi8, #tpu.memory_space<any>>) target(%17 : memref<512x256xi8, #tpu.memory_space<vmem>>) target_semaphore(%19 : memref<!tpu.dma_semaphore, #tpu.memory_space<semaphore_mem>>)
    %c1_i32_20 = arith.constant 1 : i32
    %c1_i32_21 = arith.constant 1 : i32
    %c1_i32_22 = arith.constant 1 : i32
    %c0_i32_23 = arith.constant 0 : i32
    %c0_i32_24 = arith.constant 0 : i32
    %20 = tpu.memref_slice %arg14[%c1_i32_20, %c0_i32_23, %c0_i32_24] : memref<4x256x256xi8, #tpu.memory_space<any>> -> memref<1x256x256xi8, #tpu.memory_space<any>>
    %21 = tpu.memref_squeeze %20 : memref<1x256x256xi8, #tpu.memory_space<any>> -> memref<256x256xi8, #tpu.memory_space<any>>
    %c0_i32_25 = arith.constant 0 : i32
    %c0_i32_26 = arith.constant 0 : i32
    %22 = tpu.memref_slice %arg20[%c1_i32_21, %c0_i32_25, %c0_i32_26] : memref<4x256x256xi8, #tpu.memory_space<vmem>> -> memref<1x256x256xi8, #tpu.memory_space<vmem>>
    %23 = tpu.memref_squeeze %22 : memref<1x256x256xi8, #tpu.memory_space<vmem>> -> memref<256x256xi8, #tpu.memory_space<vmem>>
    %24 = tpu.memref_slice %arg23[%c1_i32_22] : memref<4x!tpu.dma_semaphore, #tpu.memory_space<semaphore_mem>> -> memref<1x!tpu.dma_semaphore, #tpu.memory_space<semaphore_mem>>
    %25 = tpu.memref_squeeze %24 : memref<1x!tpu.dma_semaphore, #tpu.memory_space<semaphore_mem>> -> memref<!tpu.dma_semaphore, #tpu.memory_space<semaphore_mem>>
    tpu.enqueue_dma source(%21 : memref<256x256xi8, #tpu.memory_space<any>>) target(%23 : memref<256x256xi8, #tpu.memory_space<vmem>>) target_semaphore(%25 : memref<!tpu.dma_semaphore, #tpu.memory_space<semaphore_mem>>)
    %c2_i32 = arith.constant 2 : i32
    %c2_i32_27 = arith.constant 2 : i32
    %c2_i32_28 = arith.constant 2 : i32
    %c0_i32_29 = arith.constant 0 : i32
    %c0_i32_30 = arith.constant 0 : i32
    %26 = tpu.memref_slice %arg9[%c2_i32, %c0_i32_29, %c0_i32_30] : memref<4x512x256xi8, #tpu.memory_space<any>> -> memref<1x512x256xi8, #tpu.memory_space<any>>
    %27 = tpu.memref_squeeze %26 : memref<1x512x256xi8, #tpu.memory_space<any>> -> memref<512x256xi8, #tpu.memory_space<any>>
    %c0_i32_31 = arith.constant 0 : i32
    %c0_i32_32 = arith.constant 0 : i32
    %28 = tpu.memref_slice %arg19[%c2_i32_27, %c0_i32_31, %c0_i32_32] : memref<4x512x256xi8, #tpu.memory_space<vmem>> -> memref<1x512x256xi8, #tpu.memory_space<vmem>>
    %29 = tpu.memref_squeeze %28 : memref<1x512x256xi8, #tpu.memory_space<vmem>> -> memref<512x256xi8, #tpu.memory_space<vmem>>
    %30 = tpu.memref_slice %arg22[%c2_i32_28] : memref<4x!tpu.dma_semaphore, #tpu.memory_space<semaphore_mem>> -> memref<1x!tpu.dma_semaphore, #tpu.memory_space<semaphore_mem>>
    %31 = tpu.memref_squeeze %30 : memref<1x!tpu.dma_semaphore, #tpu.memory_space<semaphore_mem>> -> memref<!tpu.dma_semaphore, #tpu.memory_space<semaphore_mem>>
    tpu.enqueue_dma source(%27 : memref<512x256xi8, #tpu.memory_space<any>>) target(%29 : memref<512x256xi8, #tpu.memory_space<vmem>>) target_semaphore(%31 : memref<!tpu.dma_semaphore, #tpu.memory_space<semaphore_mem>>)
    %c2_i32_33 = arith.constant 2 : i32
    %c2_i32_34 = arith.constant 2 : i32
    %c2_i32_35 = arith.constant 2 : i32
    %c0_i32_36 = arith.constant 0 : i32
    %c0_i32_37 = arith.constant 0 : i32
    %32 = tpu.memref_slice %arg14[%c2_i32_33, %c0_i32_36, %c0_i32_37] : memref<4x256x256xi8, #tpu.memory_space<any>> -> memref<1x256x256xi8, #tpu.memory_space<any>>
    %33 = tpu.memref_squeeze %32 : memref<1x256x256xi8, #tpu.memory_space<any>> -> memref<256x256xi8, #tpu.memory_space<any>>
    %c0_i32_38 = arith.constant 0 : i32
    %c0_i32_39 = arith.constant 0 : i32
    %34 = tpu.memref_slice %arg20[%c2_i32_34, %c0_i32_38, %c0_i32_39] : memref<4x256x256xi8, #tpu.memory_space<vmem>> -> memref<1x256x256xi8, #tpu.memory_space<vmem>>
    %35 = tpu.memref_squeeze %34 : memref<1x256x256xi8, #tpu.memory_space<vmem>> -> memref<256x256xi8, #tpu.memory_space<vmem>>
    %36 = tpu.memref_slice %arg23[%c2_i32_35] : memref<4x!tpu.dma_semaphore, #tpu.memory_space<semaphore_mem>> -> memref<1x!tpu.dma_semaphore, #tpu.memory_space<semaphore_mem>>
    %37 = tpu.memref_squeeze %36 : memref<1x!tpu.dma_semaphore, #tpu.memory_space<semaphore_mem>> -> memref<!tpu.dma_semaphore, #tpu.memory_space<semaphore_mem>>
    tpu.enqueue_dma source(%33 : memref<256x256xi8, #tpu.memory_space<any>>) target(%35 : memref<256x256xi8, #tpu.memory_space<vmem>>) target_semaphore(%37 : memref<!tpu.dma_semaphore, #tpu.memory_space<semaphore_mem>>)
    %c3_i32 = arith.constant 3 : i32
    %c3_i32_40 = arith.constant 3 : i32
    %c3_i32_41 = arith.constant 3 : i32
    %c0_i32_42 = arith.constant 0 : i32
    %c0_i32_43 = arith.constant 0 : i32
    %38 = tpu.memref_slice %arg9[%c3_i32, %c0_i32_42, %c0_i32_43] : memref<4x512x256xi8, #tpu.memory_space<any>> -> memref<1x512x256xi8, #tpu.memory_space<any>>
    %39 = tpu.memref_squeeze %38 : memref<1x512x256xi8, #tpu.memory_space<any>> -> memref<512x256xi8, #tpu.memory_space<any>>
    %c0_i32_44 = arith.constant 0 : i32
    %c0_i32_45 = arith.constant 0 : i32
    %40 = tpu.memref_slice %arg19[%c3_i32_40, %c0_i32_44, %c0_i32_45] : memref<4x512x256xi8, #tpu.memory_space<vmem>> -> memref<1x512x256xi8, #tpu.memory_space<vmem>>
    %41 = tpu.memref_squeeze %40 : memref<1x512x256xi8, #tpu.memory_space<vmem>> -> memref<512x256xi8, #tpu.memory_space<vmem>>
    %42 = tpu.memref_slice %arg22[%c3_i32_41] : memref<4x!tpu.dma_semaphore, #tpu.memory_space<semaphore_mem>> -> memref<1x!tpu.dma_semaphore, #tpu.memory_space<semaphore_mem>>
    %43 = tpu.memref_squeeze %42 : memref<1x!tpu.dma_semaphore, #tpu.memory_space<semaphore_mem>> -> memref<!tpu.dma_semaphore, #tpu.memory_space<semaphore_mem>>
    tpu.enqueue_dma source(%39 : memref<512x256xi8, #tpu.memory_space<any>>) target(%41 : memref<512x256xi8, #tpu.memory_space<vmem>>) target_semaphore(%43 : memref<!tpu.dma_semaphore, #tpu.memory_space<semaphore_mem>>)
    %c3_i32_46 = arith.constant 3 : i32
    %c3_i32_47 = arith.constant 3 : i32
    %c3_i32_48 = arith.constant 3 : i32
    %c0_i32_49 = arith.constant 0 : i32
    %c0_i32_50 = arith.constant 0 : i32
    %44 = tpu.memref_slice %arg14[%c3_i32_46, %c0_i32_49, %c0_i32_50] : memref<4x256x256xi8, #tpu.memory_space<any>> -> memref<1x256x256xi8, #tpu.memory_space<any>>
    %45 = tpu.memref_squeeze %44 : memref<1x256x256xi8, #tpu.memory_space<any>> -> memref<256x256xi8, #tpu.memory_space<any>>
    %c0_i32_51 = arith.constant 0 : i32
    %c0_i32_52 = arith.constant 0 : i32
    %46 = tpu.memref_slice %arg20[%c3_i32_47, %c0_i32_51, %c0_i32_52] : memref<4x256x256xi8, #tpu.memory_space<vmem>> -> memref<1x256x256xi8, #tpu.memory_space<vmem>>
    %47 = tpu.memref_squeeze %46 : memref<1x256x256xi8, #tpu.memory_space<vmem>> -> memref<256x256xi8, #tpu.memory_space<vmem>>
    %48 = tpu.memref_slice %arg23[%c3_i32_48] : memref<4x!tpu.dma_semaphore, #tpu.memory_space<semaphore_mem>> -> memref<1x!tpu.dma_semaphore, #tpu.memory_space<semaphore_mem>>
    %49 = tpu.memref_squeeze %48 : memref<1x!tpu.dma_semaphore, #tpu.memory_space<semaphore_mem>> -> memref<!tpu.dma_semaphore, #tpu.memory_space<semaphore_mem>>
    tpu.enqueue_dma source(%45 : memref<256x256xi8, #tpu.memory_space<any>>) target(%47 : memref<256x256xi8, #tpu.memory_space<vmem>>) target_semaphore(%49 : memref<!tpu.dma_semaphore, #tpu.memory_space<semaphore_mem>>)
    %c0 = arith.constant 0 : index
    %c0_53 = arith.constant 0 : index
    %50 = vector.load %arg0[%c0, %c0_53] : memref<8x128xf32, #tpu.memory_space<vmem>>, vector<8x128xf32>
    %c0_54 = arith.constant 0 : index
    %c0_55 = arith.constant 0 : index
    %51 = vector.load %arg1[%c0_54, %c0_55] : memref<128x256xbf16, #tpu.memory_space<vmem>>, vector<128x256xbf16>
    %52 = arith.truncf %50 : vector<8x128xf32> to vector<8x128xbf16>
    %cst = arith.constant dense<0.000000e+00> : vector<8x256xf32>
    %53 = tpu.matmul %52, %51, %cst {dimension_numbers = #tpu.dot_dimension_numbers<[1], [0], [0], [1], [0, 0, 1, 1], [], []>} : vector<8x128xbf16>, vector<128x256xbf16>, vector<8x256xf32> -> vector<8x256xf32>
    %c0_56 = arith.constant 0 : index
    %c0_57 = arith.constant 0 : index
    %54 = vector.load %arg2[%c0_56, %c0_57] : memref<1x256xf32, #tpu.memory_space<vmem>>, vector<1x256xf32>
    %55 = vector.broadcast %54 : vector<1x256xf32> to vector<8x256xf32>
    %56 = arith.addf %53, %55 : vector<8x256xf32>
    %cst_58 = arith.constant 0.000000e+00 : f32
    %57 = vector.broadcast %cst_58 : f32 to vector<8x256xf32>
    %58 = arith.cmpf ogt, %56, %57 : vector<8x256xf32>
    %cst_59 = arith.constant 2.000000e-01 : f32
    %59 = vector.broadcast %cst_59 : f32 to vector<8x256xf32>
    %60 = arith.mulf %59, %56 : vector<8x256xf32>
    %61 = arith.select %58, %56, %60 : vector<8x256xi1>, vector<8x256xf32>
    %c0_60 = arith.constant 0 : index
    %c0_61 = arith.constant 0 : index
    %62 = vector.load %arg3[%c0_60, %c0_61] : memref<1x256xf32, #tpu.memory_space<vmem>>, vector<1x256xf32>
    %c0_62 = arith.constant 0 : index
    %c0_63 = arith.constant 0 : index
    %63 = vector.load %arg4[%c0_62, %c0_63] : memref<1x256xf32, #tpu.memory_space<vmem>>, vector<1x256xf32>
    %cst_64 = arith.constant dense<0.000000e+00> : vector<256xf32>
    %64 = vector.multi_reduction <add>, %61, %cst_64 [0] : vector<8x256xf32> to vector<256xf32>
    %65 = vector.shape_cast %64 : vector<256xf32> to vector<1x256xf32>
    %cst_65 = arith.constant 8.000000e+00 : f32
    %66 = vector.broadcast %cst_65 : f32 to vector<1x256xf32>
    %67 = arith.divf %65, %66 : vector<1x256xf32>
    %68 = vector.broadcast %67 : vector<1x256xf32> to vector<8x256xf32>
    %69 = arith.subf %61, %68 : vector<8x256xf32>
    %70 = arith.mulf %69, %69 : vector<8x256xf32>
    %cst_66 = arith.constant dense<0.000000e+00> : vector<256xf32>
    %71 = vector.multi_reduction <add>, %70, %cst_66 [0] : vector<8x256xf32> to vector<256xf32>
    %72 = vector.shape_cast %71 : vector<256xf32> to vector<1x256xf32>
    %cst_67 = arith.constant 8.000000e+00 : f32
    %73 = vector.broadcast %cst_67 : f32 to vector<1x256xf32>
    %74 = arith.divf %72, %73 : vector<1x256xf32>
    %cst_68 = arith.constant 9.99999974E-6 : f32
    %75 = vector.broadcast %cst_68 : f32 to vector<1x256xf32>
    %76 = arith.addf %74, %75 : vector<1x256xf32>
    %77 = math.rsqrt %76 : vector<1x256xf32>
    %78 = arith.mulf %77, %62 : vector<1x256xf32>
    %79 = vector.broadcast %78 : vector<1x256xf32> to vector<8x256xf32>
    %80 = arith.mulf %69, %79 : vector<8x256xf32>
    %81 = vector.broadcast %63 : vector<1x256xf32> to vector<8x256xf32>
    %82 = arith.addf %80, %81 : vector<8x256xf32>
    %c0_i32_69 = arith.constant 0 : i32
    %83 = tpu.memref_slice %arg21[%c0_i32_69] : memref<1x!tpu.dma_semaphore, #tpu.memory_space<semaphore_mem>> -> memref<1x!tpu.dma_semaphore, #tpu.memory_space<semaphore_mem>>
    %84 = tpu.memref_squeeze %83 : memref<1x!tpu.dma_semaphore, #tpu.memory_space<semaphore_mem>> -> memref<!tpu.dma_semaphore, #tpu.memory_space<semaphore_mem>>
    tpu.wait_dma2 semaphore(%84 : memref<!tpu.dma_semaphore, #tpu.memory_space<semaphore_mem>>) src(%arg5 : memref<256x512xbf16, #tpu.memory_space<any>>) dst(%arg18 : memref<256x512xbf16, #tpu.memory_space<vmem>>)
    %c0_70 = arith.constant 0 : index
    %c0_71 = arith.constant 0 : index
    %85 = vector.load %arg18[%c0_70, %c0_71] : memref<256x512xbf16, #tpu.memory_space<vmem>>, vector<256x512xbf16>
    %86 = arith.truncf %82 : vector<8x256xf32> to vector<8x256xbf16>
    %cst_72 = arith.constant dense<0.000000e+00> : vector<8x512xf32>
    %87 = tpu.matmul %86, %85, %cst_72 {dimension_numbers = #tpu.dot_dimension_numbers<[1], [0], [0], [1], [0, 0, 1, 1], [], []>} : vector<8x256xbf16>, vector<256x512xbf16>, vector<8x512xf32> -> vector<8x512xf32>
    %c0_73 = arith.constant 0 : index
    %c0_74 = arith.constant 0 : index
    %88 = vector.load %arg6[%c0_73, %c0_74] : memref<1x512xf32, #tpu.memory_space<vmem>>, vector<1x512xf32>
    %89 = vector.broadcast %88 : vector<1x512xf32> to vector<8x512xf32>
    %90 = arith.addf %87, %89 : vector<8x512xf32>
    %cst_75 = arith.constant 0.000000e+00 : f32
    %91 = vector.broadcast %cst_75 : f32 to vector<8x512xf32>
    %92 = arith.cmpf ogt, %90, %91 : vector<8x512xf32>
    %cst_76 = arith.constant 2.000000e-01 : f32
    %93 = vector.broadcast %cst_76 : f32 to vector<8x512xf32>
    %94 = arith.mulf %93, %90 : vector<8x512xf32>
    %95 = arith.select %92, %90, %94 : vector<8x512xi1>, vector<8x512xf32>
    %c0_77 = arith.constant 0 : index
    %c0_78 = arith.constant 0 : index
    %96 = vector.load %arg7[%c0_77, %c0_78] : memref<1x512xf32, #tpu.memory_space<vmem>>, vector<1x512xf32>
    %c0_79 = arith.constant 0 : index
    %c0_80 = arith.constant 0 : index
    %97 = vector.load %arg8[%c0_79, %c0_80] : memref<1x512xf32, #tpu.memory_space<vmem>>, vector<1x512xf32>
    %cst_81 = arith.constant dense<0.000000e+00> : vector<512xf32>
    %98 = vector.multi_reduction <add>, %95, %cst_81 [0] : vector<8x512xf32> to vector<512xf32>
    %99 = vector.shape_cast %98 : vector<512xf32> to vector<1x512xf32>
    %cst_82 = arith.constant 8.000000e+00 : f32
    %100 = vector.broadcast %cst_82 : f32 to vector<1x512xf32>
    %101 = arith.divf %99, %100 : vector<1x512xf32>
    %102 = vector.broadcast %101 : vector<1x512xf32> to vector<8x512xf32>
    %103 = arith.subf %95, %102 : vector<8x512xf32>
    %104 = arith.mulf %103, %103 : vector<8x512xf32>
    %cst_83 = arith.constant dense<0.000000e+00> : vector<512xf32>
    %105 = vector.multi_reduction <add>, %104, %cst_83 [0] : vector<8x512xf32> to vector<512xf32>
    %106 = vector.shape_cast %105 : vector<512xf32> to vector<1x512xf32>
    %cst_84 = arith.constant 8.000000e+00 : f32
    %107 = vector.broadcast %cst_84 : f32 to vector<1x512xf32>
    %108 = arith.divf %106, %107 : vector<1x512xf32>
    %cst_85 = arith.constant 9.99999974E-6 : f32
    %109 = vector.broadcast %cst_85 : f32 to vector<1x512xf32>
    %110 = arith.addf %108, %109 : vector<1x512xf32>
    %111 = math.rsqrt %110 : vector<1x512xf32>
    %112 = arith.mulf %111, %96 : vector<1x512xf32>
    %113 = vector.broadcast %112 : vector<1x512xf32> to vector<8x512xf32>
    %114 = arith.mulf %103, %113 : vector<8x512xf32>
    %115 = vector.broadcast %97 : vector<1x512xf32> to vector<8x512xf32>
    %116 = arith.addf %114, %115 : vector<8x512xf32>
    %117 = arith.truncf %116 : vector<8x512xf32> to vector<8x512xbf16>
    %cst_86 = arith.constant 0.000000e+00 : f32
    %118 = vector.broadcast %cst_86 : f32 to vector<8x256xf32>
    %c0_i32_87 = arith.constant 0 : i32
    %c0_i32_88 = arith.constant 0 : i32
    %c0_i32_89 = arith.constant 0 : i32
    %c0_i32_90 = arith.constant 0 : i32
    %c0_i32_91 = arith.constant 0 : i32
    %119 = tpu.memref_slice %arg9[%c0_i32_87, %c0_i32_90, %c0_i32_91] : memref<4x512x256xi8, #tpu.memory_space<any>> -> memref<1x512x256xi8, #tpu.memory_space<any>>
    %120 = tpu.memref_squeeze %119 : memref<1x512x256xi8, #tpu.memory_space<any>> -> memref<512x256xi8, #tpu.memory_space<any>>
    %c0_i32_92 = arith.constant 0 : i32
    %c0_i32_93 = arith.constant 0 : i32
    %121 = tpu.memref_slice %arg19[%c0_i32_88, %c0_i32_92, %c0_i32_93] : memref<4x512x256xi8, #tpu.memory_space<vmem>> -> memref<1x512x256xi8, #tpu.memory_space<vmem>>
    %122 = tpu.memref_squeeze %121 : memref<1x512x256xi8, #tpu.memory_space<vmem>> -> memref<512x256xi8, #tpu.memory_space<vmem>>
    %123 = tpu.memref_slice %arg22[%c0_i32_89] : memref<4x!tpu.dma_semaphore, #tpu.memory_space<semaphore_mem>> -> memref<1x!tpu.dma_semaphore, #tpu.memory_space<semaphore_mem>>
    %124 = tpu.memref_squeeze %123 : memref<1x!tpu.dma_semaphore, #tpu.memory_space<semaphore_mem>> -> memref<!tpu.dma_semaphore, #tpu.memory_space<semaphore_mem>>
    tpu.wait_dma2 semaphore(%124 : memref<!tpu.dma_semaphore, #tpu.memory_space<semaphore_mem>>) src(%120 : memref<512x256xi8, #tpu.memory_space<any>>) dst(%122 : memref<512x256xi8, #tpu.memory_space<vmem>>)
    %c0_94 = arith.constant 0 : index
    %c0_95 = arith.constant 0 : index
    %c0_96 = arith.constant 0 : index
    %125 = vector.load %arg19[%c0_94, %c0_95, %c0_96] : memref<4x512x256xi8, #tpu.memory_space<vmem>>, vector<1x512x256xi8>
    %126 = vector.shape_cast %125 : vector<1x512x256xi8> to vector<512x256xi8>
    %127 = arith.sitofp %126 : vector<512x256xi8> to vector<512x256xbf16>
    %cst_97 = arith.constant dense<0.000000e+00> : vector<8x256xf32>
    %128 = tpu.matmul %117, %127, %cst_97 {dimension_numbers = #tpu.dot_dimension_numbers<[1], [0], [0], [1], [0, 0, 1, 1], [], []>} : vector<8x512xbf16>, vector<512x256xbf16>, vector<8x256xf32> -> vector<8x256xf32>
    %c0_98 = arith.constant 0 : index
    %c0_99 = arith.constant 0 : index
    %129 = vector.load %arg10[%c0_98, %c0_99] : memref<1x1024xf32, #tpu.memory_space<vmem>>, vector<1x256xf32>
    %130 = vector.broadcast %129 : vector<1x256xf32> to vector<8x256xf32>
    %131 = arith.mulf %128, %130 : vector<8x256xf32>
    %c0_100 = arith.constant 0 : index
    %c0_101 = arith.constant 0 : index
    %132 = vector.load %arg11[%c0_100, %c0_101] : memref<1x1024xf32, #tpu.memory_space<vmem>>, vector<1x256xf32>
    %133 = vector.broadcast %132 : vector<1x256xf32> to vector<8x256xf32>
    %134 = arith.addf %131, %133 : vector<8x256xf32>
    %cst_102 = arith.constant 0.000000e+00 : f32
    %135 = vector.broadcast %cst_102 : f32 to vector<8x256xf32>
    %136 = arith.cmpf ogt, %134, %135 : vector<8x256xf32>
    %cst_103 = arith.constant 2.000000e-01 : f32
    %137 = vector.broadcast %cst_103 : f32 to vector<8x256xf32>
    %138 = arith.mulf %137, %134 : vector<8x256xf32>
    %139 = arith.select %136, %134, %138 : vector<8x256xi1>, vector<8x256xf32>
    %c0_104 = arith.constant 0 : index
    %c0_105 = arith.constant 0 : index
    %140 = vector.load %arg12[%c0_104, %c0_105] : memref<1x1024xf32, #tpu.memory_space<vmem>>, vector<1x256xf32>
    %c0_106 = arith.constant 0 : index
    %c0_107 = arith.constant 0 : index
    %141 = vector.load %arg13[%c0_106, %c0_107] : memref<1x1024xf32, #tpu.memory_space<vmem>>, vector<1x256xf32>
    %cst_108 = arith.constant dense<0.000000e+00> : vector<256xf32>
    %142 = vector.multi_reduction <add>, %139, %cst_108 [0] : vector<8x256xf32> to vector<256xf32>
    %143 = vector.shape_cast %142 : vector<256xf32> to vector<1x256xf32>
    %cst_109 = arith.constant 8.000000e+00 : f32
    %144 = vector.broadcast %cst_109 : f32 to vector<1x256xf32>
    %145 = arith.divf %143, %144 : vector<1x256xf32>
    %146 = vector.broadcast %145 : vector<1x256xf32> to vector<8x256xf32>
    %147 = arith.subf %139, %146 : vector<8x256xf32>
    %148 = arith.mulf %147, %147 : vector<8x256xf32>
    %cst_110 = arith.constant dense<0.000000e+00> : vector<256xf32>
    %149 = vector.multi_reduction <add>, %148, %cst_110 [0] : vector<8x256xf32> to vector<256xf32>
    %150 = vector.shape_cast %149 : vector<256xf32> to vector<1x256xf32>
    %cst_111 = arith.constant 8.000000e+00 : f32
    %151 = vector.broadcast %cst_111 : f32 to vector<1x256xf32>
    %152 = arith.divf %150, %151 : vector<1x256xf32>
    %cst_112 = arith.constant 9.99999974E-6 : f32
    %153 = vector.broadcast %cst_112 : f32 to vector<1x256xf32>
    %154 = arith.addf %152, %153 : vector<1x256xf32>
    %155 = math.rsqrt %154 : vector<1x256xf32>
    %156 = arith.mulf %155, %140 : vector<1x256xf32>
    %157 = vector.broadcast %156 : vector<1x256xf32> to vector<8x256xf32>
    %158 = arith.mulf %147, %157 : vector<8x256xf32>
    %159 = vector.broadcast %141 : vector<1x256xf32> to vector<8x256xf32>
    %160 = arith.addf %158, %159 : vector<8x256xf32>
    %c0_i32_113 = arith.constant 0 : i32
    %c0_i32_114 = arith.constant 0 : i32
    %c0_i32_115 = arith.constant 0 : i32
    %c0_i32_116 = arith.constant 0 : i32
    %c0_i32_117 = arith.constant 0 : i32
    %161 = tpu.memref_slice %arg14[%c0_i32_113, %c0_i32_116, %c0_i32_117] : memref<4x256x256xi8, #tpu.memory_space<any>> -> memref<1x256x256xi8, #tpu.memory_space<any>>
    %162 = tpu.memref_squeeze %161 : memref<1x256x256xi8, #tpu.memory_space<any>> -> memref<256x256xi8, #tpu.memory_space<any>>
    %c0_i32_118 = arith.constant 0 : i32
    %c0_i32_119 = arith.constant 0 : i32
    %163 = tpu.memref_slice %arg20[%c0_i32_114, %c0_i32_118, %c0_i32_119] : memref<4x256x256xi8, #tpu.memory_space<vmem>> -> memref<1x256x256xi8, #tpu.memory_space<vmem>>
    %164 = tpu.memref_squeeze %163 : memref<1x256x256xi8, #tpu.memory_space<vmem>> -> memref<256x256xi8, #tpu.memory_space<vmem>>
    %165 = tpu.memref_slice %arg23[%c0_i32_115] : memref<4x!tpu.dma_semaphore, #tpu.memory_space<semaphore_mem>> -> memref<1x!tpu.dma_semaphore, #tpu.memory_space<semaphore_mem>>
    %166 = tpu.memref_squeeze %165 : memref<1x!tpu.dma_semaphore, #tpu.memory_space<semaphore_mem>> -> memref<!tpu.dma_semaphore, #tpu.memory_space<semaphore_mem>>
    tpu.wait_dma2 semaphore(%166 : memref<!tpu.dma_semaphore, #tpu.memory_space<semaphore_mem>>) src(%162 : memref<256x256xi8, #tpu.memory_space<any>>) dst(%164 : memref<256x256xi8, #tpu.memory_space<vmem>>)
    %167 = arith.truncf %160 : vector<8x256xf32> to vector<8x256xbf16>
    %c0_120 = arith.constant 0 : index
    %c0_121 = arith.constant 0 : index
    %c0_122 = arith.constant 0 : index
    %168 = vector.load %arg20[%c0_120, %c0_121, %c0_122] : memref<4x256x256xi8, #tpu.memory_space<vmem>>, vector<1x256x256xi8>
    %169 = vector.shape_cast %168 : vector<1x256x256xi8> to vector<256x256xi8>
    %170 = arith.sitofp %169 : vector<256x256xi8> to vector<256x256xbf16>
    %cst_123 = arith.constant dense<0.000000e+00> : vector<8x256xf32>
    %171 = tpu.matmul %167, %170, %cst_123 {dimension_numbers = #tpu.dot_dimension_numbers<[1], [0], [0], [1], [0, 0, 1, 1], [], []>} : vector<8x256xbf16>, vector<256x256xbf16>, vector<8x256xf32> -> vector<8x256xf32>
    %172 = arith.addf %118, %171 : vector<8x256xf32>
    %c1_i32_124 = arith.constant 1 : i32
    %c1_i32_125 = arith.constant 1 : i32
    %c1_i32_126 = arith.constant 1 : i32
    %c0_i32_127 = arith.constant 0 : i32
    %c0_i32_128 = arith.constant 0 : i32
    %173 = tpu.memref_slice %arg9[%c1_i32_124, %c0_i32_127, %c0_i32_128] : memref<4x512x256xi8, #tpu.memory_space<any>> -> memref<1x512x256xi8, #tpu.memory_space<any>>
    %174 = tpu.memref_squeeze %173 : memref<1x512x256xi8, #tpu.memory_space<any>> -> memref<512x256xi8, #tpu.memory_space<any>>
    %c0_i32_129 = arith.constant 0 : i32
    %c0_i32_130 = arith.constant 0 : i32
    %175 = tpu.memref_slice %arg19[%c1_i32_125, %c0_i32_129, %c0_i32_130] : memref<4x512x256xi8, #tpu.memory_space<vmem>> -> memref<1x512x256xi8, #tpu.memory_space<vmem>>
    %176 = tpu.memref_squeeze %175 : memref<1x512x256xi8, #tpu.memory_space<vmem>> -> memref<512x256xi8, #tpu.memory_space<vmem>>
    %177 = tpu.memref_slice %arg22[%c1_i32_126] : memref<4x!tpu.dma_semaphore, #tpu.memory_space<semaphore_mem>> -> memref<1x!tpu.dma_semaphore, #tpu.memory_space<semaphore_mem>>
    %178 = tpu.memref_squeeze %177 : memref<1x!tpu.dma_semaphore, #tpu.memory_space<semaphore_mem>> -> memref<!tpu.dma_semaphore, #tpu.memory_space<semaphore_mem>>
    tpu.wait_dma2 semaphore(%178 : memref<!tpu.dma_semaphore, #tpu.memory_space<semaphore_mem>>) src(%174 : memref<512x256xi8, #tpu.memory_space<any>>) dst(%176 : memref<512x256xi8, #tpu.memory_space<vmem>>)
    %c1 = arith.constant 1 : index
    %c0_131 = arith.constant 0 : index
    %c0_132 = arith.constant 0 : index
    %179 = vector.load %arg19[%c1, %c0_131, %c0_132] : memref<4x512x256xi8, #tpu.memory_space<vmem>>, vector<1x512x256xi8>
    %180 = vector.shape_cast %179 : vector<1x512x256xi8> to vector<512x256xi8>
    %181 = arith.sitofp %180 : vector<512x256xi8> to vector<512x256xbf16>
    %cst_133 = arith.constant dense<0.000000e+00> : vector<8x256xf32>
    %182 = tpu.matmul %117, %181, %cst_133 {dimension_numbers = #tpu.dot_dimension_numbers<[1], [0], [0], [1], [0, 0, 1, 1], [], []>} : vector<8x512xbf16>, vector<512x256xbf16>, vector<8x256xf32> -> vector<8x256xf32>
    %c0_134 = arith.constant 0 : index
    %c256 = arith.constant 256 : index
    %183 = vector.load %arg10[%c0_134, %c256] : memref<1x1024xf32, #tpu.memory_space<vmem>>, vector<1x256xf32>
    %184 = vector.broadcast %183 : vector<1x256xf32> to vector<8x256xf32>
    %185 = arith.mulf %182, %184 : vector<8x256xf32>
    %c0_135 = arith.constant 0 : index
    %c256_136 = arith.constant 256 : index
    %186 = vector.load %arg11[%c0_135, %c256_136] : memref<1x1024xf32, #tpu.memory_space<vmem>>, vector<1x256xf32>
    %187 = vector.broadcast %186 : vector<1x256xf32> to vector<8x256xf32>
    %188 = arith.addf %185, %187 : vector<8x256xf32>
    %cst_137 = arith.constant 0.000000e+00 : f32
    %189 = vector.broadcast %cst_137 : f32 to vector<8x256xf32>
    %190 = arith.cmpf ogt, %188, %189 : vector<8x256xf32>
    %cst_138 = arith.constant 2.000000e-01 : f32
    %191 = vector.broadcast %cst_138 : f32 to vector<8x256xf32>
    %192 = arith.mulf %191, %188 : vector<8x256xf32>
    %193 = arith.select %190, %188, %192 : vector<8x256xi1>, vector<8x256xf32>
    %c0_139 = arith.constant 0 : index
    %c256_140 = arith.constant 256 : index
    %194 = vector.load %arg12[%c0_139, %c256_140] : memref<1x1024xf32, #tpu.memory_space<vmem>>, vector<1x256xf32>
    %c0_141 = arith.constant 0 : index
    %c256_142 = arith.constant 256 : index
    %195 = vector.load %arg13[%c0_141, %c256_142] : memref<1x1024xf32, #tpu.memory_space<vmem>>, vector<1x256xf32>
    %cst_143 = arith.constant dense<0.000000e+00> : vector<256xf32>
    %196 = vector.multi_reduction <add>, %193, %cst_143 [0] : vector<8x256xf32> to vector<256xf32>
    %197 = vector.shape_cast %196 : vector<256xf32> to vector<1x256xf32>
    %cst_144 = arith.constant 8.000000e+00 : f32
    %198 = vector.broadcast %cst_144 : f32 to vector<1x256xf32>
    %199 = arith.divf %197, %198 : vector<1x256xf32>
    %200 = vector.broadcast %199 : vector<1x256xf32> to vector<8x256xf32>
    %201 = arith.subf %193, %200 : vector<8x256xf32>
    %202 = arith.mulf %201, %201 : vector<8x256xf32>
    %cst_145 = arith.constant dense<0.000000e+00> : vector<256xf32>
    %203 = vector.multi_reduction <add>, %202, %cst_145 [0] : vector<8x256xf32> to vector<256xf32>
    %204 = vector.shape_cast %203 : vector<256xf32> to vector<1x256xf32>
    %cst_146 = arith.constant 8.000000e+00 : f32
    %205 = vector.broadcast %cst_146 : f32 to vector<1x256xf32>
    %206 = arith.divf %204, %205 : vector<1x256xf32>
    %cst_147 = arith.constant 9.99999974E-6 : f32
    %207 = vector.broadcast %cst_147 : f32 to vector<1x256xf32>
    %208 = arith.addf %206, %207 : vector<1x256xf32>
    %209 = math.rsqrt %208 : vector<1x256xf32>
    %210 = arith.mulf %209, %194 : vector<1x256xf32>
    %211 = vector.broadcast %210 : vector<1x256xf32> to vector<8x256xf32>
    %212 = arith.mulf %201, %211 : vector<8x256xf32>
    %213 = vector.broadcast %195 : vector<1x256xf32> to vector<8x256xf32>
    %214 = arith.addf %212, %213 : vector<8x256xf32>
    %c1_i32_148 = arith.constant 1 : i32
    %c1_i32_149 = arith.constant 1 : i32
    %c1_i32_150 = arith.constant 1 : i32
    %c0_i32_151 = arith.constant 0 : i32
    %c0_i32_152 = arith.constant 0 : i32
    %215 = tpu.memref_slice %arg14[%c1_i32_148, %c0_i32_151, %c0_i32_152] : memref<4x256x256xi8, #tpu.memory_space<any>> -> memref<1x256x256xi8, #tpu.memory_space<any>>
    %216 = tpu.memref_squeeze %215 : memref<1x256x256xi8, #tpu.memory_space<any>> -> memref<256x256xi8, #tpu.memory_space<any>>
    %c0_i32_153 = arith.constant 0 : i32
    %c0_i32_154 = arith.constant 0 : i32
    %217 = tpu.memref_slice %arg20[%c1_i32_149, %c0_i32_153, %c0_i32_154] : memref<4x256x256xi8, #tpu.memory_space<vmem>> -> memref<1x256x256xi8, #tpu.memory_space<vmem>>
    %218 = tpu.memref_squeeze %217 : memref<1x256x256xi8, #tpu.memory_space<vmem>> -> memref<256x256xi8, #tpu.memory_space<vmem>>
    %219 = tpu.memref_slice %arg23[%c1_i32_150] : memref<4x!tpu.dma_semaphore, #tpu.memory_space<semaphore_mem>> -> memref<1x!tpu.dma_semaphore, #tpu.memory_space<semaphore_mem>>
    %220 = tpu.memref_squeeze %219 : memref<1x!tpu.dma_semaphore, #tpu.memory_space<semaphore_mem>> -> memref<!tpu.dma_semaphore, #tpu.memory_space<semaphore_mem>>
    tpu.wait_dma2 semaphore(%220 : memref<!tpu.dma_semaphore, #tpu.memory_space<semaphore_mem>>) src(%216 : memref<256x256xi8, #tpu.memory_space<any>>) dst(%218 : memref<256x256xi8, #tpu.memory_space<vmem>>)
    %221 = arith.truncf %214 : vector<8x256xf32> to vector<8x256xbf16>
    %c1_155 = arith.constant 1 : index
    %c0_156 = arith.constant 0 : index
    %c0_157 = arith.constant 0 : index
    %222 = vector.load %arg20[%c1_155, %c0_156, %c0_157] : memref<4x256x256xi8, #tpu.memory_space<vmem>>, vector<1x256x256xi8>
    %223 = vector.shape_cast %222 : vector<1x256x256xi8> to vector<256x256xi8>
    %224 = arith.sitofp %223 : vector<256x256xi8> to vector<256x256xbf16>
    %cst_158 = arith.constant dense<0.000000e+00> : vector<8x256xf32>
    %225 = tpu.matmul %221, %224, %cst_158 {dimension_numbers = #tpu.dot_dimension_numbers<[1], [0], [0], [1], [0, 0, 1, 1], [], []>} : vector<8x256xbf16>, vector<256x256xbf16>, vector<8x256xf32> -> vector<8x256xf32>
    %226 = arith.addf %172, %225 : vector<8x256xf32>
    %c2_i32_159 = arith.constant 2 : i32
    %c2_i32_160 = arith.constant 2 : i32
    %c2_i32_161 = arith.constant 2 : i32
    %c0_i32_162 = arith.constant 0 : i32
    %c0_i32_163 = arith.constant 0 : i32
    %227 = tpu.memref_slice %arg9[%c2_i32_159, %c0_i32_162, %c0_i32_163] : memref<4x512x256xi8, #tpu.memory_space<any>> -> memref<1x512x256xi8, #tpu.memory_space<any>>
    %228 = tpu.memref_squeeze %227 : memref<1x512x256xi8, #tpu.memory_space<any>> -> memref<512x256xi8, #tpu.memory_space<any>>
    %c0_i32_164 = arith.constant 0 : i32
    %c0_i32_165 = arith.constant 0 : i32
    %229 = tpu.memref_slice %arg19[%c2_i32_160, %c0_i32_164, %c0_i32_165] : memref<4x512x256xi8, #tpu.memory_space<vmem>> -> memref<1x512x256xi8, #tpu.memory_space<vmem>>
    %230 = tpu.memref_squeeze %229 : memref<1x512x256xi8, #tpu.memory_space<vmem>> -> memref<512x256xi8, #tpu.memory_space<vmem>>
    %231 = tpu.memref_slice %arg22[%c2_i32_161] : memref<4x!tpu.dma_semaphore, #tpu.memory_space<semaphore_mem>> -> memref<1x!tpu.dma_semaphore, #tpu.memory_space<semaphore_mem>>
    %232 = tpu.memref_squeeze %231 : memref<1x!tpu.dma_semaphore, #tpu.memory_space<semaphore_mem>> -> memref<!tpu.dma_semaphore, #tpu.memory_space<semaphore_mem>>
    tpu.wait_dma2 semaphore(%232 : memref<!tpu.dma_semaphore, #tpu.memory_space<semaphore_mem>>) src(%228 : memref<512x256xi8, #tpu.memory_space<any>>) dst(%230 : memref<512x256xi8, #tpu.memory_space<vmem>>)
    %c2 = arith.constant 2 : index
    %c0_166 = arith.constant 0 : index
    %c0_167 = arith.constant 0 : index
    %233 = vector.load %arg19[%c2, %c0_166, %c0_167] : memref<4x512x256xi8, #tpu.memory_space<vmem>>, vector<1x512x256xi8>
    %234 = vector.shape_cast %233 : vector<1x512x256xi8> to vector<512x256xi8>
    %235 = arith.sitofp %234 : vector<512x256xi8> to vector<512x256xbf16>
    %cst_168 = arith.constant dense<0.000000e+00> : vector<8x256xf32>
    %236 = tpu.matmul %117, %235, %cst_168 {dimension_numbers = #tpu.dot_dimension_numbers<[1], [0], [0], [1], [0, 0, 1, 1], [], []>} : vector<8x512xbf16>, vector<512x256xbf16>, vector<8x256xf32> -> vector<8x256xf32>
    %c0_169 = arith.constant 0 : index
    %c512 = arith.constant 512 : index
    %237 = vector.load %arg10[%c0_169, %c512] : memref<1x1024xf32, #tpu.memory_space<vmem>>, vector<1x256xf32>
    %238 = vector.broadcast %237 : vector<1x256xf32> to vector<8x256xf32>
    %239 = arith.mulf %236, %238 : vector<8x256xf32>
    %c0_170 = arith.constant 0 : index
    %c512_171 = arith.constant 512 : index
    %240 = vector.load %arg11[%c0_170, %c512_171] : memref<1x1024xf32, #tpu.memory_space<vmem>>, vector<1x256xf32>
    %241 = vector.broadcast %240 : vector<1x256xf32> to vector<8x256xf32>
    %242 = arith.addf %239, %241 : vector<8x256xf32>
    %cst_172 = arith.constant 0.000000e+00 : f32
    %243 = vector.broadcast %cst_172 : f32 to vector<8x256xf32>
    %244 = arith.cmpf ogt, %242, %243 : vector<8x256xf32>
    %cst_173 = arith.constant 2.000000e-01 : f32
    %245 = vector.broadcast %cst_173 : f32 to vector<8x256xf32>
    %246 = arith.mulf %245, %242 : vector<8x256xf32>
    %247 = arith.select %244, %242, %246 : vector<8x256xi1>, vector<8x256xf32>
    %c0_174 = arith.constant 0 : index
    %c512_175 = arith.constant 512 : index
    %248 = vector.load %arg12[%c0_174, %c512_175] : memref<1x1024xf32, #tpu.memory_space<vmem>>, vector<1x256xf32>
    %c0_176 = arith.constant 0 : index
    %c512_177 = arith.constant 512 : index
    %249 = vector.load %arg13[%c0_176, %c512_177] : memref<1x1024xf32, #tpu.memory_space<vmem>>, vector<1x256xf32>
    %cst_178 = arith.constant dense<0.000000e+00> : vector<256xf32>
    %250 = vector.multi_reduction <add>, %247, %cst_178 [0] : vector<8x256xf32> to vector<256xf32>
    %251 = vector.shape_cast %250 : vector<256xf32> to vector<1x256xf32>
    %cst_179 = arith.constant 8.000000e+00 : f32
    %252 = vector.broadcast %cst_179 : f32 to vector<1x256xf32>
    %253 = arith.divf %251, %252 : vector<1x256xf32>
    %254 = vector.broadcast %253 : vector<1x256xf32> to vector<8x256xf32>
    %255 = arith.subf %247, %254 : vector<8x256xf32>
    %256 = arith.mulf %255, %255 : vector<8x256xf32>
    %cst_180 = arith.constant dense<0.000000e+00> : vector<256xf32>
    %257 = vector.multi_reduction <add>, %256, %cst_180 [0] : vector<8x256xf32> to vector<256xf32>
    %258 = vector.shape_cast %257 : vector<256xf32> to vector<1x256xf32>
    %cst_181 = arith.constant 8.000000e+00 : f32
    %259 = vector.broadcast %cst_181 : f32 to vector<1x256xf32>
    %260 = arith.divf %258, %259 : vector<1x256xf32>
    %cst_182 = arith.constant 9.99999974E-6 : f32
    %261 = vector.broadcast %cst_182 : f32 to vector<1x256xf32>
    %262 = arith.addf %260, %261 : vector<1x256xf32>
    %263 = math.rsqrt %262 : vector<1x256xf32>
    %264 = arith.mulf %263, %248 : vector<1x256xf32>
    %265 = vector.broadcast %264 : vector<1x256xf32> to vector<8x256xf32>
    %266 = arith.mulf %255, %265 : vector<8x256xf32>
    %267 = vector.broadcast %249 : vector<1x256xf32> to vector<8x256xf32>
    %268 = arith.addf %266, %267 : vector<8x256xf32>
    %c2_i32_183 = arith.constant 2 : i32
    %c2_i32_184 = arith.constant 2 : i32
    %c2_i32_185 = arith.constant 2 : i32
    %c0_i32_186 = arith.constant 0 : i32
    %c0_i32_187 = arith.constant 0 : i32
    %269 = tpu.memref_slice %arg14[%c2_i32_183, %c0_i32_186, %c0_i32_187] : memref<4x256x256xi8, #tpu.memory_space<any>> -> memref<1x256x256xi8, #tpu.memory_space<any>>
    %270 = tpu.memref_squeeze %269 : memref<1x256x256xi8, #tpu.memory_space<any>> -> memref<256x256xi8, #tpu.memory_space<any>>
    %c0_i32_188 = arith.constant 0 : i32
    %c0_i32_189 = arith.constant 0 : i32
    %271 = tpu.memref_slice %arg20[%c2_i32_184, %c0_i32_188, %c0_i32_189] : memref<4x256x256xi8, #tpu.memory_space<vmem>> -> memref<1x256x256xi8, #tpu.memory_space<vmem>>
    %272 = tpu.memref_squeeze %271 : memref<1x256x256xi8, #tpu.memory_space<vmem>> -> memref<256x256xi8, #tpu.memory_space<vmem>>
    %273 = tpu.memref_slice %arg23[%c2_i32_185] : memref<4x!tpu.dma_semaphore, #tpu.memory_space<semaphore_mem>> -> memref<1x!tpu.dma_semaphore, #tpu.memory_space<semaphore_mem>>
    %274 = tpu.memref_squeeze %273 : memref<1x!tpu.dma_semaphore, #tpu.memory_space<semaphore_mem>> -> memref<!tpu.dma_semaphore, #tpu.memory_space<semaphore_mem>>
    tpu.wait_dma2 semaphore(%274 : memref<!tpu.dma_semaphore, #tpu.memory_space<semaphore_mem>>) src(%270 : memref<256x256xi8, #tpu.memory_space<any>>) dst(%272 : memref<256x256xi8, #tpu.memory_space<vmem>>)
    %275 = arith.truncf %268 : vector<8x256xf32> to vector<8x256xbf16>
    %c2_190 = arith.constant 2 : index
    %c0_191 = arith.constant 0 : index
    %c0_192 = arith.constant 0 : index
    %276 = vector.load %arg20[%c2_190, %c0_191, %c0_192] : memref<4x256x256xi8, #tpu.memory_space<vmem>>, vector<1x256x256xi8>
    %277 = vector.shape_cast %276 : vector<1x256x256xi8> to vector<256x256xi8>
    %278 = arith.sitofp %277 : vector<256x256xi8> to vector<256x256xbf16>
    %cst_193 = arith.constant dense<0.000000e+00> : vector<8x256xf32>
    %279 = tpu.matmul %275, %278, %cst_193 {dimension_numbers = #tpu.dot_dimension_numbers<[1], [0], [0], [1], [0, 0, 1, 1], [], []>} : vector<8x256xbf16>, vector<256x256xbf16>, vector<8x256xf32> -> vector<8x256xf32>
    %280 = arith.addf %226, %279 : vector<8x256xf32>
    %c3_i32_194 = arith.constant 3 : i32
    %c3_i32_195 = arith.constant 3 : i32
    %c3_i32_196 = arith.constant 3 : i32
    %c0_i32_197 = arith.constant 0 : i32
    %c0_i32_198 = arith.constant 0 : i32
    %281 = tpu.memref_slice %arg9[%c3_i32_194, %c0_i32_197, %c0_i32_198] : memref<4x512x256xi8, #tpu.memory_space<any>> -> memref<1x512x256xi8, #tpu.memory_space<any>>
    %282 = tpu.memref_squeeze %281 : memref<1x512x256xi8, #tpu.memory_space<any>> -> memref<512x256xi8, #tpu.memory_space<any>>
    %c0_i32_199 = arith.constant 0 : i32
    %c0_i32_200 = arith.constant 0 : i32
    %283 = tpu.memref_slice %arg19[%c3_i32_195, %c0_i32_199, %c0_i32_200] : memref<4x512x256xi8, #tpu.memory_space<vmem>> -> memref<1x512x256xi8, #tpu.memory_space<vmem>>
    %284 = tpu.memref_squeeze %283 : memref<1x512x256xi8, #tpu.memory_space<vmem>> -> memref<512x256xi8, #tpu.memory_space<vmem>>
    %285 = tpu.memref_slice %arg22[%c3_i32_196] : memref<4x!tpu.dma_semaphore, #tpu.memory_space<semaphore_mem>> -> memref<1x!tpu.dma_semaphore, #tpu.memory_space<semaphore_mem>>
    %286 = tpu.memref_squeeze %285 : memref<1x!tpu.dma_semaphore, #tpu.memory_space<semaphore_mem>> -> memref<!tpu.dma_semaphore, #tpu.memory_space<semaphore_mem>>
    tpu.wait_dma2 semaphore(%286 : memref<!tpu.dma_semaphore, #tpu.memory_space<semaphore_mem>>) src(%282 : memref<512x256xi8, #tpu.memory_space<any>>) dst(%284 : memref<512x256xi8, #tpu.memory_space<vmem>>)
    %c3 = arith.constant 3 : index
    %c0_201 = arith.constant 0 : index
    %c0_202 = arith.constant 0 : index
    %287 = vector.load %arg19[%c3, %c0_201, %c0_202] : memref<4x512x256xi8, #tpu.memory_space<vmem>>, vector<1x512x256xi8>
    %288 = vector.shape_cast %287 : vector<1x512x256xi8> to vector<512x256xi8>
    %289 = arith.sitofp %288 : vector<512x256xi8> to vector<512x256xbf16>
    %cst_203 = arith.constant dense<0.000000e+00> : vector<8x256xf32>
    %290 = tpu.matmul %117, %289, %cst_203 {dimension_numbers = #tpu.dot_dimension_numbers<[1], [0], [0], [1], [0, 0, 1, 1], [], []>} : vector<8x512xbf16>, vector<512x256xbf16>, vector<8x256xf32> -> vector<8x256xf32>
    %c0_204 = arith.constant 0 : index
    %c768 = arith.constant 768 : index
    %291 = vector.load %arg10[%c0_204, %c768] : memref<1x1024xf32, #tpu.memory_space<vmem>>, vector<1x256xf32>
    %292 = vector.broadcast %291 : vector<1x256xf32> to vector<8x256xf32>
    %293 = arith.mulf %290, %292 : vector<8x256xf32>
    %c0_205 = arith.constant 0 : index
    %c768_206 = arith.constant 768 : index
    %294 = vector.load %arg11[%c0_205, %c768_206] : memref<1x1024xf32, #tpu.memory_space<vmem>>, vector<1x256xf32>
    %295 = vector.broadcast %294 : vector<1x256xf32> to vector<8x256xf32>
    %296 = arith.addf %293, %295 : vector<8x256xf32>
    %cst_207 = arith.constant 0.000000e+00 : f32
    %297 = vector.broadcast %cst_207 : f32 to vector<8x256xf32>
    %298 = arith.cmpf ogt, %296, %297 : vector<8x256xf32>
    %cst_208 = arith.constant 2.000000e-01 : f32
    %299 = vector.broadcast %cst_208 : f32 to vector<8x256xf32>
    %300 = arith.mulf %299, %296 : vector<8x256xf32>
    %301 = arith.select %298, %296, %300 : vector<8x256xi1>, vector<8x256xf32>
    %c0_209 = arith.constant 0 : index
    %c768_210 = arith.constant 768 : index
    %302 = vector.load %arg12[%c0_209, %c768_210] : memref<1x1024xf32, #tpu.memory_space<vmem>>, vector<1x256xf32>
    %c0_211 = arith.constant 0 : index
    %c768_212 = arith.constant 768 : index
    %303 = vector.load %arg13[%c0_211, %c768_212] : memref<1x1024xf32, #tpu.memory_space<vmem>>, vector<1x256xf32>
    %cst_213 = arith.constant dense<0.000000e+00> : vector<256xf32>
    %304 = vector.multi_reduction <add>, %301, %cst_213 [0] : vector<8x256xf32> to vector<256xf32>
    %305 = vector.shape_cast %304 : vector<256xf32> to vector<1x256xf32>
    %cst_214 = arith.constant 8.000000e+00 : f32
    %306 = vector.broadcast %cst_214 : f32 to vector<1x256xf32>
    %307 = arith.divf %305, %306 : vector<1x256xf32>
    %308 = vector.broadcast %307 : vector<1x256xf32> to vector<8x256xf32>
    %309 = arith.subf %301, %308 : vector<8x256xf32>
    %310 = arith.mulf %309, %309 : vector<8x256xf32>
    %cst_215 = arith.constant dense<0.000000e+00> : vector<256xf32>
    %311 = vector.multi_reduction <add>, %310, %cst_215 [0] : vector<8x256xf32> to vector<256xf32>
    %312 = vector.shape_cast %311 : vector<256xf32> to vector<1x256xf32>
    %cst_216 = arith.constant 8.000000e+00 : f32
    %313 = vector.broadcast %cst_216 : f32 to vector<1x256xf32>
    %314 = arith.divf %312, %313 : vector<1x256xf32>
    %cst_217 = arith.constant 9.99999974E-6 : f32
    %315 = vector.broadcast %cst_217 : f32 to vector<1x256xf32>
    %316 = arith.addf %314, %315 : vector<1x256xf32>
    %317 = math.rsqrt %316 : vector<1x256xf32>
    %318 = arith.mulf %317, %302 : vector<1x256xf32>
    %319 = vector.broadcast %318 : vector<1x256xf32> to vector<8x256xf32>
    %320 = arith.mulf %309, %319 : vector<8x256xf32>
    %321 = vector.broadcast %303 : vector<1x256xf32> to vector<8x256xf32>
    %322 = arith.addf %320, %321 : vector<8x256xf32>
    %c3_i32_218 = arith.constant 3 : i32
    %c3_i32_219 = arith.constant 3 : i32
    %c3_i32_220 = arith.constant 3 : i32
    %c0_i32_221 = arith.constant 0 : i32
    %c0_i32_222 = arith.constant 0 : i32
    %323 = tpu.memref_slice %arg14[%c3_i32_218, %c0_i32_221, %c0_i32_222] : memref<4x256x256xi8, #tpu.memory_space<any>> -> memref<1x256x256xi8, #tpu.memory_space<any>>
    %324 = tpu.memref_squeeze %323 : memref<1x256x256xi8, #tpu.memory_space<any>> -> memref<256x256xi8, #tpu.memory_space<any>>
    %c0_i32_223 = arith.constant 0 : i32
    %c0_i32_224 = arith.constant 0 : i32
    %325 = tpu.memref_slice %arg20[%c3_i32_219, %c0_i32_223, %c0_i32_224] : memref<4x256x256xi8, #tpu.memory_space<vmem>> -> memref<1x256x256xi8, #tpu.memory_space<vmem>>
    %326 = tpu.memref_squeeze %325 : memref<1x256x256xi8, #tpu.memory_space<vmem>> -> memref<256x256xi8, #tpu.memory_space<vmem>>
    %327 = tpu.memref_slice %arg23[%c3_i32_220] : memref<4x!tpu.dma_semaphore, #tpu.memory_space<semaphore_mem>> -> memref<1x!tpu.dma_semaphore, #tpu.memory_space<semaphore_mem>>
    %328 = tpu.memref_squeeze %327 : memref<1x!tpu.dma_semaphore, #tpu.memory_space<semaphore_mem>> -> memref<!tpu.dma_semaphore, #tpu.memory_space<semaphore_mem>>
    tpu.wait_dma2 semaphore(%328 : memref<!tpu.dma_semaphore, #tpu.memory_space<semaphore_mem>>) src(%324 : memref<256x256xi8, #tpu.memory_space<any>>) dst(%326 : memref<256x256xi8, #tpu.memory_space<vmem>>)
    %329 = arith.truncf %322 : vector<8x256xf32> to vector<8x256xbf16>
    %c3_225 = arith.constant 3 : index
    %c0_226 = arith.constant 0 : index
    %c0_227 = arith.constant 0 : index
    %330 = vector.load %arg20[%c3_225, %c0_226, %c0_227] : memref<4x256x256xi8, #tpu.memory_space<vmem>>, vector<1x256x256xi8>
    %331 = vector.shape_cast %330 : vector<1x256x256xi8> to vector<256x256xi8>
    %332 = arith.sitofp %331 : vector<256x256xi8> to vector<256x256xbf16>
    %cst_228 = arith.constant dense<0.000000e+00> : vector<8x256xf32>
    %333 = tpu.matmul %329, %332, %cst_228 {dimension_numbers = #tpu.dot_dimension_numbers<[1], [0], [0], [1], [0, 0, 1, 1], [], []>} : vector<8x256xbf16>, vector<256x256xbf16>, vector<8x256xf32> -> vector<8x256xf32>
    %334 = arith.addf %280, %333 : vector<8x256xf32>
    %c0_229 = arith.constant 0 : index
    %c0_230 = arith.constant 0 : index
    %335 = vector.load %arg15[%c0_229, %c0_230] : memref<1x256xf32, #tpu.memory_space<vmem>>, vector<1x256xf32>
    %336 = vector.broadcast %335 : vector<1x256xf32> to vector<8x256xf32>
    %337 = arith.mulf %334, %336 : vector<8x256xf32>
    %c0_231 = arith.constant 0 : index
    %c0_232 = arith.constant 0 : index
    %338 = vector.load %arg16[%c0_231, %c0_232] : memref<1x256xf32, #tpu.memory_space<vmem>>, vector<1x256xf32>
    %339 = vector.broadcast %338 : vector<1x256xf32> to vector<8x256xf32>
    %340 = arith.addf %337, %339 : vector<8x256xf32>
    %341 = math.tanh %340 : vector<8x256xf32>
    %c0_233 = arith.constant 0 : index
    %c0_234 = arith.constant 0 : index
    %342 = vector.load %arg17[%c0_233, %c0_234] : memref<8x256xf32, #tpu.memory_space<vmem>>, vector<8x256xf32>
    tpu.vector_store %arg17[%c0_233, %c0_234], %341 {strides = array<i32>} : memref<8x256xf32, #tpu.memory_space<vmem>>, vector<8x256xf32>,
    return
  }
}

</mosaic_0001>

<bundles_post_ra>
// kernel: tpu_custom_call.1
= control target key start
LH: loop header
LB: loop body
LE: loop exit
PB: predicated region body
PF: predicated region fallthrough
CT: control target
= control target key end

     0   :  { %s4064_s0 = inlined_call_operand.hbm [shape: f32[8,128], index: 0, kind: input, shape index: {}]   ;;  %s4065_s1 = inlined_call_operand.hbm [shape: bf16[128,256], index: 1, kind: input, shape index: {}]   ;;  %s4066_s2 = inlined_call_operand.hbm [shape: f32[1,256], index: 2, kind: input, shape index: {}]   ;;  %s4067_s3 = inlined_call_operand.hbm [shape: f32[1,256], index: 3, kind: input, shape index: {}]   ;;  %s4068_s4 = inlined_call_operand.hbm [shape: f32[1,256], index: 4, kind: input, shape index: {}]   ;;  %s4069_s5 = inlined_call_operand.hbm [shape: bf16[256,512], index: 5, kind: input, shape index: {}]   ;;  %s4070_s6 = inlined_call_operand.hbm [shape: f32[1,512], index: 6, kind: input, shape index: {}]   ;;  %s4071_s7 = inlined_call_operand.hbm [shape: f32[1,512], index: 7, kind: input, shape index: {}]   ;;  %s4072_s8 = inlined_call_operand.hbm [shape: f32[1,512], index: 8, kind: input, shape index: {}]   ;;  %s4073_s9 = inlined_call_operand.hbm [shape: s8[4,512,256], index: 9, kind: input, shape index: {}]   ;;  %s4074_s10 = inlined_call_operand.vmem [shape: f32[1,1024], index: 10, kind: input, shape index: {}]   ;;  %s4075_s11 = inlined_call_operand.vmem [shape: f32[1,1024], index: 11, kind: input, shape index: {}]   ;;  %s4076_s12 = inlined_call_operand.hbm [shape: f32[1,1024], index: 12, kind: input, shape index: {}]   ;;  %s4077_s13 = inlined_call_operand.hbm [shape: f32[1,1024], index: 13, kind: input, shape index: {}]   ;;  %s4078_s14 = inlined_call_operand.hbm [shape: s8[4,256,256], index: 14, kind: input, shape index: {}]   ;;  %s4079_s15 = inlined_call_operand.vmem [shape: f32[1,256], index: 15, kind: input, shape index: {}]   ;;  %s4080_s16 = inlined_call_operand.vmem [shape: f32[1,256], index: 16, kind: input, shape index: {}]   ;;  %s4081_s17 = inlined_call_operand.hbm [shape: f32[8,256], index: 17, kind: output, shape index: {}]  }
   0x1   :  { %4082 = sst [smem:[#allocation62_spill]] %s4064_s0 }
   0x2   :  { %4083 = sst [smem:[#allocation63_spill]] %s4065_s1 }
   0x3   :  { %22 = vsyncpa [#allocation9], 0 }
   0x4   :  { %23 = vsyncpa [#allocation12], 0 }
   0x5   :  { %24 = vsyncpa [#allocation15], 0 }
   0x6   :  { %25 = vsyncpa [#allocation18], 0 }
   0x7   :  { %26 = vsyncpa [#allocation21], 0 }
   0x8   :  { %27 = vsyncpa [#allocation24], 0 }
   0x9   :  { %28 = vsyncpa [#allocation10], 0  ;;  %s3531_s24 = smov [#allocation11]  }
   0xa   :  { %s44_s25 = sshll.u32 %s3531_s24, 4  ;;  %s45_s25 = int_to_ptr.vmem [resolvable:$true] %s44_s25 }
   0xb   :  { %s3089_s26 = scalar_lea.vmem %s45_s25, 2048  ;;  %p3094_p1 = scmp.lt.s32.totalorder %s45_s25, %s45_s25 }
   0xc   :  { %p3090_p0 = scmp.ne.s32.totalorder %s45_s25, %s3089_s26  ;;  %p3095_p2 = scmp.lt.s32.totalorder %s3089_s26, %s3089_s26 }
   0xe   :  { %p3096_p3 = por %p3095_p2, %p3094_p1 }
  0x10   :  { %p3097_p4 = pnand %p3096_p3, %p3090_p0 }
  0x12   :  { %3100 = shalt.err (!%p3097_p4)
}
  0x13   :  { %s3532_s27 = smov 128   ;;  %s3533_s28 = smov 8  }
  0x14   :  { %s4084_s30 = sld [smem:[#allocation63_spill]]  ;;  %s3534_s18 = smov [#allocation14]  }
  0x15   :  { %s67_s19 = sshll.u32 %s3534_s18, 4  ;;  %s3535_s1 = smov [#allocation17]   ;;  %s68_s19 = int_to_ptr.vmem [resolvable:$true] %s67_s19 }
  0x16   :  { %s87_s20 = sshll.u32 %s3535_s1, 4  ;;  %s3109_s21 = scalar_lea.vmem %s68_s19, 32  ;;  %s88_s20 = int_to_ptr.vmem [resolvable:$true] %s87_s20 }
  0x17   :  { %p3110_p5 = scmp.ne.s32.totalorder %s68_s19, %s3109_s21  ;;  %p3114_p6 = scmp.lt.s32.totalorder %s68_s19, %s68_s19 }
  0x18   :  { %p3115_p7 = scmp.lt.s32.totalorder %s3109_s21, %s3109_s21 }
  0x1a   :  { %50 = dma.hbm_to_vmem [thread:$0]  %s4084_s30, 2048, %s45_s25, [#allocation12], %s3532_s27, %s3532_s27, %s3533_s28  }
  0x1b   :  { %p3116_p8 = por %p3115_p7, %p3114_p6 }
  0x1d   :  { %p3117_p9 = pnand %p3116_p8, %p3110_p5 }
  0x1f   :  { %3120 = shalt.err (!%p3117_p9)
}
  0x20   :  { %70 = dma.hbm_to_vmem [thread:$0]  %s4067_s3, 32, %s68_s19, [#allocation15]  }
  0x21   :  { %s3129_s24 = scalar_lea.vmem %s88_s20, 64  ;;  %p3134_p11 = scmp.lt.s32.totalorder %s88_s20, %s88_s20 }
  0x22   :  { %p3130_p10 = scmp.ne.s32.totalorder %s88_s20, %s3129_s24  ;;  %p3135_p12 = scmp.lt.s32.totalorder %s3129_s24, %s3129_s24 }
  0x24   :  { %p3136_p13 = por %p3135_p12, %p3134_p11 }
  0x26   :  { %p3137_p0 = pnand %p3136_p13, %p3130_p10 }
  0x28   :  { %3140 = shalt.err (!%p3137_p0)
}
  0x29   :  { %90 = dma.hbm_to_vmem [thread:$0]  %s4070_s6, 64, %s88_s20, [#allocation18]  }
  0x2a   :  { %s3536_s27 = smov [#allocation20]   ;;  %s3537_s29 = smov [#allocation8]  }
  0x2b   :  { %s107_s28 = sshll.u32 %s3536_s27, 4  ;;  %s35_s0 = sshll.u32 %s3537_s29, 4  ;;  %s108_s28 = int_to_ptr.vmem [resolvable:$true] %s107_s28  ;;  %s36_s0 = int_to_ptr.vmem [resolvable:$true] %s35_s0 }
  0x2c   :  { %s3149_s30 = scalar_lea.vmem %s108_s28, 64  ;;  %p3154_p2 = scmp.lt.s32.totalorder %s108_s28, %s108_s28 }
  0x2d   :  { %p3150_p1 = scmp.ne.s32.totalorder %s108_s28, %s3149_s30  ;;  %p3155_p3 = scmp.lt.s32.totalorder %s3149_s30, %s3149_s30 }
  0x2f   :  { %p3156_p4 = por %p3155_p3, %p3154_p2 }
  0x31   :  { %p3157_p5 = pnand %p3156_p4, %p3150_p1 }
  0x33   :  { %3160 = shalt.err (!%p3157_p5)
}
  0x34   :  { %110 = dma.hbm_to_vmem [thread:$0]  %s4072_s8, 64, %s108_s28, [#allocation21]  }
  0x35   :  { %s3169_s19 = scalar_lea.vmem %s36_s0, 128  ;;  %p3174_p7 = scmp.lt.s32.totalorder %s36_s0, %s36_s0 }
  0x36   :  { %p3170_p6 = scmp.ne.s32.totalorder %s36_s0, %s3169_s19  ;;  %p3175_p8 = scmp.lt.s32.totalorder %s3169_s19, %s3169_s19 }
  0x38   :  { %p3176_p9 = por %p3175_p8, %p3174_p7 }
  0x3a   :  { %p3177_p10 = pnand %p3176_p9, %p3170_p6 }
  0x3c   :  { %3180 = shalt.err (!%p3177_p10)
}
  0x3d   :  { %s4085_s20 = sld [smem:[#allocation62_spill]]  ;;  %s3538_s21 = smov [#allocation13]  }
  0x3e   :  { %s57_s22 = sshll.u32 %s3538_s21, 4  ;;  %s3539_s23 = smov [#allocation16]   ;;  %s58_s22 = int_to_ptr.vmem [resolvable:$true] %s57_s22 }
  0x3f   :  { %s77_s24 = sshll.u32 %s3539_s23, 4  ;;  %s3189_s25 = scalar_lea.vmem %s58_s22, 32  ;;  %s78_s24 = int_to_ptr.vmem [resolvable:$true] %s77_s24 }
  0x40   :  { %p3190_p11 = scmp.ne.s32.totalorder %s58_s22, %s3189_s25  ;;  %p3194_p12 = scmp.lt.s32.totalorder %s58_s22, %s58_s22 }
  0x41   :  { %p3195_p13 = scmp.lt.s32.totalorder %s3189_s25, %s3189_s25 }
  0x43   :  { %38 = dma.hbm_to_vmem [thread:$0]  %s4085_s20, 128, %s36_s0, [#allocation9]  }
  0x44   :  { %p3196_p0 = por %p3195_p13, %p3194_p12 }
  0x46   :  { %p3197_p1 = pnand %p3196_p0, %p3190_p11 }
  0x48   :  { %3200 = shalt.err (!%p3197_p1)
}
  0x49   :  { %60 = dma.hbm_to_vmem [thread:$0]  %s4066_s2, 32, %s58_s22, [#allocation12]  }
  0x4a   :  { %s3209_s27 = scalar_lea.vmem %s78_s24, 32  ;;  %p3214_p3 = scmp.lt.s32.totalorder %s78_s24, %s78_s24 }
  0x4b   :  { %p3210_p2 = scmp.ne.s32.totalorder %s78_s24, %s3209_s27  ;;  %p3215_p4 = scmp.lt.s32.totalorder %s3209_s27, %s3209_s27 }
  0x4d   :  { %p3216_p5 = por %p3215_p4, %p3214_p3 }
  0x4f   :  { %p3217_p6 = pnand %p3216_p5, %p3210_p2 }
  0x51   :  { %3220 = shalt.err (!%p3217_p6)
}
  0x52   :  { %80 = dma.hbm_to_vmem [thread:$0]  %s4068_s4, 32, %s78_s24, [#allocation15]  }
  0x53   :  { %s3540_s0 = smov [#allocation19]   ;;  %s3541_s3 = smov [#allocation22]  }
  0x54   :  { %s97_s30 = sshll.u32 %s3540_s0, 4  ;;  %s121_s18 = sshll.u32 %s3541_s3, 4  ;;  %s98_s30 = int_to_ptr.vmem [resolvable:$true] %s97_s30  ;;  %s122_s18 = int_to_ptr.vmem [resolvable:$true] %s121_s18 }
  0x55   :  { %s3229_s19 = scalar_lea.vmem %s98_s30, 64  ;;  %p3234_p8 = scmp.lt.s32.totalorder %s98_s30, %s98_s30 }
  0x56   :  { %p3230_p7 = scmp.ne.s32.totalorder %s98_s30, %s3229_s19  ;;  %p3235_p9 = scmp.lt.s32.totalorder %s3229_s19, %s3229_s19 }
  0x58   :  { %p3236_p10 = por %p3235_p9, %p3234_p8 }
  0x5a   :  { %p3237_p11 = pnand %p3236_p10, %p3230_p7 }
  0x5c   :  { %3240 = shalt.err (!%p3237_p11)
}
  0x5d   :  { %100 = dma.hbm_to_vmem [thread:$0]  %s4071_s7, 64, %s98_s30, [#allocation18]  }
  0x5e   :  { %s3249_s1 = scalar_lea.vmem %s122_s18, 128  ;;  %p3254_p13 = scmp.lt.s32.totalorder %s122_s18, %s122_s18 }
  0x5f   :  { %p3250_p12 = scmp.ne.s32.totalorder %s122_s18, %s3249_s1  ;;  %p3255_p0 = scmp.lt.s32.totalorder %s3249_s1, %s3249_s1 }
  0x61   :  { %p3256_p1 = por %p3255_p0, %p3254_p13 }
  0x63   :  { %p3257_p2 = pnand %p3256_p1, %p3250_p12 }
  0x65   :  { %3260 = shalt.err (!%p3257_p2)
}
  0x66   :  { %124 = dma.hbm_to_vmem [thread:$0]  %s4076_s12, 128, %s122_s18, [#allocation21]  }
  0x67   :  { %s3542_s21 = smov [#allocation23]  }
  0x68   :  { %s131_s22 = sshll.u32 %s3542_s21, 4  ;;  %s132_s22 = int_to_ptr.vmem [resolvable:$true] %s131_s22 }
  0x69   :  { %s3269_s23 = scalar_lea.vmem %s132_s22, 128  ;;  %p3274_p4 = scmp.lt.s32.totalorder %s132_s22, %s132_s22 }
  0x6a   :  { %p3270_p3 = scmp.ne.s32.totalorder %s132_s22, %s3269_s23  ;;  %p3275_p5 = scmp.lt.s32.totalorder %s3269_s23, %s3269_s23 }
  0x6c   :  { %p3276_p6 = por %p3275_p5, %p3274_p4 }
  0x6e   :  { %p3277_p7 = pnand %p3276_p6, %p3270_p3 }
  0x70   :  { %3280 = shalt.err (!%p3277_p7)
}
  0x71   :  { %134 = dma.hbm_to_vmem [thread:$0]  %s4077_s13, 128, %s132_s22, [#allocation24]  }
  0x72   :  { %3499 = dma.done.wait [#allocation9], 128  }
  0x73   :  { %3500 = vsyncadd [#allocation9], 4294967168 }
  0x74   :  { %3501 = dma.done.wait [#allocation12], 2080  }
  0x75   :  { %3502 = vsyncadd [#allocation12], 4294965216 }
  0x76   :  { %3503 = dma.done.wait [#allocation15], 64  }
  0x77   :  { %3504 = vsyncadd [#allocation15], 4294967232 }
  0x78   :  { %3505 = dma.done.wait [#allocation18], 128  }
  0x79   :  { %3506 = vsyncadd [#allocation18], 4294967168 }
  0x7a   :  { %3507 = dma.done.wait [#allocation21], 192  }
  0x7b   :  { %3508 = vsyncadd [#allocation21], 4294967104 }
  0x7c   :  { %3509 = dma.done.wait [#allocation24], 128  }
  0x7d   :  { %3510 = vsyncadd [#allocation24], 4294967168  ;;  %v3543_v0 = vmov 0   ;;  %v2929_v1 = vld [vmem:[#allocation11 + $0x74] ss:$8 sps:$4 sm:$0xff]   ;;  %s3544_s12 = smov [#allocation3]  }
  0x7e   :  { %429 = vmatprep.mubr.bf16.mxu0 %v3543_v0  ;;  %v2931_v2 = vld [vmem:[#allocation11 + $0x70] ss:$8 sps:$4 sm:$0xff]   ;;  %397 = vmatprep.subr.bf16.mxu0 %v2929_v1  ;;  %v2932_v3 = vld [vmem:[#allocation11 + $0x64] ss:$8 sps:$4 sm:$0xff]   ;;  %v2934_v4 = vld [vmem:[#allocation11 + $0x60] ss:$8 sps:$4 sm:$0xff]  }
  0x7f   :  { %398 = vmatpush1.bf16.msra.mxu0 %v2931_v2  ;;  %v2935_v5 = vld [vmem:[#allocation11 + $0x54] ss:$8 sps:$4 sm:$0xff]   ;;  %v2937_v6 = vld [vmem:[#allocation11 + $0x50] ss:$8 sps:$4 sm:$0xff]   ;;  %v2938_v7 = vld [vmem:[#allocation11 + $0x44] ss:$8 sps:$4 sm:$0xff]  }
  0x80   :  { %399 = vmatprep.subr.bf16.mxu0 %v2932_v3  ;;  %v2940_v8 = vld [vmem:[#allocation11 + $0x40] ss:$8 sps:$4 sm:$0xff]   ;;  %v2941_v9 = vld [vmem:[#allocation11 + $0x34] ss:$8 sps:$4 sm:$0xff]   ;;  %v2943_v10 = vld [vmem:[#allocation11 + $0x30] ss:$8 sps:$4 sm:$0xff]  }
  0x81   :  { %v2944_v11 = vld [vmem:[#allocation11 + $0x24] ss:$8 sps:$4 sm:$0xff]   ;;  %v2946_v12 = vld [vmem:[#allocation11 + $0x20] ss:$8 sps:$4 sm:$0xff]   ;;  %v2947_v13 = vld [vmem:[#allocation11 + $0x14] ss:$8 sps:$4 sm:$0xff]  }
  0x82   :  { %v2949_v14 = vld [vmem:[#allocation11 + $0x10] ss:$8 sps:$4 sm:$0xff]   ;;  %v2950_v15 = vld [vmem:[#allocation11 + $0x4] ss:$8 sps:$4 sm:$0xff]   ;;  %v2952_v16 = vld [vmem:[#allocation11] ss:$8 sps:$4 sm:$0xff]  }
  0x83   :  { %400 = vmatpush1.bf16.msra.mxu0 %v2934_v4  ;;  %v287_v17 = vld [vmem:[#allocation8] sm:$0xff]  ;;  %s188_s13 = sshll.u32 %s3544_s12, 4  ;;  %s3545_s25 = smov [#allocation4]   ;;  %s3674_s13 = int_to_ptr.vmem [resolvable:$true] %s188_s13 }
  0x84   :  { %401 = vmatprep.subr.bf16.mxu0 %v2935_v5  ;;  %v304_v18 = vpack.c.bf16 %v287_v17, %v287_v17  ;;  %s199_s8 = sshll.u32 %s3545_s25, 4  ;;  %s3289_s26 = scalar_lea.vmem %s3674_s13, 4096  ;;  %s3676_s8 = int_to_ptr.vmem [resolvable:$true] %s199_s8 }
  0x85   :  { %p3290_p8 = scmp.ne.s32.totalorder %s3674_s13, %s3289_s26  ;;  %s3681_s27 = scalar_lea.vmem %s3674_s13, 16384 }
  0x86   :  { %p3294_p9 = scmp.lt.s32.totalorder %s3674_s13, %s3674_s13  ;;  %p3295_p10 = scmp.lt.s32.totalorder %s3681_s27, %s3289_s26 }
  0x87   :  { %402 = vmatpush1.bf16.msra.mxu0 %v2937_v6 }
  0x88   :  { %403 = vmatprep.subr.bf16.mxu0 %v2938_v7  ;;  %p3296_p11 = por %p3295_p10, %p3294_p9 }
  0x8a   :  { %p3297_p12 = pnand %p3296_p11, %p3290_p8 }
  0x8b   :  { %404 = vmatpush1.bf16.msra.mxu0 %v2940_v8 }
  0x8c   :  { %405 = vmatprep.subr.bf16.mxu0 %v2941_v9 }
  0x8f   :  { %406 = vmatpush1.bf16.msra.mxu0 %v2943_v10 }
  0x90   :  { %407 = vmatprep.subr.bf16.mxu0 %v2944_v11 }
  0x93   :  { %408 = vmatpush1.bf16.msra.mxu0 %v2946_v12 }
  0x94   :  { %409 = vmatprep.subr.bf16.mxu0 %v2947_v13 }
  0x97   :  { %410 = vmatpush1.bf16.msra.mxu0 %v2949_v14 }
  0x98   :  { %411 = vmatprep.subr.bf16.mxu0 %v2950_v15 }
  0x9b   :  { %412 = vmatpush1.bf16.msra.mxu0 %v2952_v16 }
  0x9e   :  { %430 = vmatmul.mubr.bf16.vlgmr.msra.gmra.mxu0 %v304_v18 }
  0x9f   :  { %3300 = shalt.err (!%p3297_p12)  }
  0xa0   :  { %191 = dma.hbm_to_vmem [thread:$0]  %s4073_s9, 4096, %s3674_s13, [#allocation6] }
  0xa1   :  { %s3309_s0 = scalar_lea.vmem %s3676_s8, 2048  ;;  %s3693_s30 = scalar_lea.vmem %s3676_s8, 8192 }
  0xa2   :  { %p3310_p13 = scmp.ne.s32.totalorder %s3676_s8, %s3309_s0  ;;  %p3314_p0 = scmp.lt.s32.totalorder %s3676_s8, %s3676_s8 }
  0xa3   :  { %p3315_p1 = scmp.lt.s32.totalorder %s3693_s30, %s3309_s0 }
  0xa5   :  { %p3316_p2 = por %p3315_p1, %p3314_p0 }
  0xa7   :  { %p3317_p3 = pnand %p3316_p2, %p3310_p13 }
  0xa9   :  { %3320 = shalt.err (!%p3317_p3)  }
  0xaa   :  { %202 = dma.hbm_to_vmem [thread:$0]  %s4078_s14, 2048, %s3676_s8, [#allocation7] }
  0xab   :  { %s203_s6 = scalar_lea.hbm %s4073_s9, 4096  ;;  %s3546_s1 = smov [#allocation3 + $0x100]  }
  0xac   :  { %s213_s4 = sshll.u32 %s3546_s1, 4  ;;  %s217_s22 = scalar_lea.hbm %s4078_s14, 2048  ;;  %s214_s4 = int_to_ptr.vmem [resolvable:$true] %s213_s4 }
  0xad   :  { %s3331_s23 = scalar_lea.vmem %s214_s4, 4096  ;;  %p3336_p5 = scmp.lt.s32.totalorder %s214_s4, %s3674_s13 }
  0xae   :  { %p3332_p4 = scmp.ne.s32.totalorder %s214_s4, %s3331_s23  ;;  %p3337_p6 = scmp.lt.s32.totalorder %s3681_s27, %s3331_s23 }
  0xb0   :  { %p3338_p7 = por %p3337_p6, %p3336_p5 }
  0xb2   :  { %p3339_p8 = pnand %p3338_p7, %p3332_p4 }
  0xb4   :  { %3342 = shalt.err (!%p3339_p8)  }
  0xb5   :  { %216 = dma.hbm_to_vmem [thread:$0]  %s203_s6, 4096, %s214_s4, [#allocation6 + $0x1] }
  0xb6   :  { %s3547_s7 = smov [#allocation4 + $0x80]   ;;  %s231_s26 = scalar_lea.hbm %s4073_s9, 8192 }
  0xb7   :  { %s227_s24 = sshll.u32 %s3547_s7, 4  ;;  %s228_s24 = int_to_ptr.vmem [resolvable:$true] %s227_s24 }
  0xb8   :  { %s3354_s28 = scalar_lea.vmem %s228_s24, 2048  ;;  %p3359_p10 = scmp.lt.s32.totalorder %s228_s24, %s3676_s8 }
  0xb9   :  { %p3355_p9 = scmp.ne.s32.totalorder %s228_s24, %s3354_s28  ;;  %p3360_p11 = scmp.lt.s32.totalorder %s3693_s30, %s3354_s28 }
  0xbb   :  { %p3361_p12 = por %p3360_p11, %p3359_p10 }
  0xbd   :  { %p3362_p13 = pnand %p3361_p12, %p3355_p9 }
  0xbf   :  { %3365 = shalt.err (!%p3362_p13)  }
  0xc0   :  { %230 = dma.hbm_to_vmem [thread:$0]  %s217_s22, 2048, %s228_s24, [#allocation7 + $0x1] }
  0xc1   :  { %s3548_s29 = smov [#allocation3 + $0x200]   ;;  %s245_s19 = scalar_lea.hbm %s4078_s14, 4096 }
  0xc2   :  { %s241_s0 = sshll.u32 %s3548_s29, 4  ;;  %s242_s0 = int_to_ptr.vmem [resolvable:$true] %s241_s0 }
  0xc3   :  { %s3377_s2 = scalar_lea.vmem %s242_s0, 4096  ;;  %p3382_p1 = scmp.lt.s32.totalorder %s242_s0, %s3674_s13 }
  0xc4   :  { %p3378_p0 = scmp.ne.s32.totalorder %s242_s0, %s3377_s2  ;;  %p3383_p2 = scmp.lt.s32.totalorder %s3681_s27, %s3377_s2 }
  0xc6   :  { %p3384_p3 = por %p3383_p2, %p3382_p1 }
  0xc8   :  { %p3385_p4 = pnand %p3384_p3, %p3378_p0 }
  0xca   :  { %3388 = shalt.err (!%p3385_p4)  }
  0xcb   :  { %244 = dma.hbm_to_vmem [thread:$0]  %s231_s26, 4096, %s242_s0, [#allocation6 + $0x2] }
  0xcc   :  { %s3549_s6 = smov [#allocation4 + $0x100]   ;;  %s3550_s4 = smov [#allocation2]  }
  0xcd   :  { %s255_s1 = sshll.u32 %s3549_s6, 4  ;;  %s177_s20 = sshll.u32 %s3550_s4, 4  ;;  %s256_s1 = int_to_ptr.vmem [resolvable:$true] %s255_s1  ;;  %s178_s20 = int_to_ptr.vmem [resolvable:$true] %s177_s20 }
  0xce   :  { %s3400_s21 = scalar_lea.vmem %s256_s1, 2048  ;;  %p3405_p6 = scmp.lt.s32.totalorder %s256_s1, %s3676_s8 }
  0xcf   :  { %p3401_p5 = scmp.ne.s32.totalorder %s256_s1, %s3400_s21  ;;  %p3406_p7 = scmp.lt.s32.totalorder %s3693_s30, %s3400_s21 }
  0xd1   :  { %p3407_p8 = por %p3406_p7, %p3405_p6 }
  0xd3   :  { %p3408_p9 = pnand %p3407_p8, %p3401_p5 }
  0xd5   :  { %3411 = shalt.err (!%p3408_p9)  }
  0xd6   :  { %258 = dma.hbm_to_vmem [thread:$0]  %s245_s19, 2048, %s256_s1, [#allocation7 + $0x2] }
  0xd7   :  { %s259_s7 = scalar_lea.hbm %s4073_s9, 12288  ;;  %s3421_s24 = scalar_lea.vmem %s178_s20, 8192 }
  0xd8   :  { %p3422_p10 = scmp.ne.s32.totalorder %s178_s20, %s3421_s24  ;;  %p3426_p11 = scmp.lt.s32.totalorder %s178_s20, %s178_s20 }
  0xd9   :  { %p3427_p12 = scmp.lt.s32.totalorder %s3421_s24, %s3421_s24 }
  0xdb   :  { %p3428_p13 = por %p3427_p12, %p3426_p11 }
  0xdd   :  { %p3429_p0 = pnand %p3428_p13, %p3422_p10 }
  0xdf   :  { %3432 = shalt.err (!%p3429_p0)  }
  0xe0   :  { %180 = dma.hbm_to_vmem [thread:$0]  %s4069_s5, 8192, %s178_s20, [#allocation5] }
  0xe1   :  { %s273_s29 = scalar_lea.hbm %s4078_s14, 6144  ;;  %s3551_s0 = smov [#allocation3 + $0x300]  }
  0xe2   :  { %s269_s3 = sshll.u32 %s3551_s0, 4  ;;  %s3552_s9 = smov [#allocation4 + $0x180]   ;;  %s270_s3 = int_to_ptr.vmem [resolvable:$true] %s269_s3 }
  0xe3   :  { %s283_s18 = sshll.u32 %s3552_s9, 4  ;;  %s3443_s19 = scalar_lea.vmem %s270_s3, 4096  ;;  %s284_s18 = int_to_ptr.vmem [resolvable:$true] %s283_s18 }
  0xe4   :  { %p3444_p1 = scmp.ne.s32.totalorder %s270_s3, %s3443_s19  ;;  %p3448_p2 = scmp.lt.s32.totalorder %s270_s3, %s3674_s13 }
  0xe5   :  { %p3449_p3 = scmp.lt.s32.totalorder %s3681_s27, %s3443_s19 }
  0xe7   :  { %p3450_p4 = por %p3449_p3, %p3448_p2 }
  0xe9   :  { %p3451_p5 = pnand %p3450_p4, %p3444_p1 }
  0xeb   :  { %3454 = shalt.err (!%p3451_p5)  }
  0xec   :  { %272 = dma.hbm_to_vmem [thread:$0]  %s259_s7, 4096, %s270_s3, [#allocation6 + $0x3] }
  0xed   :  { %s3466_s5 = scalar_lea.vmem %s284_s18, 2048  ;;  %p3471_p7 = scmp.lt.s32.totalorder %s284_s18, %s3676_s8 }
  0xee   :  { %p3467_p6 = scmp.ne.s32.totalorder %s284_s18, %s3466_s5  ;;  %p3472_p8 = scmp.lt.s32.totalorder %s3693_s30, %s3466_s5 }
  0xf0   :  { %p3473_p9 = por %p3472_p8, %p3471_p7 }
  0xf2   :  { %p3474_p10 = pnand %p3473_p9, %p3467_p6 }
  0xf4   :  { %3477 = shalt.err (!%p3474_p10)  }
  0xf5   :  { %286 = dma.hbm_to_vmem [thread:$0]  %s273_s29, 2048, %s284_s18, [#allocation7 + $0x3]  ;;  %v307_v19 = vlaneseq  ;;  %v305_v22 = vld [vmem:[#allocation13] sm:$0x3]  ;;  %v444_v6 = vld [vmem:[#allocation14] sm:$0x3] }
  0xf6   :  { %v445_v10 = vld [vmem:[#allocation16] sm:$0x3] }
  0xf7   :  { %v3735_v20 = vshrl.u32 %v307_v19, 7 }
  0xf9   :  { %v3738_v21 = vsub.s32 0, %v3735_v20  ;;  %v3741_v23 = vsub.s32 1, %v3735_v20 }
  0xfb   :  { %v310_v24 = vrot.slane %v305_v22, %v3738_v21  ;;  %v314_v25 = vrot.slane %v305_v22, %v3741_v23  ;;  %v487_v7 = vrot.slane %v444_v6, %v3738_v21  ;;  %v491_v8 = vrot.slane %v444_v6, %v3741_v23 }
  0xfc   :  { %v510_v14 = vrot.slane %v445_v10, %v3738_v21  ;;  %v514_v18 = vrot.slane %v445_v10, %v3741_v23 }
 0x15e   :  { %v431_v26 = vpop.f32.mrf.mxu0 }
 0x15f   :  { %v432_v27 = vadd.f32 %v431_v26, %v310_v24 }
 0x160   :  { %v433_v28 = vpop.f32.mrf.mxu0 }
 0x161   :  { %vm438_vm0 = vcmp.gt.f32.partialorder %v432_v27, 0.0  ;;  %v440_v29 = vmul.f32 0.2, %v432_v27  ;;  %v434_v30 = vadd.f32 %v433_v28, %v314_v25 }
 0x162   :  { %v435_v31 = vpop.f32.mrf.mxu0 }
 0x163   :  { %v442_v32 = vsel %vm438_vm0, %v432_v27, %v440_v29  ;;  %vm439_vm1 = vcmp.gt.f32.partialorder %v434_v30, 0.0  ;;  %v441_v33 = vmul.f32 0.2, %v434_v30 }
 0x164   :  { %v446_v34 = vrot.slane %v442_v32, 4  ;;  %v436_v35 = vpop.f32.mrf.mxu0 }
 0x165   :  { %v443_v36 = vsel %vm439_vm1, %v434_v30, %v441_v33 }
 0x166   :  { %v447_v37 = vadd.f32 %v446_v34, %v442_v32  ;;  %v452_v38 = vrot.slane %v443_v36, 4 }
 0x168   :  { %v448_v39 = vrot.slane %v447_v37, 2  ;;  %v453_v40 = vadd.f32 %v452_v38, %v443_v36 }
 0x16a   :  { %v449_v41 = vadd.f32 %v448_v39, %v447_v37  ;;  %v454_v42 = vrot.slane %v453_v40, 2 }
 0x16c   :  { %v450_v43 = vrot.slane %v449_v41, 1  ;;  %v455_v44 = vadd.f32 %v454_v42, %v453_v40 }
 0x16e   :  { %v451_v45 = vadd.f32 %v450_v43, %v449_v41  ;;  %v456_v46 = vrot.slane %v455_v44, 1 }
 0x170   :  { %v459_v47 = vmul.f32 0.125, %v451_v45  ;;  %v457_v48 = vadd.f32 %v456_v46, %v455_v44 }
 0x172   :  { %v461_v49 = vsub.f32 %v442_v32, %v459_v47  ;;  %v460_v50 = vmul.f32 0.125, %v457_v48 }
 0x174   :  { %v463_v51 = vmul.f32 %v461_v49, %v461_v49  ;;  %v462_v52 = vsub.f32 %v443_v36, %v460_v50 }
 0x176   :  { %v465_v53 = vrot.slane %v463_v51, 4  ;;  %v464_v54 = vmul.f32 %v462_v52, %v462_v52 }
 0x178   :  { %v466_v55 = vadd.f32 %v465_v53, %v463_v51  ;;  %v471_v56 = vrot.slane %v464_v54, 4 }
 0x17a   :  { %v467_v57 = vrot.slane %v466_v55, 2  ;;  %v472_v58 = vadd.f32 %v471_v56, %v464_v54 }
 0x17c   :  { %v468_v59 = vadd.f32 %v467_v57, %v466_v55  ;;  %v473_v60 = vrot.slane %v472_v58, 2 }
 0x17e   :  { %v469_v61 = vrot.slane %v468_v59, 1  ;;  %v474_v62 = vadd.f32 %v473_v60, %v472_v58 }
 0x180   :  { %v470_v63 = vadd.f32 %v469_v61, %v468_v59  ;;  %v475_v0 = vrot.slane %v474_v62, 1 }
 0x182   :  { %v477_v1 = vmul.f32 0.125, %v470_v63  ;;  %v476_v2 = vadd.f32 %v475_v0, %v474_v62 }
 0x184   :  { %v479_v3 = vadd.f32 1e-05, %v477_v1  ;;  %v478_v4 = vmul.f32 0.125, %v476_v2 }
 0x186   :  { %2953 = vrsqrt.f32 %v479_v3  ;;  %v480_v5 = vadd.f32 1e-05, %v478_v4 }
 0x188   :  { %2955 = vrsqrt.f32 %v480_v5 }
 0x193   :  { %v2954_v9 = vpop.eup %2953 }
 0x194   :  { %v494_v11 = vmul.f32 %v2954_v9, %v487_v7 }
 0x195   :  { %v2956_v12 = vpop.eup %2955 }
 0x196   :  { %v499_v13 = vrot.slane %v494_v11, %v3738_v21  ;;  %v495_v15 = vmul.f32 %v2956_v12, %v491_v8 }
 0x198   :  { %v504_v16 = vmul.f32 %v499_v13, %v461_v49  ;;  %v503_v17 = vrot.slane %v495_v15, %v3738_v21 }
 0x19a   :  { %v3751_v19 = vadd.f32 %v510_v14, %v504_v16  ;;  %v505_v22 = vmul.f32 %v503_v17, %v462_v52 }
 0x19c   :  { %v518_v24 = vadd.f32 %v514_v18, %v505_v22 }
 0x19d   :  { %3511 = dma.done.wait [#allocation5], 8192 }
 0x19e   :  { %3512 = vsyncadd [#allocation5], 4294959104  ;;  %v588_v25 = vpack.c.bf16 %v518_v24, %v518_v24  ;;  %v2957_v26 = vld [vmem:[#allocation2 + $0xe4] ss:$16 sps:$4 sm:$0xff]   ;;  %v2959_v27 = vld [vmem:[#allocation2 + $0xec] ss:$16 sps:$4 sm:$0xff]  }
 0x19f   :  { %931 = vmatprep.subr.bf16.mxu1 %v2957_v26  ;;  %v2961_v28 = vld [vmem:[#allocation2 + $0xe0] ss:$16 sps:$4 sm:$0xff]   ;;  %v2962_v29 = vld [vmem:[#allocation2 + $0xe8] ss:$16 sps:$4 sm:$0xff]   ;;  %972 = vmatprep.subr.bf16.mxu0 %v2959_v27  ;;  %v2963_v30 = vld [vmem:[#allocation2 + $0xc4] ss:$16 sps:$4 sm:$0xff]  }
 0x1a0   :  { %963 = vmatprep.mubr.bf16.mxu1 %v588_v25  ;;  %1004 = vmatprep.mubr.bf16.mxu0 %v588_v25  ;;  %v2965_v31 = vld [vmem:[#allocation2 + $0xcc] ss:$16 sps:$4 sm:$0xff]   ;;  %v2967_v32 = vld [vmem:[#allocation2 + $0xc0] ss:$16 sps:$4 sm:$0xff]   ;;  %v2968_v33 = vld [vmem:[#allocation2 + $0xc8] ss:$16 sps:$4 sm:$0xff]  }
 0x1a1   :  { %932 = vmatpush1.bf16.msra.mxu1 %v2961_v28  ;;  %973 = vmatpush1.bf16.msra.mxu0 %v2962_v29  ;;  %v2969_v34 = vld [vmem:[#allocation2 + $0xa4] ss:$16 sps:$4 sm:$0xff]   ;;  %v2971_v35 = vld [vmem:[#allocation2 + $0xac] ss:$16 sps:$4 sm:$0xff]   ;;  %v2973_v36 = vld [vmem:[#allocation2 + $0xa0] ss:$16 sps:$4 sm:$0xff]  }
 0x1a2   :  { %933 = vmatprep.subr.bf16.mxu1 %v2963_v30  ;;  %974 = vmatprep.subr.bf16.mxu0 %v2965_v31  ;;  %v2974_v37 = vld [vmem:[#allocation2 + $0xa8] ss:$16 sps:$4 sm:$0xff]   ;;  %v2975_v38 = vld [vmem:[#allocation2 + $0x84] ss:$16 sps:$4 sm:$0xff]   ;;  %v2977_v39 = vld [vmem:[#allocation2 + $0x8c] ss:$16 sps:$4 sm:$0xff]   ;;  %v587_v30 = vpack.c.bf16 %v3751_v19, %v3751_v19 }
 0x1a3   :  { %v2979_v40 = vld [vmem:[#allocation2 + $0x80] ss:$16 sps:$4 sm:$0xff]   ;;  %v2980_v41 = vld [vmem:[#allocation2 + $0x88] ss:$16 sps:$4 sm:$0xff]   ;;  %v2981_v42 = vld [vmem:[#allocation2 + $0x64] ss:$16 sps:$4 sm:$0xff]  }
 0x1a4   :  { %v2983_v43 = vld [vmem:[#allocation2 + $0x6c] ss:$16 sps:$4 sm:$0xff]   ;;  %v2985_v44 = vld [vmem:[#allocation2 + $0x60] ss:$16 sps:$4 sm:$0xff]   ;;  %v2986_v45 = vld [vmem:[#allocation2 + $0x68] ss:$16 sps:$4 sm:$0xff]  }
 0x1a5   :  { %934 = vmatpush1.bf16.msra.mxu1 %v2967_v32  ;;  %975 = vmatpush1.bf16.msra.mxu0 %v2968_v33  ;;  %v2987_v46 = vld [vmem:[#allocation2 + $0x44] ss:$16 sps:$4 sm:$0xff]   ;;  %v2989_v47 = vld [vmem:[#allocation2 + $0x4c] ss:$16 sps:$4 sm:$0xff]   ;;  %v2991_v48 = vld [vmem:[#allocation2 + $0x40] ss:$16 sps:$4 sm:$0xff]  }
 0x1a6   :  { %935 = vmatprep.subr.bf16.mxu1 %v2969_v34  ;;  %976 = vmatprep.subr.bf16.mxu0 %v2971_v35  ;;  %v2992_v49 = vld [vmem:[#allocation2 + $0x48] ss:$16 sps:$4 sm:$0xff]   ;;  %v2993_v50 = vld [vmem:[#allocation2 + $0x24] ss:$16 sps:$4 sm:$0xff]   ;;  %v2995_v51 = vld [vmem:[#allocation2 + $0x2c] ss:$16 sps:$4 sm:$0xff]  }
 0x1a7   :  { %v2997_v52 = vld [vmem:[#allocation2 + $0x20] ss:$16 sps:$4 sm:$0xff]   ;;  %v2998_v53 = vld [vmem:[#allocation2 + $0x28] ss:$16 sps:$4 sm:$0xff]   ;;  %v2999_v54 = vld [vmem:[#allocation2 + $0x4] ss:$16 sps:$4 sm:$0xff]  }
 0x1a8   :  { %v3001_v55 = vld [vmem:[#allocation2 + $0xc] ss:$16 sps:$4 sm:$0xff]   ;;  %v3003_v56 = vld [vmem:[#allocation2] ss:$16 sps:$4 sm:$0xff]   ;;  %v3004_v57 = vld [vmem:[#allocation2 + $0x8] ss:$16 sps:$4 sm:$0xff]  }
 0x1a9   :  { %936 = vmatpush1.bf16.msra.mxu1 %v2973_v36  ;;  %977 = vmatpush1.bf16.msra.mxu0 %v2974_v37  ;;  %v3005_v58 = vld [vmem:[#allocation2 + $0x1e4] ss:$16 sps:$4 sm:$0xff]   ;;  %v3007_v59 = vld [vmem:[#allocation2 + $0x1ec] ss:$16 sps:$4 sm:$0xff]   ;;  %v3009_v60 = vld [vmem:[#allocation2 + $0x1e0] ss:$16 sps:$4 sm:$0xff]  }
 0x1aa   :  { %937 = vmatprep.subr.bf16.mxu1 %v2975_v38  ;;  %978 = vmatprep.subr.bf16.mxu0 %v2977_v39  ;;  %v3010_v61 = vld [vmem:[#allocation2 + $0x1e8] ss:$16 sps:$4 sm:$0xff]   ;;  %v3011_v62 = vld [vmem:[#allocation2 + $0x1c4] ss:$16 sps:$4 sm:$0xff]   ;;  %v3013_v63 = vld [vmem:[#allocation2 + $0x1cc] ss:$16 sps:$4 sm:$0xff]  }
 0x1ab   :  { %v3015_v0 = vld [vmem:[#allocation2 + $0x1c0] ss:$16 sps:$4 sm:$0xff]   ;;  %v3016_v1 = vld [vmem:[#allocation2 + $0x1c8] ss:$16 sps:$4 sm:$0xff]   ;;  %v3017_v2 = vld [vmem:[#allocation2 + $0x1a4] ss:$16 sps:$4 sm:$0xff]  }
 0x1ac   :  { %v3019_v3 = vld [vmem:[#allocation2 + $0x1ac] ss:$16 sps:$4 sm:$0xff]   ;;  %v3021_v4 = vld [vmem:[#allocation2 + $0x1a0] ss:$16 sps:$4 sm:$0xff]   ;;  %v3022_v5 = vld [vmem:[#allocation2 + $0x1a8] ss:$16 sps:$4 sm:$0xff]  }
 0x1ad   :  { %938 = vmatpush1.bf16.msra.mxu1 %v2979_v40  ;;  %979 = vmatpush1.bf16.msra.mxu0 %v2980_v41  ;;  %v3023_v6 = vld [vmem:[#allocation2 + $0x184] ss:$16 sps:$4 sm:$0xff]   ;;  %v3025_v7 = vld [vmem:[#allocation2 + $0x18c] ss:$16 sps:$4 sm:$0xff]   ;;  %v3027_v8 = vld [vmem:[#allocation2 + $0x180] ss:$16 sps:$4 sm:$0xff]  }
 0x1ae   :  { %939 = vmatprep.subr.bf16.mxu1 %v2981_v42  ;;  %980 = vmatprep.subr.bf16.mxu0 %v2983_v43  ;;  %v3028_v9 = vld [vmem:[#allocation2 + $0x188] ss:$16 sps:$4 sm:$0xff]   ;;  %v3029_v10 = vld [vmem:[#allocation2 + $0x164] ss:$16 sps:$4 sm:$0xff]   ;;  %v3031_v11 = vld [vmem:[#allocation2 + $0x16c] ss:$16 sps:$4 sm:$0xff]  }
 0x1af   :  { %v3033_v12 = vld [vmem:[#allocation2 + $0x160] ss:$16 sps:$4 sm:$0xff]   ;;  %v3034_v13 = vld [vmem:[#allocation2 + $0x168] ss:$16 sps:$4 sm:$0xff]   ;;  %v3035_v14 = vld [vmem:[#allocation2 + $0x144] ss:$16 sps:$4 sm:$0xff]  }
 0x1b0   :  { %v3037_v15 = vld [vmem:[#allocation2 + $0x14c] ss:$16 sps:$4 sm:$0xff]   ;;  %v3039_v16 = vld [vmem:[#allocation2 + $0x140] ss:$16 sps:$4 sm:$0xff]   ;;  %v3040_v17 = vld [vmem:[#allocation2 + $0x148] ss:$16 sps:$4 sm:$0xff]  }
 0x1b1   :  { %940 = vmatpush1.bf16.msra.mxu1 %v2985_v44  ;;  %981 = vmatpush1.bf16.msra.mxu0 %v2986_v45  ;;  %v3041_v18 = vld [vmem:[#allocation2 + $0x124] ss:$16 sps:$4 sm:$0xff]   ;;  %v3043_v22 = vld [vmem:[#allocation2 + $0x12c] ss:$16 sps:$4 sm:$0xff]   ;;  %v3045_v24 = vld [vmem:[#allocation2 + $0x120] ss:$16 sps:$4 sm:$0xff]  }
 0x1b2   :  { %941 = vmatprep.subr.bf16.mxu1 %v2987_v46  ;;  %982 = vmatprep.subr.bf16.mxu0 %v2989_v47  ;;  %v3046_v25 = vld [vmem:[#allocation2 + $0x128] ss:$16 sps:$4 sm:$0xff]   ;;  %v3047_v26 = vld [vmem:[#allocation2 + $0x104] ss:$16 sps:$4 sm:$0xff]   ;;  %v3049_v27 = vld [vmem:[#allocation2 + $0x10c] ss:$16 sps:$4 sm:$0xff]  }
 0x1b3   :  { %v3051_v28 = vld [vmem:[#allocation2 + $0x100] ss:$16 sps:$4 sm:$0xff]   ;;  %v3052_v29 = vld [vmem:[#allocation2 + $0x108] ss:$16 sps:$4 sm:$0xff]   ;;  %v3756_v31 = vsub.s32 2, %v3735_v20  ;;  %v3759_v33 = vsub.s32 3, %v3735_v20 }
 0x1b4   :  { %v589_v32 = vld [vmem:[#allocation17] sm:$0xf] }
 0x1b5   :  { %942 = vmatpush1.bf16.msra.mxu1 %v2991_v48  ;;  %983 = vmatpush1.bf16.msra.mxu0 %v2992_v49  ;;  %v594_v34 = vrot.slane %v589_v32, %v3738_v21  ;;  %v602_v35 = vrot.slane %v589_v32, %v3756_v31  ;;  %v598_v38 = vrot.slane %v589_v32, %v3741_v23 }
 0x1b6   :  { %943 = vmatprep.subr.bf16.mxu1 %v2993_v50  ;;  %984 = vmatprep.subr.bf16.mxu0 %v2995_v51  ;;  %v606_v19 = vrot.slane %v589_v32, %v3759_v33 }
 0x1b9   :  { %944 = vmatpush1.bf16.msra.mxu1 %v2997_v52  ;;  %985 = vmatpush1.bf16.msra.mxu0 %v2998_v53 }
 0x1ba   :  { %945 = vmatprep.subr.bf16.mxu1 %v2999_v54  ;;  %986 = vmatprep.subr.bf16.mxu0 %v3001_v55 }
 0x1bd   :  { %946 = vmatpush1.bf16.msra.mxu1 %v3003_v56  ;;  %987 = vmatpush1.bf16.msra.mxu0 %v3004_v57 }
 0x1be   :  { %947 = vmatprep.subr.bf16.mxu1 %v3005_v58  ;;  %988 = vmatprep.subr.bf16.mxu0 %v3007_v59 }
 0x1c1   :  { %948 = vmatpush2.bf16.msra.mxu1 %v3009_v60  ;;  %989 = vmatpush2.bf16.msra.mxu0 %v3010_v61 }
 0x1c2   :  { %949 = vmatprep.subr.bf16.mxu1 %v3011_v62  ;;  %990 = vmatprep.subr.bf16.mxu0 %v3013_v63 }
 0x1c5   :  { %950 = vmatpush2.bf16.msra.mxu1 %v3015_v0  ;;  %991 = vmatpush2.bf16.msra.mxu0 %v3016_v1 }
 0x1c6   :  { %951 = vmatprep.subr.bf16.mxu1 %v3017_v2  ;;  %992 = vmatprep.subr.bf16.mxu0 %v3019_v3 }
 0x1c9   :  { %952 = vmatpush2.bf16.msra.mxu1 %v3021_v4  ;;  %993 = vmatpush2.bf16.msra.mxu0 %v3022_v5 }
 0x1ca   :  { %953 = vmatprep.subr.bf16.mxu1 %v3023_v6  ;;  %994 = vmatprep.subr.bf16.mxu0 %v3025_v7 }
 0x1cd   :  { %954 = vmatpush2.bf16.msra.mxu1 %v3027_v8  ;;  %995 = vmatpush2.bf16.msra.mxu0 %v3028_v9 }
 0x1ce   :  { %955 = vmatprep.subr.bf16.mxu1 %v3029_v10  ;;  %996 = vmatprep.subr.bf16.mxu0 %v3031_v11 }
 0x1d1   :  { %956 = vmatpush2.bf16.msra.mxu1 %v3033_v12  ;;  %997 = vmatpush2.bf16.msra.mxu0 %v3034_v13 }
 0x1d2   :  { %957 = vmatprep.subr.bf16.mxu1 %v3035_v14  ;;  %998 = vmatprep.subr.bf16.mxu0 %v3037_v15 }
 0x1d5   :  { %958 = vmatpush2.bf16.msra.mxu1 %v3039_v16  ;;  %999 = vmatpush2.bf16.msra.mxu0 %v3040_v17 }
 0x1d6   :  { %959 = vmatprep.subr.bf16.mxu1 %v3041_v18  ;;  %1000 = vmatprep.subr.bf16.mxu0 %v3043_v22 }
 0x1d9   :  { %960 = vmatpush2.bf16.msra.mxu1 %v3045_v24  ;;  %1001 = vmatpush2.bf16.msra.mxu0 %v3046_v25 }
 0x1da   :  { %961 = vmatprep.subr.bf16.mxu1 %v3047_v26  ;;  %1002 = vmatprep.subr.bf16.mxu0 %v3049_v27 }
 0x1dd   :  { %962 = vmatpush2.bf16.msra.mxu1 %v3051_v28  ;;  %1003 = vmatpush2.bf16.msra.mxu0 %v3052_v29 }
 0x1e0   :  { %964 = vmatmul.mubr.bf16.vlgmr.msra.gmra.mxu1 %v587_v30  ;;  %1005 = vmatmul.mubr.bf16.vlgmr.msra.gmra.mxu0 %v587_v30 }
 0x2a0   :  { %v965_v36 = vpop.f32.mrf.mxu1  ;;  %v1006_v37 = vpop.f32.mrf.mxu0 }
 0x2a1   :  { %v966_v39 = vadd.f32 %v965_v36, %v594_v34  ;;  %v1007_v40 = vadd.f32 %v1006_v37, %v602_v35 }
 0x2a2   :  { %v967_v41 = vpop.f32.mrf.mxu1  ;;  %v1008_v42 = vpop.f32.mrf.mxu0 }
 0x2a3   :  { %vm1013_vm2 = vcmp.gt.f32.partialorder %v966_v39, 0.0  ;;  %v1017_v43 = vmul.f32 0.2, %v966_v39  ;;  %vm1015_vm3 = vcmp.gt.f32.partialorder %v1007_v40, 0.0  ;;  %v1019_v44 = vmul.f32 0.2, %v1007_v40 }
 0x2a4   :  { %v968_v20 = vadd.f32 %v967_v41, %v598_v38  ;;  %v1009_v45 = vadd.f32 %v1008_v42, %v606_v19  ;;  %v969_v46 = vpop.f32.mrf.mxu1  ;;  %v1010_v47 = vpop.f32.mrf.mxu0 }
 0x2a5   :  { %v1021_v48 = vsel %vm1013_vm2, %v966_v39, %v1017_v43  ;;  %v1023_v49 = vsel %vm1015_vm3, %v1007_v40, %v1019_v44 }
 0x2a6   :  { %v1027_v50 = vrot.slane %v1021_v48, 4  ;;  %v1039_v51 = vrot.slane %v1023_v49, 4  ;;  %vm1014_vm4 = vcmp.gt.f32.partialorder %v968_v20, 0.0  ;;  %v1018_v52 = vmul.f32 0.2, %v968_v20  ;;  %v970_v53 = vpop.f32.mrf.mxu1  ;;  %v1011_v54 = vpop.f32.mrf.mxu0 }
 0x2a7   :  { %vm1016_vm5 = vcmp.gt.f32.partialorder %v1009_v45, 0.0  ;;  %v1020_v55 = vmul.f32 0.2, %v1009_v45 }
 0x2a8   :  { %v1028_v56 = vadd.f32 %v1027_v50, %v1021_v48  ;;  %v1040_v57 = vadd.f32 %v1039_v51, %v1023_v49  ;;  %v1022_v58 = vsel %vm1014_vm4, %v968_v20, %v1018_v52 }
 0x2a9   :  { %v1033_v59 = vrot.slane %v1022_v58, 4  ;;  %v1024_v60 = vsel %vm1016_vm5, %v1009_v45, %v1020_v55 }
 0x2aa   :  { %v1029_v61 = vrot.slane %v1028_v56, 2  ;;  %v1041_v62 = vrot.slane %v1040_v57, 2  ;;  %v1045_v63 = vrot.slane %v1024_v60, 4 }
 0x2ab   :  { %v1034_v0 = vadd.f32 %v1033_v59, %v1022_v58 }
 0x2ac   :  { %v1030_v1 = vadd.f32 %v1029_v61, %v1028_v56  ;;  %v1042_v2 = vadd.f32 %v1041_v62, %v1040_v57  ;;  %v1046_v3 = vadd.f32 %v1045_v63, %v1024_v60 }
 0x2ad   :  { %v1035_v4 = vrot.slane %v1034_v0, 2 }
 0x2ae   :  { %v1031_v5 = vrot.slane %v1030_v1, 1  ;;  %v1043_v6 = vrot.slane %v1042_v2, 1  ;;  %v1047_v7 = vrot.slane %v1046_v3, 2 }
 0x2af   :  { %v1036_v8 = vadd.f32 %v1035_v4, %v1034_v0  ;;  %v1025_v0 = vld [vmem:[#allocation19] sm:$0xf]  ;;  %v1026_v4 = vld [vmem:[#allocation20] sm:$0xf] }
 0x2b0   :  { %v1032_v9 = vadd.f32 %v1031_v5, %v1030_v1  ;;  %v1044_v10 = vadd.f32 %v1043_v6, %v1042_v2  ;;  %v1048_v11 = vadd.f32 %v1047_v7, %v1046_v3  ;;  %v1103_v1 = vrot.slane %v1025_v0, %v3738_v21 }
 0x2b1   :  { %v1037_v12 = vrot.slane %v1036_v8, 1  ;;  %v1111_v2 = vrot.slane %v1025_v0, %v3756_v31  ;;  %v1107_v5 = vrot.slane %v1025_v0, %v3741_v23 }
 0x2b2   :  { %v1051_v13 = vmul.f32 0.125, %v1032_v9  ;;  %v1053_v14 = vmul.f32 0.125, %v1044_v10  ;;  %v1049_v15 = vrot.slane %v1048_v11, 1 }
 0x2b3   :  { %v1038_v16 = vadd.f32 %v1037_v12, %v1036_v8  ;;  %v1115_v8 = vrot.slane %v1025_v0, %v3759_v33  ;;  %v1148_v12 = vrot.slane %v1026_v4, %v3738_v21 }
 0x2b4   :  { %v3765_v17 = vsub.f32 %v1021_v48, %v1051_v13  ;;  %v3767_v18 = vsub.f32 %v1023_v49, %v1053_v14  ;;  %v1050_v22 = vadd.f32 %v1049_v15, %v1048_v11  ;;  %v1156_v15 = vrot.slane %v1026_v4, %v3756_v31 }
 0x2b5   :  { %v1052_v24 = vmul.f32 0.125, %v1038_v16 }
 0x2b6   :  { %v1059_v25 = vmul.f32 %v3765_v17, %v3765_v17  ;;  %v1061_v26 = vmul.f32 %v3767_v18, %v3767_v18  ;;  %v1054_v27 = vmul.f32 0.125, %v1050_v22 }
 0x2b7   :  { %v3773_v28 = vsub.f32 %v1022_v58, %v1052_v24 }
 0x2b8   :  { %v1063_v29 = vrot.slane %v1059_v25, 4  ;;  %v1075_v30 = vrot.slane %v1061_v26, 4  ;;  %v3775_v32 = vsub.f32 %v1024_v60, %v1054_v27  ;;  %v1152_v27 = vrot.slane %v1026_v4, %v3741_v23 }
 0x2b9   :  { %v1060_v34 = vmul.f32 %v3773_v28, %v3773_v28 }
 0x2ba   :  { %v1064_v35 = vadd.f32 %v1063_v29, %v1059_v25  ;;  %v1076_v36 = vadd.f32 %v1075_v30, %v1061_v26  ;;  %v1062_v37 = vmul.f32 %v3775_v32, %v3775_v32 }
 0x2bb   :  { %v1069_v38 = vrot.slane %v1060_v34, 4 }
 0x2bc   :  { %v1065_v19 = vrot.slane %v1064_v35, 2  ;;  %v1077_v39 = vrot.slane %v1076_v36, 2  ;;  %v1081_v40 = vrot.slane %v1062_v37, 4 }
 0x2bd   :  { %v1070_v41 = vadd.f32 %v1069_v38, %v1060_v34  ;;  %v1160_v34 = vrot.slane %v1026_v4, %v3759_v33 }
 0x2be   :  { %v1066_v42 = vadd.f32 %v1065_v19, %v1064_v35  ;;  %v1078_v43 = vadd.f32 %v1077_v39, %v1076_v36  ;;  %v1082_v44 = vadd.f32 %v1081_v40, %v1062_v37 }
 0x2bf   :  { %v1071_v20 = vrot.slane %v1070_v41, 2 }
 0x2c0   :  { %v1067_v45 = vrot.slane %v1066_v42, 1  ;;  %v1079_v46 = vrot.slane %v1078_v43, 1  ;;  %v1083_v47 = vrot.slane %v1082_v44, 2 }
 0x2c1   :  { %v1072_v48 = vadd.f32 %v1071_v20, %v1070_v41 }
 0x2c2   :  { %v1068_v49 = vadd.f32 %v1067_v45, %v1066_v42  ;;  %v1080_v50 = vadd.f32 %v1079_v46, %v1078_v43  ;;  %v1084_v51 = vadd.f32 %v1083_v47, %v1082_v44 }
 0x2c3   :  { %v1073_v52 = vrot.slane %v1072_v48, 1 }
 0x2c4   :  { %v1087_v53 = vmul.f32 0.125, %v1068_v49  ;;  %v1089_v54 = vmul.f32 0.125, %v1080_v50  ;;  %v1085_v55 = vrot.slane %v1084_v51, 1 }
 0x2c5   :  { %v1074_v56 = vadd.f32 %v1073_v52, %v1072_v48 }
 0x2c6   :  { %v1091_v57 = vadd.f32 1e-05, %v1087_v53  ;;  %v1093_v58 = vadd.f32 1e-05, %v1089_v54  ;;  %v1086_v59 = vadd.f32 %v1085_v55, %v1084_v51 }
 0x2c7   :  { %v1088_v60 = vmul.f32 0.125, %v1074_v56 }
 0x2c8   :  { %3053 = vrsqrt.f32 %v1091_v57  ;;  %v1090_v61 = vmul.f32 0.125, %v1086_v59 }
 0x2c9   :  { %3055 = vrsqrt.f32 %v1093_v58  ;;  %v1092_v62 = vadd.f32 1e-05, %v1088_v60 }
 0x2ca   :  { %v1094_v63 = vadd.f32 1e-05, %v1090_v61 }
 0x2cb   :  { %3057 = vrsqrt.f32 %v1092_v62 }
 0x2cc   :  { %3059 = vrsqrt.f32 %v1094_v63 }
 0x2d5   :  { %v3054_v3 = vpop.eup %3053 }
 0x2d6   :  { %v3056_v6 = vpop.eup %3055  ;;  %v1120_v7 = vmul.f32 %v3054_v3, %v1103_v1 }
 0x2d7   :  { %v1122_v9 = vmul.f32 %v3056_v6, %v1111_v2 }
 0x2d8   :  { %v3058_v10 = vpop.eup %3057  ;;  %v1127_v11 = vrot.slane %v1120_v7, %v3738_v21 }
 0x2d9   :  { %v3060_v13 = vpop.eup %3059  ;;  %v1135_v14 = vrot.slane %v1122_v9, %v3738_v21  ;;  %v1121_v16 = vmul.f32 %v3058_v10, %v1107_v5 }
 0x2da   :  { %v1140_v22 = vmul.f32 %v1127_v11, %v3765_v17  ;;  %v1123_v24 = vmul.f32 %v3060_v13, %v1115_v8 }
 0x2db   :  { %v1142_v25 = vmul.f32 %v1135_v14, %v3767_v18  ;;  %v1131_v26 = vrot.slane %v1121_v16, %v3738_v21 }
 0x2dc   :  { %v1165_v29 = vadd.f32 %v1148_v12, %v1140_v22  ;;  %v1139_v30 = vrot.slane %v1123_v24, %v3738_v21 }
 0x2dd   :  { %v1167_v35 = vadd.f32 %v1156_v15, %v1142_v25  ;;  %v1141_v36 = vmul.f32 %v1131_v26, %v3773_v28 }
 0x2de   :  { %v3796_v37 = vpack.c.bf16 %v1165_v29, %v1165_v29  ;;  %v1143_v31 = vmul.f32 %v1139_v30, %v3775_v32 }
 0x2df   :  { %v3799_v17 = vpack.c.bf16 %v1167_v35, %v1167_v35  ;;  %v1166_v38 = vadd.f32 %v1152_v27, %v1141_v36 }
 0x2e0   :  { %v1168_v18 = vadd.f32 %v1160_v34, %v1143_v31 }
 0x2e1   :  { %v3801_v19 = vpack.c.bf16 %v1166_v38, %v1166_v38 }
 0x2e2   :  { %v3803_v39 = vpack.c.bf16 %v1168_v18, %v1168_v18 }
 0x2e3   :  { %3513 = dma.done.wait [#allocation6], 4096 }
 0x2e4   :  { %3514 = vsyncadd [#allocation6], 4294963200  ;;  %1305 = vmatprep.mubr.bf16.mxu1 %v3801_v19  ;;  %1346 = vmatprep.mubr.bf16.mxu0 %v3803_v39  ;;  %v1184_v33 = vld [vmem:[#allocation3 + $0x38] sm:$0xff]  ;;  %v1183_v40 = vld [vmem:[#allocation3 + $0x30] sm:$0xff] }
 0x2e5   :  { %v1200_v28 = vld [vmem:[#allocation3 + $0xb8] sm:$0xff]  ;;  %v1222_v41 = vunpack.c.l.s8.bf16 %v1184_v33  ;;  %v1224_v42 = vunpack.c.h.s8.bf16 %v1184_v33  ;;  %v1199_v44 = vld [vmem:[#allocation3 + $0xb0] sm:$0xff]  ;;  %v1223_v20 = vunpack.c.h.s8.bf16 %v1183_v40  ;;  %v1182_v46 = vld [vmem:[#allocation3 + $0x28] sm:$0xff]  ;;  %v1221_v48 = vunpack.c.l.s8.bf16 %v1183_v40 }
 0x2e6   :  { %v1254_v32 = vunpack.c.l.s8.bf16 %v1200_v28  ;;  %v1256_v43 = vunpack.c.h.s8.bf16 %v1200_v28  ;;  %v1255_v45 = vunpack.c.h.s8.bf16 %v1199_v44  ;;  %v1198_v47 = vld [vmem:[#allocation3 + $0xa8] sm:$0xff]  ;;  %v1253_v49 = vunpack.c.l.s8.bf16 %v1199_v44  ;;  %v1181_v52 = vld [vmem:[#allocation3 + $0x20] sm:$0xff]  ;;  %v1180_v58 = vld [vmem:[#allocation3 + $0x18] sm:$0xff] }
 0x2e7   :  { %1273 = vmatprep.subr.bf16.mxu1 %v1224_v42  ;;  %v1220_v50 = vunpack.c.h.s8.bf16 %v1182_v46  ;;  %v1252_v51 = vunpack.c.h.s8.bf16 %v1198_v47  ;;  %v1197_v53 = vld [vmem:[#allocation3 + $0xa0] sm:$0xff]  ;;  %v1219_v54 = vunpack.c.h.s8.bf16 %v1181_v52  ;;  %v1218_v56 = vunpack.c.l.s8.bf16 %v1182_v46  ;;  %v1196_v59 = vld [vmem:[#allocation3 + $0x98] sm:$0xff]  ;;  %v1179_v0 = vld [vmem:[#allocation3 + $0x10] sm:$0xff] }
 0x2e8   :  { %1314 = vmatprep.subr.bf16.mxu0 %v1256_v43  ;;  %1274 = vmatpush1.bf16.msra.mxu1 %v1223_v20  ;;  %v1251_v55 = vunpack.c.h.s8.bf16 %v1197_v53  ;;  %v1250_v57 = vunpack.c.l.s8.bf16 %v1198_v47  ;;  %v1217_v60 = vunpack.c.l.s8.bf16 %v1181_v52  ;;  %v1249_v61 = vunpack.c.l.s8.bf16 %v1197_v53  ;;  %v1195_v1 = vld [vmem:[#allocation3 + $0x90] sm:$0xff]  ;;  %v1178_v6 = vld [vmem:[#allocation3 + $0x8] sm:$0xff]  ;;  %v1177_v12 = vld [vmem:[#allocation3] sm:$0xff] }
 0x2e9   :  { %1315 = vmatpush1.bf16.msra.mxu0 %v1255_v45  ;;  %1275 = vmatprep.subr.bf16.mxu1 %v1222_v41  ;;  %v1216_v62 = vunpack.c.h.s8.bf16 %v1180_v58  ;;  %v1248_v63 = vunpack.c.h.s8.bf16 %v1196_v59  ;;  %v1215_v2 = vunpack.c.h.s8.bf16 %v1179_v0  ;;  %v1247_v3 = vunpack.c.h.s8.bf16 %v1195_v1  ;;  %v1194_v7 = vld [vmem:[#allocation3 + $0x88] sm:$0xff]  ;;  %v1193_v13 = vld [vmem:[#allocation3 + $0x80] sm:$0xff]  ;;  %v1192_v24 = vld [vmem:[#allocation3 + $0x78] sm:$0xff] }
 0x2ea   :  { %1316 = vmatprep.subr.bf16.mxu0 %v1254_v32  ;;  %v1214_v4 = vunpack.c.l.s8.bf16 %v1180_v58  ;;  %v1246_v5 = vunpack.c.l.s8.bf16 %v1196_v59  ;;  %v1213_v8 = vunpack.c.l.s8.bf16 %v1179_v0  ;;  %v1245_v9 = vunpack.c.l.s8.bf16 %v1195_v1  ;;  %v1208_v25 = vld [vmem:[#allocation3 + $0xf8] sm:$0xff]  ;;  %v1191_v34 = vld [vmem:[#allocation3 + $0x70] sm:$0xff]  ;;  %v1190_v33 = vld [vmem:[#allocation3 + $0x68] sm:$0xff] }
 0x2eb   :  { %v1212_v10 = vunpack.c.h.s8.bf16 %v1178_v6  ;;  %v1244_v11 = vunpack.c.h.s8.bf16 %v1194_v7  ;;  %v1211_v14 = vunpack.c.h.s8.bf16 %v1177_v12  ;;  %v1243_v15 = vunpack.c.h.s8.bf16 %v1193_v13  ;;  %v1207_v35 = vld [vmem:[#allocation3 + $0xf0] sm:$0xff]  ;;  %v1206_v28 = vld [vmem:[#allocation3 + $0xe8] sm:$0xff]  ;;  %v1189_v43 = vld [vmem:[#allocation3 + $0x60] sm:$0xff] }
 0x2ec   :  { %1276 = vmatpush1.bf16.msra.mxu1 %v1221_v48  ;;  %v1210_v16 = vunpack.c.l.s8.bf16 %v1178_v6  ;;  %v1242_v22 = vunpack.c.l.s8.bf16 %v1194_v7  ;;  %v1209_v26 = vunpack.c.l.s8.bf16 %v1177_v12  ;;  %v1241_v27 = vunpack.c.l.s8.bf16 %v1193_v13  ;;  %v1205_v44 = vld [vmem:[#allocation3 + $0xe0] sm:$0xff]  ;;  %v1188_v48 = vld [vmem:[#allocation3 + $0x58] sm:$0xff] }
 0x2ed   :  { %1317 = vmatpush1.bf16.msra.mxu0 %v1253_v49  ;;  %1277 = vmatprep.subr.bf16.mxu1 %v1220_v50  ;;  %v1240_v29 = vunpack.c.h.s8.bf16 %v1192_v24  ;;  %v1272_v30 = vunpack.c.h.s8.bf16 %v1208_v25  ;;  %v1239_v36 = vunpack.c.h.s8.bf16 %v1191_v34  ;;  %v1271_v31 = vunpack.c.h.s8.bf16 %v1207_v35  ;;  %v1204_v49 = vld [vmem:[#allocation3 + $0xd8] sm:$0xff] }
 0x2ee   :  { %1318 = vmatprep.subr.bf16.mxu0 %v1252_v51  ;;  %v1238_v38 = vunpack.c.l.s8.bf16 %v1192_v24  ;;  %v1270_v18 = vunpack.c.l.s8.bf16 %v1208_v25  ;;  %v1237_v40 = vunpack.c.l.s8.bf16 %v1191_v34  ;;  %v1269_v41 = vunpack.c.l.s8.bf16 %v1207_v35 }
 0x2ef   :  { %v1236_v42 = vunpack.c.h.s8.bf16 %v1190_v33  ;;  %v1268_v32 = vunpack.c.h.s8.bf16 %v1206_v28  ;;  %v1235_v20 = vunpack.c.h.s8.bf16 %v1189_v43  ;;  %v1267_v45 = vunpack.c.h.s8.bf16 %v1205_v44 }
 0x2f0   :  { %1278 = vmatpush1.bf16.msra.mxu1 %v1219_v54  ;;  %v1234_v46 = vunpack.c.l.s8.bf16 %v1190_v33  ;;  %v1266_v47 = vunpack.c.l.s8.bf16 %v1206_v28  ;;  %v1233_v50 = vunpack.c.l.s8.bf16 %v1189_v43  ;;  %v1265_v51 = vunpack.c.l.s8.bf16 %v1205_v44  ;;  %v1187_v54 = vld [vmem:[#allocation3 + $0x50] sm:$0xff] }
 0x2f1   :  { %1319 = vmatpush1.bf16.msra.mxu0 %v1251_v55  ;;  %1279 = vmatprep.subr.bf16.mxu1 %v1218_v56  ;;  %v1232_v52 = vunpack.c.h.s8.bf16 %v1188_v48  ;;  %v1264_v53 = vunpack.c.h.s8.bf16 %v1204_v49  ;;  %v1203_v55 = vld [vmem:[#allocation3 + $0xd0] sm:$0xff]  ;;  %v1231_v56 = vunpack.c.h.s8.bf16 %v1187_v54  ;;  %v1230_v58 = vunpack.c.l.s8.bf16 %v1188_v48 }
 0x2f2   :  { %1320 = vmatprep.subr.bf16.mxu0 %v1250_v57  ;;  %v1263_v57 = vunpack.c.h.s8.bf16 %v1203_v55  ;;  %v1262_v59 = vunpack.c.l.s8.bf16 %v1204_v49 }
 0x2f4   :  { %1280 = vmatpush1.bf16.msra.mxu1 %v1217_v60  ;;  %v1186_v60 = vld [vmem:[#allocation3 + $0x48] sm:$0xff] }
 0x2f5   :  { %1321 = vmatpush1.bf16.msra.mxu0 %v1249_v61  ;;  %1281 = vmatprep.subr.bf16.mxu1 %v1216_v62  ;;  %v1202_v61 = vld [vmem:[#allocation3 + $0xc8] sm:$0xff]  ;;  %v1229_v62 = vunpack.c.l.s8.bf16 %v1187_v54  ;;  %v1228_v0 = vunpack.c.h.s8.bf16 %v1186_v60  ;;  %v1226_v6 = vunpack.c.l.s8.bf16 %v1186_v60 }
 0x2f6   :  { %1322 = vmatprep.subr.bf16.mxu0 %v1248_v63  ;;  %v1261_v63 = vunpack.c.l.s8.bf16 %v1203_v55  ;;  %v1260_v1 = vunpack.c.h.s8.bf16 %v1202_v61  ;;  %v1258_v7 = vunpack.c.l.s8.bf16 %v1202_v61 }
 0x2f8   :  { %1282 = vmatpush1.bf16.msra.mxu1 %v1215_v2  ;;  %v1185_v2 = vld [vmem:[#allocation3 + $0x40] sm:$0xff] }
 0x2f9   :  { %1323 = vmatpush1.bf16.msra.mxu0 %v1247_v3  ;;  %1283 = vmatprep.subr.bf16.mxu1 %v1214_v4  ;;  %v1201_v3 = vld [vmem:[#allocation3 + $0xc0] sm:$0xff]  ;;  %v1227_v4 = vunpack.c.h.s8.bf16 %v1185_v2 }
 0x2fa   :  { %1324 = vmatprep.subr.bf16.mxu0 %v1246_v5  ;;  %v1259_v5 = vunpack.c.h.s8.bf16 %v1201_v3 }
 0x2fc   :  { %1284 = vmatpush1.bf16.msra.mxu1 %v1213_v8  ;;  %v1225_v8 = vunpack.c.l.s8.bf16 %v1185_v2 }
 0x2fd   :  { %1325 = vmatpush1.bf16.msra.mxu0 %v1245_v9  ;;  %1285 = vmatprep.subr.bf16.mxu1 %v1212_v10  ;;  %v1257_v9 = vunpack.c.l.s8.bf16 %v1201_v3  ;;  %v1355_v10 = vld [vmem:[%s4074_s10] sm:$0x3] }
 0x2fe   :  { %1326 = vmatprep.subr.bf16.mxu0 %v1244_v11  ;;  %v1369_v11 = vld [vmem:[%s4075_s11] sm:$0x3]  ;;  %v1360_v12 = vrot.slane %v1355_v10, %v3738_v21 }
 0x300   :  { %1286 = vmatpush1.bf16.msra.mxu1 %v1211_v14 }
 0x301   :  { %1327 = vmatpush1.bf16.msra.mxu0 %v1243_v15  ;;  %1287 = vmatprep.subr.bf16.mxu1 %v1210_v16  ;;  %v1374_v16 = vrot.slane %v1369_v11, %v3738_v21 }
 0x302   :  { %1328 = vmatprep.subr.bf16.mxu0 %v1242_v22  ;;  %v1364_v22 = vrot.slane %v1355_v10, %v3741_v23  ;;  %v1389_v10 = vld [vmem:[#allocation22] sm:$0x3] }
 0x304   :  { %1288 = vmatpush1.bf16.msra.mxu1 %v1209_v26 }
 0x305   :  { %1329 = vmatpush1.bf16.msra.mxu0 %v1241_v27  ;;  %1289 = vmatprep.subr.bf16.mxu1 %v1240_v29  ;;  %v1378_v29 = vrot.slane %v1369_v11, %v3741_v23  ;;  %v1431_v11 = vrot.slane %v1389_v10, %v3738_v21 }
 0x306   :  { %1330 = vmatprep.subr.bf16.mxu0 %v1272_v30 }
 0x308   :  { %1290 = vmatpush2.bf16.msra.mxu1 %v1239_v36 }
 0x309   :  { %1331 = vmatpush2.bf16.msra.mxu0 %v1271_v31  ;;  %1291 = vmatprep.subr.bf16.mxu1 %v1238_v38 }
 0x30a   :  { %1332 = vmatprep.subr.bf16.mxu0 %v1270_v18 }
 0x30c   :  { %1292 = vmatpush2.bf16.msra.mxu1 %v1237_v40 }
 0x30d   :  { %1333 = vmatpush2.bf16.msra.mxu0 %v1269_v41  ;;  %1293 = vmatprep.subr.bf16.mxu1 %v1236_v42 }
 0x30e   :  { %1334 = vmatprep.subr.bf16.mxu0 %v1268_v32 }
 0x310   :  { %1294 = vmatpush2.bf16.msra.mxu1 %v1235_v20 }
 0x311   :  { %1335 = vmatpush2.bf16.msra.mxu0 %v1267_v45  ;;  %1295 = vmatprep.subr.bf16.mxu1 %v1234_v46 }
 0x312   :  { %1336 = vmatprep.subr.bf16.mxu0 %v1266_v47 }
 0x314   :  { %1296 = vmatpush2.bf16.msra.mxu1 %v1233_v50 }
 0x315   :  { %1337 = vmatpush2.bf16.msra.mxu0 %v1265_v51  ;;  %1297 = vmatprep.subr.bf16.mxu1 %v1232_v52 }
 0x316   :  { %1338 = vmatprep.subr.bf16.mxu0 %v1264_v53 }
 0x318   :  { %1298 = vmatpush2.bf16.msra.mxu1 %v1231_v56 }
 0x319   :  { %1339 = vmatpush2.bf16.msra.mxu0 %v1263_v57  ;;  %1299 = vmatprep.subr.bf16.mxu1 %v1230_v58 }
 0x31a   :  { %1340 = vmatprep.subr.bf16.mxu0 %v1262_v59 }
 0x31c   :  { %1300 = vmatpush2.bf16.msra.mxu1 %v1229_v62 }
 0x31d   :  { %1341 = vmatpush2.bf16.msra.mxu0 %v1261_v63  ;;  %1301 = vmatprep.subr.bf16.mxu1 %v1228_v0 }
 0x31e   :  { %1342 = vmatprep.subr.bf16.mxu0 %v1260_v1 }
 0x320   :  { %1302 = vmatpush2.bf16.msra.mxu1 %v1227_v4 }
 0x321   :  { %1343 = vmatpush2.bf16.msra.mxu0 %v1259_v5  ;;  %1303 = vmatprep.subr.bf16.mxu1 %v1226_v6 }
 0x322   :  { %1344 = vmatprep.subr.bf16.mxu0 %v1258_v7 }
 0x324   :  { %1304 = vmatpush2.bf16.msra.mxu1 %v1225_v8 }
 0x325   :  { %1345 = vmatpush2.bf16.msra.mxu0 %v1257_v9 }
 0x327   :  { %1306 = vmatmul.mubr.bf16.vlgmr.msra.gmra.mxu1 %v3796_v37 }
 0x328   :  { %1347 = vmatmul.mubr.bf16.vlgmr.msra.gmra.mxu0 %v3799_v17 }
 0x3e7   :  { %v1307_v13 = vpop.f32.mrf.mxu1 }
 0x3e8   :  { %v1348_v14 = vpop.f32.mrf.mxu0 }
 0x3e9   :  { %v1349_v15 = vadd.f32 %v1348_v14, %v1307_v13  ;;  %v1309_v24 = vpop.f32.mrf.mxu1  ;;  %v1390_v14 = vld [vmem:[#allocation23] sm:$0x3] }
 0x3ea   :  { %v1350_v25 = vpop.f32.mrf.mxu0 }
 0x3eb   :  { %v1367_v26 = vmul.f32 %v1360_v12, %v1349_v15  ;;  %v1351_v27 = vadd.f32 %v1350_v25, %v1309_v24  ;;  %v1311_v30 = vpop.f32.mrf.mxu1  ;;  %v1435_v12 = vrot.slane %v1389_v10, %v3741_v23  ;;  %v1454_v24 = vrot.slane %v1390_v14, %v3738_v21 }
 0x3ec   :  { %v1352_v34 = vpop.f32.mrf.mxu0 }
 0x3ed   :  { %v1381_v35 = vadd.f32 %v1374_v16, %v1367_v26  ;;  %v1368_v36 = vmul.f32 %v1364_v22, %v1351_v27  ;;  %v1312_v31 = vpop.f32.mrf.mxu1 }
 0x3ee   :  { %v1353_v38 = vpop.f32.mrf.mxu0 }
 0x3ef   :  { %vm1383_vm6 = vcmp.gt.f32.partialorder %v1381_v35, 0.0  ;;  %v1385_v18 = vmul.f32 0.2, %v1381_v35  ;;  %v1382_v33 = vadd.f32 %v1378_v29, %v1368_v36  ;;  %v1458_v29 = vrot.slane %v1390_v14, %v3741_v23 }
 0x3f1   :  { %v1387_v28 = vsel %vm1383_vm6, %v1381_v35, %v1385_v18  ;;  %vm1384_vm7 = vcmp.gt.f32.partialorder %v1382_v33, 0.0  ;;  %v1386_v40 = vmul.f32 0.2, %v1382_v33 }
 0x3f2   :  { %v1391_v41 = vrot.slane %v1387_v28, 4 }
 0x3f3   :  { %v1388_v42 = vsel %vm1384_vm7, %v1382_v33, %v1386_v40 }
 0x3f4   :  { %v1392_v32 = vadd.f32 %v1391_v41, %v1387_v28  ;;  %v1397_v43 = vrot.slane %v1388_v42, 4 }
 0x3f6   :  { %v1393_v44 = vrot.slane %v1392_v32, 2  ;;  %v1398_v20 = vadd.f32 %v1397_v43, %v1388_v42 }
 0x3f8   :  { %v1394_v45 = vadd.f32 %v1393_v44, %v1392_v32  ;;  %v1399_v46 = vrot.slane %v1398_v20, 2 }
 0x3fa   :  { %v1395_v47 = vrot.slane %v1394_v45, 1  ;;  %v1400_v48 = vadd.f32 %v1399_v46, %v1398_v20 }
 0x3fc   :  { %v1396_v49 = vadd.f32 %v1395_v47, %v1394_v45  ;;  %v1401_v50 = vrot.slane %v1400_v48, 1 }
 0x3fe   :  { %v1403_v51 = vmul.f32 0.125, %v1396_v49  ;;  %v1402_v52 = vadd.f32 %v1401_v50, %v1400_v48 }
 0x400   :  { %v1405_v53 = vsub.f32 %v1387_v28, %v1403_v51  ;;  %v1404_v54 = vmul.f32 0.125, %v1402_v52 }
 0x402   :  { %v1407_v55 = vmul.f32 %v1405_v53, %v1405_v53  ;;  %v1406_v56 = vsub.f32 %v1388_v42, %v1404_v54 }
 0x404   :  { %v1409_v57 = vrot.slane %v1407_v55, 4  ;;  %v1408_v58 = vmul.f32 %v1406_v56, %v1406_v56 }
 0x406   :  { %v1410_v59 = vadd.f32 %v1409_v57, %v1407_v55  ;;  %v1415_v60 = vrot.slane %v1408_v58, 4 }
 0x408   :  { %v1411_v61 = vrot.slane %v1410_v59, 2  ;;  %v1416_v62 = vadd.f32 %v1415_v60, %v1408_v58 }
 0x40a   :  { %v1412_v63 = vadd.f32 %v1411_v61, %v1410_v59  ;;  %v1417_v0 = vrot.slane %v1416_v62, 2 }
 0x40c   :  { %v1413_v1 = vrot.slane %v1412_v63, 1  ;;  %v1418_v2 = vadd.f32 %v1417_v0, %v1416_v62 }
 0x40e   :  { %v1414_v3 = vadd.f32 %v1413_v1, %v1412_v63  ;;  %v1419_v4 = vrot.slane %v1418_v2, 1 }
 0x410   :  { %v1421_v5 = vmul.f32 0.125, %v1414_v3  ;;  %v1420_v6 = vadd.f32 %v1419_v4, %v1418_v2 }
 0x412   :  { %v1423_v7 = vadd.f32 1e-05, %v1421_v5  ;;  %v1422_v8 = vmul.f32 0.125, %v1420_v6 }
 0x414   :  { %3061 = vrsqrt.f32 %v1423_v7  ;;  %v1424_v9 = vadd.f32 1e-05, %v1422_v8 }
 0x416   :  { %3063 = vrsqrt.f32 %v1424_v9 }
 0x421   :  { %v3062_v13 = vpop.eup %3061 }
 0x422   :  { %v1438_v15 = vmul.f32 %v3062_v13, %v1431_v11 }
 0x423   :  { %v3064_v16 = vpop.eup %3063 }
 0x424   :  { %v1443_v22 = vrot.slane %v1438_v15, %v3738_v21  ;;  %v1439_v25 = vmul.f32 %v3064_v16, %v1435_v12 }
 0x426   :  { %v1448_v26 = vmul.f32 %v1443_v22, %v1405_v53  ;;  %v1447_v27 = vrot.slane %v1439_v25, %v3738_v21 }
 0x428   :  { %v3825_v30 = vadd.f32 %v1454_v24, %v1448_v26  ;;  %v1449_v34 = vmul.f32 %v1447_v27, %v1406_v56 }
 0x42a   :  { %v3827_v35 = vadd.f32 %v1458_v29, %v1449_v34 }
 0x42b   :  { %3515 = dma.done.wait [#allocation7], 2048 }
 0x42c   :  { %3516 = vsyncadd [#allocation7], 4294965248  ;;  %v1468_v31 = vpack.c.bf16 %v3827_v35, %v3827_v35  ;;  %v3833_v38 = vld [vmem:[#allocation4] sm:$0xff]  ;;  %v3835_v18 = vld [vmem:[#allocation4 + $0x8] sm:$0xff] }
 0x42d   :  { %v3837_v33 = vld [vmem:[#allocation4 + $0x10] sm:$0xff]  ;;  %v3839_v28 = vld [vmem:[#allocation4 + $0x18] sm:$0xff]  ;;  %v3841_v40 = vld [vmem:[#allocation4 + $0x20] sm:$0xff]  ;;  %v1488_v44 = vunpack.c.h.s8.bf16 %v3835_v18 }
 0x42e   :  { %v3843_v41 = vld [vmem:[#allocation4 + $0x28] sm:$0xff]  ;;  %v3849_v20 = vld [vmem:[#allocation4 + $0x30] sm:$0xff]  ;;  %v3851_v45 = vld [vmem:[#allocation4 + $0x38] sm:$0xff]  ;;  %v1489_v47 = vunpack.c.l.s8.bf16 %v3837_v33  ;;  %v1490_v48 = vunpack.c.l.s8.bf16 %v3839_v28  ;;  %v1491_v49 = vunpack.c.h.s8.bf16 %v3837_v33  ;;  %v1492_v50 = vunpack.c.h.s8.bf16 %v3839_v28 }
 0x42f   :  { %v3853_v46 = vld [vmem:[#allocation4 + $0x40] sm:$0xff]  ;;  %v3859_v51 = vld [vmem:[#allocation4 + $0x48] sm:$0xff]  ;;  %v3861_v52 = vld [vmem:[#allocation4 + $0x50] sm:$0xff]  ;;  %v1493_v54 = vunpack.c.l.s8.bf16 %v3841_v40  ;;  %v1494_v55 = vunpack.c.l.s8.bf16 %v3843_v41  ;;  %v1495_v56 = vunpack.c.h.s8.bf16 %v3841_v40  ;;  %v1496_v57 = vunpack.c.h.s8.bf16 %v3843_v41 }
 0x430   :  { %v3863_v53 = vld [vmem:[#allocation4 + $0x58] sm:$0xff]  ;;  %v3869_v58 = vld [vmem:[#allocation4 + $0x60] sm:$0xff]  ;;  %v3871_v59 = vld [vmem:[#allocation4 + $0x68] sm:$0xff]  ;;  %v1497_v60 = vunpack.c.l.s8.bf16 %v3849_v20  ;;  %v1498_v61 = vunpack.c.l.s8.bf16 %v3851_v45  ;;  %v1499_v62 = vunpack.c.h.s8.bf16 %v3849_v20  ;;  %v1500_v63 = vunpack.c.h.s8.bf16 %v3851_v45 }
 0x431   :  { %v3877_v0 = vld [vmem:[#allocation4 + $0x70] sm:$0xff]  ;;  %v3879_v1 = vld [vmem:[#allocation4 + $0x78] sm:$0xff] }
 0x432   :  { %3517 = dma.done.wait [#allocation6 + $0x1], 4096 }
 0x433   :  { %3518 = vsyncadd [#allocation6 + $0x1], 4294963200  ;;  %1647 = vmatprep.mubr.bf16.mxu1 %v3801_v19  ;;  %1688 = vmatprep.mubr.bf16.mxu0 %v3803_v39  ;;  %v1526_v24 = vld [vmem:[#allocation3 + $0x138] sm:$0xff]  ;;  %v1525_v26 = vld [vmem:[#allocation3 + $0x130] sm:$0xff] }
 0x434   :  { %v1542_v25 = vld [vmem:[#allocation3 + $0x1b8] sm:$0xff]  ;;  %v1564_v27 = vunpack.c.l.s8.bf16 %v1526_v24  ;;  %v1566_v29 = vunpack.c.h.s8.bf16 %v1526_v24  ;;  %v1541_v2 = vld [vmem:[#allocation3 + $0x1b0] sm:$0xff]  ;;  %v1565_v3 = vunpack.c.h.s8.bf16 %v1525_v26  ;;  %v1524_v5 = vld [vmem:[#allocation3 + $0x128] sm:$0xff]  ;;  %v1563_v7 = vunpack.c.l.s8.bf16 %v1525_v26 }
 0x435   :  { %v1596_v34 = vunpack.c.l.s8.bf16 %v1542_v25  ;;  %v1598_v36 = vunpack.c.h.s8.bf16 %v1542_v25  ;;  %v1597_v4 = vunpack.c.h.s8.bf16 %v1541_v2  ;;  %v1540_v6 = vld [vmem:[#allocation3 + $0x1a8] sm:$0xff]  ;;  %v1595_v8 = vunpack.c.l.s8.bf16 %v1541_v2  ;;  %v1523_v11 = vld [vmem:[#allocation3 + $0x120] sm:$0xff] }
 0x436   :  { %1615 = vmatprep.subr.bf16.mxu1 %v1566_v29  ;;  %v1562_v9 = vunpack.c.h.s8.bf16 %v1524_v5  ;;  %v1594_v10 = vunpack.c.h.s8.bf16 %v1540_v6  ;;  %v1539_v12 = vld [vmem:[#allocation3 + $0x1a0] sm:$0xff]  ;;  %v1561_v24 = vunpack.c.h.s8.bf16 %v1523_v11  ;;  %v1560_v13 = vunpack.c.l.s8.bf16 %v1524_v5  ;;  %v1522_v29 = vld [vmem:[#allocation3 + $0x118] sm:$0xff] }
 0x437   :  { %1656 = vmatprep.subr.bf16.mxu0 %v1598_v36  ;;  %1616 = vmatpush1.bf16.msra.mxu1 %v1565_v3  ;;  %v1593_v25 = vunpack.c.h.s8.bf16 %v1539_v12  ;;  %v1592_v14 = vunpack.c.l.s8.bf16 %v1540_v6  ;;  %v1538_v36 = vld [vmem:[#allocation3 + $0x198] sm:$0xff]  ;;  %v1559_v2 = vunpack.c.l.s8.bf16 %v1523_v11  ;;  %v1591_v3 = vunpack.c.l.s8.bf16 %v1539_v12 }
 0x438   :  { %1657 = vmatpush1.bf16.msra.mxu0 %v1597_v4  ;;  %1617 = vmatprep.subr.bf16.mxu1 %v1564_v27  ;;  %v1558_v4 = vunpack.c.h.s8.bf16 %v1522_v29  ;;  %v1590_v26 = vunpack.c.h.s8.bf16 %v1538_v36  ;;  %v1521_v27 = vld [vmem:[#allocation3 + $0x110] sm:$0xff]  ;;  %v1556_v5 = vunpack.c.l.s8.bf16 %v1522_v29  ;;  %v1588_v6 = vunpack.c.l.s8.bf16 %v1538_v36 }
 0x439   :  { %1658 = vmatprep.subr.bf16.mxu0 %v1596_v34  ;;  %v1537_v34 = vld [vmem:[#allocation3 + $0x190] sm:$0xff]  ;;  %v1555_v11 = vunpack.c.l.s8.bf16 %v1521_v27 }
 0x43a   :  { %v1587_v12 = vunpack.c.l.s8.bf16 %v1537_v34 }
 0x43b   :  { %1618 = vmatpush1.bf16.msra.mxu1 %v1563_v7  ;;  %v1557_v7 = vunpack.c.h.s8.bf16 %v1521_v27 }
 0x43c   :  { %1659 = vmatpush1.bf16.msra.mxu0 %v1595_v8  ;;  %1619 = vmatprep.subr.bf16.mxu1 %v1562_v9  ;;  %v1589_v8 = vunpack.c.h.s8.bf16 %v1537_v34  ;;  %v1520_v9 = vld [vmem:[#allocation3 + $0x108] sm:$0xff] }
 0x43d   :  { %1660 = vmatprep.subr.bf16.mxu0 %v1594_v10  ;;  %v1536_v10 = vld [vmem:[#allocation3 + $0x188] sm:$0xff]  ;;  %v1552_v29 = vunpack.c.l.s8.bf16 %v1520_v9 }
 0x43e   :  { %v1584_v36 = vunpack.c.l.s8.bf16 %v1536_v10 }
 0x43f   :  { %1620 = vmatpush1.bf16.msra.mxu1 %v1561_v24  ;;  %v1519_v24 = vld [vmem:[#allocation3 + $0x100] sm:$0xff] }
 0x440   :  { %1661 = vmatpush1.bf16.msra.mxu0 %v1593_v25  ;;  %1621 = vmatprep.subr.bf16.mxu1 %v1560_v13  ;;  %v1554_v13 = vunpack.c.h.s8.bf16 %v1520_v9  ;;  %v1535_v25 = vld [vmem:[#allocation3 + $0x180] sm:$0xff]  ;;  %v1551_v27 = vunpack.c.l.s8.bf16 %v1519_v24 }
 0x441   :  { %1662 = vmatprep.subr.bf16.mxu0 %v1592_v14  ;;  %v1586_v14 = vunpack.c.h.s8.bf16 %v1536_v10  ;;  %v1583_v34 = vunpack.c.l.s8.bf16 %v1535_v25 }
 0x443   :  { %1622 = vmatpush1.bf16.msra.mxu1 %v1559_v2  ;;  %v1553_v2 = vunpack.c.h.s8.bf16 %v1519_v24 }
 0x444   :  { %1663 = vmatpush1.bf16.msra.mxu0 %v1591_v3  ;;  %1623 = vmatprep.subr.bf16.mxu1 %v1558_v4  ;;  %v1585_v3 = vunpack.c.h.s8.bf16 %v1535_v25  ;;  %v1534_v4 = vld [vmem:[#allocation3 + $0x178] sm:$0xff] }
 0x445   :  { %1664 = vmatprep.subr.bf16.mxu0 %v1590_v26  ;;  %v1550_v26 = vld [vmem:[#allocation3 + $0x1f8] sm:$0xff]  ;;  %v1580_v9 = vunpack.c.l.s8.bf16 %v1534_v4 }
 0x446   :  { %v1612_v10 = vunpack.c.l.s8.bf16 %v1550_v26 }
 0x447   :  { %1624 = vmatpush1.bf16.msra.mxu1 %v1557_v7  ;;  %v1582_v7 = vunpack.c.h.s8.bf16 %v1534_v4 }
 0x448   :  { %1665 = vmatpush1.bf16.msra.mxu0 %v1589_v8  ;;  %1625 = vmatprep.subr.bf16.mxu1 %v1556_v5  ;;  %v1614_v8 = vunpack.c.h.s8.bf16 %v1550_v26  ;;  %v1533_v5 = vld [vmem:[#allocation3 + $0x170] sm:$0xff] }
 0x449   :  { %1666 = vmatprep.subr.bf16.mxu0 %v1588_v6  ;;  %v1549_v6 = vld [vmem:[#allocation3 + $0x1f0] sm:$0xff]  ;;  %v1579_v24 = vunpack.c.l.s8.bf16 %v1533_v5 }
 0x44a   :  { %v1611_v25 = vunpack.c.l.s8.bf16 %v1549_v6 }
 0x44b   :  { %1626 = vmatpush1.bf16.msra.mxu1 %v1555_v11  ;;  %v1581_v11 = vunpack.c.h.s8.bf16 %v1533_v5 }
 0x44c   :  { %1667 = vmatpush1.bf16.msra.mxu0 %v1587_v12  ;;  %1627 = vmatprep.subr.bf16.mxu1 %v1554_v13  ;;  %v1613_v12 = vunpack.c.h.s8.bf16 %v1549_v6  ;;  %v1532_v13 = vld [vmem:[#allocation3 + $0x168] sm:$0xff] }
 0x44d   :  { %1668 = vmatprep.subr.bf16.mxu0 %v1586_v14  ;;  %v1548_v14 = vld [vmem:[#allocation3 + $0x1e8] sm:$0xff]  ;;  %v1576_v4 = vunpack.c.l.s8.bf16 %v1532_v13 }
 0x44e   :  { %v1608_v26 = vunpack.c.l.s8.bf16 %v1548_v14 }
 0x44f   :  { %1628 = vmatpush1.bf16.msra.mxu1 %v1553_v2  ;;  %v1578_v2 = vunpack.c.h.s8.bf16 %v1532_v13 }
 0x450   :  { %1669 = vmatpush1.bf16.msra.mxu0 %v1585_v3  ;;  %1629 = vmatprep.subr.bf16.mxu1 %v1552_v29  ;;  %v1610_v3 = vunpack.c.h.s8.bf16 %v1548_v14  ;;  %v1531_v29 = vld [vmem:[#allocation3 + $0x160] sm:$0xff] }
 0x451   :  { %1670 = vmatprep.subr.bf16.mxu0 %v1584_v36  ;;  %v1547_v36 = vld [vmem:[#allocation3 + $0x1e0] sm:$0xff]  ;;  %v1575_v5 = vunpack.c.l.s8.bf16 %v1531_v29 }
 0x452   :  { %v1607_v6 = vunpack.c.l.s8.bf16 %v1547_v36 }
 0x453   :  { %1630 = vmatpush1.bf16.msra.mxu1 %v1551_v27  ;;  %v1577_v27 = vunpack.c.h.s8.bf16 %v1531_v29 }
 0x454   :  { %1671 = vmatpush1.bf16.msra.mxu0 %v1583_v34  ;;  %1631 = vmatprep.subr.bf16.mxu1 %v1582_v7  ;;  %v1609_v34 = vunpack.c.h.s8.bf16 %v1547_v36  ;;  %v1530_v7 = vld [vmem:[#allocation3 + $0x158] sm:$0xff] }
 0x455   :  { %1672 = vmatprep.subr.bf16.mxu0 %v1614_v8  ;;  %v1546_v8 = vld [vmem:[#allocation3 + $0x1d8] sm:$0xff]  ;;  %v1572_v13 = vunpack.c.l.s8.bf16 %v1530_v7 }
 0x456   :  { %v1604_v14 = vunpack.c.l.s8.bf16 %v1546_v8 }
 0x457   :  { %1632 = vmatpush2.bf16.msra.mxu1 %v1581_v11  ;;  %v1574_v11 = vunpack.c.h.s8.bf16 %v1530_v7 }
 0x458   :  { %1673 = vmatpush2.bf16.msra.mxu0 %v1613_v12  ;;  %1633 = vmatprep.subr.bf16.mxu1 %v1580_v9  ;;  %v1606_v12 = vunpack.c.h.s8.bf16 %v1546_v8  ;;  %v1529_v9 = vld [vmem:[#allocation3 + $0x150] sm:$0xff] }
 0x459   :  { %1674 = vmatprep.subr.bf16.mxu0 %v1612_v10  ;;  %v1545_v10 = vld [vmem:[#allocation3 + $0x1d0] sm:$0xff]  ;;  %v1571_v29 = vunpack.c.l.s8.bf16 %v1529_v9 }
 0x45a   :  { %v1603_v36 = vunpack.c.l.s8.bf16 %v1545_v10 }
 0x45b   :  { %1634 = vmatpush2.bf16.msra.mxu1 %v1579_v24  ;;  %v1573_v24 = vunpack.c.h.s8.bf16 %v1529_v9  ;;  %v1697_v9 = vld [vmem:[%s4074_s10 + $0x2] sm:$0x3] }
 0x45c   :  { %1675 = vmatpush2.bf16.msra.mxu0 %v1611_v25  ;;  %1635 = vmatprep.subr.bf16.mxu1 %v1578_v2  ;;  %v1605_v25 = vunpack.c.h.s8.bf16 %v1545_v10  ;;  %v1528_v2 = vld [vmem:[#allocation3 + $0x148] sm:$0xff]  ;;  %v1711_v10 = vld [vmem:[%s4075_s11 + $0x2] sm:$0x3] }
 0x45d   :  { %1676 = vmatprep.subr.bf16.mxu0 %v1610_v3  ;;  %v1544_v3 = vld [vmem:[#allocation3 + $0x1c8] sm:$0xff]  ;;  %v1568_v7 = vunpack.c.l.s8.bf16 %v1528_v2 }
 0x45e   :  { %v1600_v8 = vunpack.c.l.s8.bf16 %v1544_v3 }
 0x45f   :  { %1636 = vmatpush2.bf16.msra.mxu1 %v1577_v27  ;;  %v1570_v27 = vunpack.c.h.s8.bf16 %v1528_v2  ;;  %v1716_v2 = vrot.slane %v1711_v10, %v3738_v21 }
 0x460   :  { %1677 = vmatpush2.bf16.msra.mxu0 %v1609_v34  ;;  %1637 = vmatprep.subr.bf16.mxu1 %v1576_v4  ;;  %v1602_v34 = vunpack.c.h.s8.bf16 %v1544_v3  ;;  %v1527_v4 = vld [vmem:[#allocation3 + $0x140] sm:$0xff]  ;;  %v1706_v3 = vrot.slane %v1697_v9, %v3741_v23 }
 0x461   :  { %1678 = vmatprep.subr.bf16.mxu0 %v1608_v26  ;;  %v1543_v26 = vld [vmem:[#allocation3 + $0x1c0] sm:$0xff] }
 0x463   :  { %1638 = vmatpush2.bf16.msra.mxu1 %v1575_v5  ;;  %v1569_v5 = vunpack.c.h.s8.bf16 %v1527_v4 }
 0x464   :  { %1679 = vmatpush2.bf16.msra.mxu0 %v1607_v6  ;;  %1639 = vmatprep.subr.bf16.mxu1 %v1574_v11  ;;  %v1601_v6 = vunpack.c.h.s8.bf16 %v1543_v26  ;;  %v1567_v11 = vunpack.c.l.s8.bf16 %v1527_v4  ;;  %v1720_v4 = vrot.slane %v1711_v10, %v3741_v23 }
 0x465   :  { %1680 = vmatprep.subr.bf16.mxu0 %v1606_v12  ;;  %v1599_v12 = vunpack.c.l.s8.bf16 %v1543_v26 }
 0x467   :  { %1640 = vmatpush2.bf16.msra.mxu1 %v1573_v24  ;;  %v1702_v24 = vrot.slane %v1697_v9, %v3738_v21 }
 0x468   :  { %1681 = vmatpush2.bf16.msra.mxu0 %v1605_v25  ;;  %1641 = vmatprep.subr.bf16.mxu1 %v1572_v13 }
 0x469   :  { %1682 = vmatprep.subr.bf16.mxu0 %v1604_v14 }
 0x46b   :  { %1642 = vmatpush2.bf16.msra.mxu1 %v1571_v29 }
 0x46c   :  { %1683 = vmatpush2.bf16.msra.mxu0 %v1603_v36  ;;  %1643 = vmatprep.subr.bf16.mxu1 %v1570_v27 }
 0x46d   :  { %1684 = vmatprep.subr.bf16.mxu0 %v1602_v34 }
 0x46f   :  { %1644 = vmatpush2.bf16.msra.mxu1 %v1569_v5 }
 0x470   :  { %1685 = vmatpush2.bf16.msra.mxu0 %v1601_v6  ;;  %1645 = vmatprep.subr.bf16.mxu1 %v1568_v7 }
 0x471   :  { %1686 = vmatprep.subr.bf16.mxu0 %v1600_v8 }
 0x473   :  { %1646 = vmatpush2.bf16.msra.mxu1 %v1567_v11 }
 0x474   :  { %1687 = vmatpush2.bf16.msra.mxu0 %v1599_v12 }
 0x476   :  { %1648 = vmatmul.mubr.bf16.vlgmr.msra.gmra.mxu1 %v3796_v37 }
 0x477   :  { %1689 = vmatmul.mubr.bf16.vlgmr.msra.gmra.mxu0 %v3799_v17 }
 0x536   :  { %v1649_v25 = vpop.f32.mrf.mxu1 }
 0x537   :  { %v1690_v13 = vpop.f32.mrf.mxu0 }
 0x538   :  { %v1691_v14 = vadd.f32 %v1690_v13, %v1649_v25  ;;  %v1651_v29 = vpop.f32.mrf.mxu1 }
 0x539   :  { %v1692_v36 = vpop.f32.mrf.mxu0 }
 0x53a   :  { %v1709_v27 = vmul.f32 %v1702_v24, %v1691_v14  ;;  %v1693_v34 = vadd.f32 %v1692_v36, %v1651_v29  ;;  %v1653_v26 = vpop.f32.mrf.mxu1 }
 0x53b   :  { %v1694_v5 = vpop.f32.mrf.mxu0 }
 0x53c   :  { %v1723_v6 = vadd.f32 %v1716_v2, %v1709_v27  ;;  %v1710_v7 = vmul.f32 %v1706_v3, %v1693_v34  ;;  %v1654_v8 = vpop.f32.mrf.mxu1 }
 0x53d   :  { %v1695_v11 = vpop.f32.mrf.mxu0 }
 0x53e   :  { %vm1725_vm8 = vcmp.gt.f32.partialorder %v1723_v6, 0.0  ;;  %v1727_v12 = vmul.f32 0.2, %v1723_v6  ;;  %v1724_v15 = vadd.f32 %v1720_v4, %v1710_v7 }
 0x540   :  { %v1729_v25 = vsel %vm1725_vm8, %v1723_v6, %v1727_v12  ;;  %vm1726_vm9 = vcmp.gt.f32.partialorder %v1724_v15, 0.0  ;;  %v1728_v13 = vmul.f32 0.2, %v1724_v15 }
 0x541   :  { %v1733_v16 = vrot.slane %v1729_v25, 4 }
 0x542   :  { %v1730_v9 = vsel %vm1726_vm9, %v1724_v15, %v1728_v13 }
 0x543   :  { %v1734_v22 = vadd.f32 %v1733_v16, %v1729_v25  ;;  %v1739_v42 = vrot.slane %v1730_v9, 4 }
 0x545   :  { %v1735_v24 = vrot.slane %v1734_v22, 2  ;;  %v1740_v14 = vadd.f32 %v1739_v42, %v1730_v9 }
 0x547   :  { %v1736_v29 = vadd.f32 %v1735_v24, %v1734_v22  ;;  %v1741_v10 = vrot.slane %v1740_v14, 2 }
 0x549   :  { %v1737_v36 = vrot.slane %v1736_v29, 1  ;;  %v1742_v26 = vadd.f32 %v1741_v10, %v1740_v14 }
 0x54b   :  { %v1738_v2 = vadd.f32 %v1737_v36, %v1736_v29  ;;  %v1743_v3 = vrot.slane %v1742_v26, 1 }
 0x54d   :  { %v1745_v27 = vmul.f32 0.125, %v1738_v2  ;;  %v1744_v34 = vadd.f32 %v1743_v3, %v1742_v26 }
 0x54f   :  { %v1747_v5 = vsub.f32 %v1729_v25, %v1745_v27  ;;  %v1746_v8 = vmul.f32 0.125, %v1744_v34  ;;  %v1732_v34 = vld [vmem:[#allocation23 + $0x2] sm:$0x3] }
 0x551   :  { %v1749_v4 = vmul.f32 %v1747_v5, %v1747_v5  ;;  %v1748_v6 = vsub.f32 %v1730_v9, %v1746_v8  ;;  %v1731_v9 = vld [vmem:[#allocation22 + $0x2] sm:$0x3] }
 0x552   :  { %v1773_v2 = vrot.slane %v1731_v9, %v3738_v21  ;;  %v1777_v3 = vrot.slane %v1731_v9, %v3741_v23 }
 0x553   :  { %v1751_v7 = vrot.slane %v1749_v4, 4  ;;  %v1750_v11 = vmul.f32 %v1748_v6, %v1748_v6 }
 0x555   :  { %v1752_v12 = vadd.f32 %v1751_v7, %v1749_v4  ;;  %v1757_v15 = vrot.slane %v1750_v11, 4 }
 0x557   :  { %v1753_v16 = vrot.slane %v1752_v12, 2  ;;  %v1758_v13 = vadd.f32 %v1757_v15, %v1750_v11  ;;  %v1800_v15 = vrot.slane %v1732_v34, %v3741_v23 }
 0x559   :  { %v1754_v32 = vadd.f32 %v1753_v16, %v1752_v12  ;;  %v1759_v42 = vrot.slane %v1758_v13, 2 }
 0x55b   :  { %v1755_v22 = vrot.slane %v1754_v32, 1  ;;  %v1760_v24 = vadd.f32 %v1759_v42, %v1758_v13 }
 0x55d   :  { %v1756_v43 = vadd.f32 %v1755_v22, %v1754_v32  ;;  %v1761_v14 = vrot.slane %v1760_v24, 1  ;;  %v1796_v32 = vrot.slane %v1732_v34, %v3738_v21 }
 0x55f   :  { %v1763_v29 = vmul.f32 0.125, %v1756_v43  ;;  %v1762_v10 = vadd.f32 %v1761_v14, %v1760_v24 }
 0x561   :  { %v1765_v36 = vadd.f32 1e-05, %v1763_v29  ;;  %v1764_v26 = vmul.f32 0.125, %v1762_v10 }
 0x563   :  { %3065 = vrsqrt.f32 %v1765_v36  ;;  %v1766_v25 = vadd.f32 1e-05, %v1764_v26 }
 0x565   :  { %3067 = vrsqrt.f32 %v1766_v25 }
 0x570   :  { %v3066_v27 = vpop.eup %3065 }
 0x571   :  { %v1780_v8 = vmul.f32 %v3066_v27, %v1773_v2 }
 0x572   :  { %v3068_v4 = vpop.eup %3067 }
 0x573   :  { %v1785_v7 = vrot.slane %v1780_v8, %v3738_v21  ;;  %v1781_v43 = vmul.f32 %v3068_v4, %v1777_v3 }
 0x575   :  { %v1790_v11 = vmul.f32 %v1785_v7, %v1747_v5  ;;  %v1789_v12 = vrot.slane %v1781_v43, %v3738_v21 }
 0x577   :  { %v3917_v16 = vadd.f32 %v1796_v32, %v1790_v11  ;;  %v1791_v13 = vmul.f32 %v1789_v12, %v1748_v6 }
 0x579   :  { %v1804_v42 = vadd.f32 %v1800_v15, %v1791_v13 }
 0x57a   :  { %3519 = dma.done.wait [#allocation7 + $0x1], 2048 }
 0x57b   :  { %3520 = vsyncadd [#allocation7 + $0x1], 4294965248  ;;  %1898 = vmatprep.subr.bf16.mxu0 %v1500_v63  ;;  %1930 = vmatprep.mubr.bf16.mxu0 %v1468_v31  ;;  %v1808_v22 = vpack.c.bf16 %v1804_v42, %v1804_v42  ;;  %v1816_v5 = vld [vmem:[#allocation4 + $0xb8] sm:$0xff]  ;;  %v1815_v63 = vld [vmem:[#allocation4 + $0xb0] sm:$0xff]  ;;  %v4090_v36 = vunpack.c.h.s8.bf16 %v3877_v0  ;;  %v4091_v26 = vunpack.c.l.s8.bf16 %v3879_v1  ;;  %v4092_v2 = vunpack.c.l.s8.bf16 %v3877_v0 }
 0x57c   :  { %1899 = vmatpush1.bf16.msra.mxu0 %v1499_v62  ;;  %v1838_v6 = vunpack.c.l.s8.bf16 %v1816_v5  ;;  %v1840_v24 = vunpack.c.h.s8.bf16 %v1816_v5  ;;  %v1839_v35 = vunpack.c.h.s8.bf16 %v1815_v63  ;;  %v1814_v31 = vld [vmem:[#allocation4 + $0xa8] sm:$0xff]  ;;  %v1837_v45 = vunpack.c.l.s8.bf16 %v1815_v63  ;;  %v1812_v41 = vld [vmem:[#allocation4 + $0x98] sm:$0xff]  ;;  %v1811_v40 = vld [vmem:[#allocation4 + $0x90] sm:$0xff] }
 0x57d   :  { %1900 = vmatprep.subr.bf16.mxu0 %v1498_v61  ;;  %1889 = vmatprep.mubr.bf16.mxu1 %v1808_v22  ;;  %v1836_v20 = vunpack.c.h.s8.bf16 %v1814_v31  ;;  %v1832_v61 = vunpack.c.h.s8.bf16 %v1812_v41  ;;  %v1810_v28 = vld [vmem:[#allocation4 + $0x88] sm:$0xff]  ;;  %v1829_v62 = vunpack.c.l.s8.bf16 %v1811_v40  ;;  %v1809_v33 = vld [vmem:[#allocation4 + $0x80] sm:$0xff]  ;;  %v4093_v3 = vunpack.c.h.s8.bf16 %v3871_v59 }
 0x57e   :  { %1857 = vmatprep.subr.bf16.mxu1 %v1840_v24  ;;  %v1828_v14 = vunpack.c.h.s8.bf16 %v1810_v28  ;;  %v1827_v29 = vunpack.c.h.s8.bf16 %v1809_v33  ;;  %v1826_v10 = vunpack.c.l.s8.bf16 %v1810_v28  ;;  %v1825_v25 = vunpack.c.l.s8.bf16 %v1809_v33  ;;  %v1821_v0 = vld [vmem:[#allocation4 + $0xe0] sm:$0xff] }
 0x57f   :  { %1858 = vmatpush1.bf16.msra.mxu1 %v1839_v35  ;;  %v4094_v8 = vunpack.c.h.s8.bf16 %v3869_v58  ;;  %v4095_v4 = vunpack.c.l.s8.bf16 %v3871_v59  ;;  %v4096_v43 = vunpack.c.l.s8.bf16 %v3869_v58  ;;  %v4097_v11 = vunpack.c.h.s8.bf16 %v3863_v53  ;;  %v1820_v59 = vld [vmem:[#allocation4 + $0xd8] sm:$0xff]  ;;  %v1819_v58 = vld [vmem:[#allocation4 + $0xd0] sm:$0xff] }
 0x580   :  { %1901 = vmatpush1.bf16.msra.mxu0 %v1497_v60  ;;  %1859 = vmatprep.subr.bf16.mxu1 %v1838_v6  ;;  %v1813_v60 = vld [vmem:[#allocation4 + $0xa0] sm:$0xff]  ;;  %v1851_v12 = vunpack.c.h.s8.bf16 %v1821_v0  ;;  %v4098_v13 = vunpack.c.h.s8.bf16 %v3861_v52  ;;  %v4099_v42 = vunpack.c.l.s8.bf16 %v3863_v53  ;;  %v1849_v22 = vunpack.c.l.s8.bf16 %v1821_v0  ;;  %v1818_v53 = vld [vmem:[#allocation4 + $0xc8] sm:$0xff] }
 0x581   :  { %1902 = vmatprep.subr.bf16.mxu0 %v1496_v57  ;;  %v1835_v57 = vunpack.c.h.s8.bf16 %v1813_v60  ;;  %v1848_v5 = vunpack.c.h.s8.bf16 %v1820_v59  ;;  %v4100_v63 = vunpack.c.l.s8.bf16 %v3861_v52  ;;  %v4101_v6 = vunpack.c.h.s8.bf16 %v3859_v51  ;;  %v1817_v52 = vld [vmem:[#allocation4 + $0xc0] sm:$0xff] }
 0x582   :  { %v1847_v24 = vunpack.c.h.s8.bf16 %v1819_v58  ;;  %v1846_v35 = vunpack.c.l.s8.bf16 %v1820_v59 }
 0x583   :  { %1860 = vmatpush1.bf16.msra.mxu1 %v1837_v45  ;;  %v4103_v45 = vunpack.c.l.s8.bf16 %v3859_v51  ;;  %v1807_v51 = vpack.c.bf16 %v3917_v16, %v3917_v16 }
 0x584   :  { %1903 = vmatpush1.bf16.msra.mxu0 %v1495_v56  ;;  %1861 = vmatprep.subr.bf16.mxu1 %v1836_v20  ;;  %v1834_v56 = vunpack.c.l.s8.bf16 %v1814_v31  ;;  %v4102_v31 = vunpack.c.h.s8.bf16 %v3853_v46  ;;  %v1845_v20 = vunpack.c.l.s8.bf16 %v1819_v58 }
 0x585   :  { %1904 = vmatprep.subr.bf16.mxu0 %v1494_v55  ;;  %v1833_v55 = vunpack.c.l.s8.bf16 %v1813_v60  ;;  %v1844_v60 = vunpack.c.h.s8.bf16 %v1818_v53 }
 0x587   :  { %1862 = vmatpush1.bf16.msra.mxu1 %v1835_v57  ;;  %v4104_v57 = vunpack.c.l.s8.bf16 %v3853_v46 }
 0x588   :  { %1905 = vmatpush1.bf16.msra.mxu0 %v1493_v54  ;;  %1863 = vmatprep.subr.bf16.mxu1 %v1834_v56  ;;  %v1830_v54 = vunpack.c.l.s8.bf16 %v1812_v41  ;;  %v1843_v56 = vunpack.c.h.s8.bf16 %v1817_v52  ;;  %v4105_v41 = vpack.c.bf16 %v3825_v30, %v3825_v30 }
 0x589   :  { %1906 = vmatprep.subr.bf16.mxu0 %v1492_v50  ;;  %v1831_v50 = vunpack.c.h.s8.bf16 %v1811_v40 }
 0x58b   :  { %1864 = vmatpush1.bf16.msra.mxu1 %v1833_v55  ;;  %v1842_v55 = vunpack.c.l.s8.bf16 %v1818_v53 }
 0x58c   :  { %1907 = vmatpush1.bf16.msra.mxu0 %v1491_v49  ;;  %1865 = vmatprep.subr.bf16.mxu1 %v1832_v61  ;;  %v4086_v49 = vunpack.c.h.s8.bf16 %v3833_v38  ;;  %v1841_v61 = vunpack.c.l.s8.bf16 %v1817_v52 }
 0x58d   :  { %1908 = vmatprep.subr.bf16.mxu0 %v1490_v48  ;;  %v4087_v48 = vunpack.c.l.s8.bf16 %v3835_v18  ;;  %v1824_v18 = vld [vmem:[#allocation4 + $0xf8] sm:$0xff] }
 0x58e   :  { %v1856_v9 = vunpack.c.h.s8.bf16 %v1824_v18  ;;  %v1854_v34 = vunpack.c.l.s8.bf16 %v1824_v18 }
 0x58f   :  { %1866 = vmatpush1.bf16.msra.mxu1 %v1831_v50 }
 0x590   :  { %1909 = vmatpush1.bf16.msra.mxu0 %v1489_v47  ;;  %1867 = vmatprep.subr.bf16.mxu1 %v1830_v54  ;;  %v4088_v47 = vunpack.c.l.s8.bf16 %v3833_v38  ;;  %v1823_v38 = vld [vmem:[#allocation4 + $0xf0] sm:$0xff] }
 0x591   :  { %1910 = vmatprep.subr.bf16.mxu0 %v1488_v44  ;;  %v4089_v44 = vunpack.c.h.s8.bf16 %v3879_v1  ;;  %v1855_v27 = vunpack.c.h.s8.bf16 %v1823_v38  ;;  %v1822_v1 = vld [vmem:[#allocation4 + $0xe8] sm:$0xff]  ;;  %v1853_v7 = vunpack.c.l.s8.bf16 %v1823_v38 }
 0x592   :  { %v1852_v32 = vunpack.c.h.s8.bf16 %v1822_v1  ;;  %v1850_v15 = vunpack.c.l.s8.bf16 %v1822_v1 }
 0x593   :  { %1868 = vmatpush1.bf16.msra.mxu1 %v1829_v62 }
 0x594   :  { %1911 = vmatpush1.bf16.msra.mxu0 %v4086_v49  ;;  %1869 = vmatprep.subr.bf16.mxu1 %v1828_v14 }
 0x595   :  { %1912 = vmatprep.subr.bf16.mxu0 %v4087_v48 }
 0x597   :  { %1870 = vmatpush1.bf16.msra.mxu1 %v1827_v29 }
 0x598   :  { %1913 = vmatpush1.bf16.msra.mxu0 %v4088_v47  ;;  %1871 = vmatprep.subr.bf16.mxu1 %v1826_v10 }
 0x599   :  { %1914 = vmatprep.subr.bf16.mxu0 %v4089_v44 }
 0x59b   :  { %1872 = vmatpush1.bf16.msra.mxu1 %v1825_v25 }
 0x59c   :  { %1915 = vmatpush2.bf16.msra.mxu0 %v4090_v36  ;;  %1873 = vmatprep.subr.bf16.mxu1 %v1856_v9 }
 0x59d   :  { %1916 = vmatprep.subr.bf16.mxu0 %v4091_v26 }
 0x59f   :  { %1874 = vmatpush2.bf16.msra.mxu1 %v1855_v27 }
 0x5a0   :  { %1917 = vmatpush2.bf16.msra.mxu0 %v4092_v2  ;;  %1875 = vmatprep.subr.bf16.mxu1 %v1854_v34 }
 0x5a1   :  { %1918 = vmatprep.subr.bf16.mxu0 %v4093_v3 }
 0x5a3   :  { %1876 = vmatpush2.bf16.msra.mxu1 %v1853_v7 }
 0x5a4   :  { %1919 = vmatpush2.bf16.msra.mxu0 %v4094_v8  ;;  %1877 = vmatprep.subr.bf16.mxu1 %v1852_v32 }
 0x5a5   :  { %1920 = vmatprep.subr.bf16.mxu0 %v4095_v4 }
 0x5a7   :  { %1878 = vmatpush2.bf16.msra.mxu1 %v1851_v12 }
 0x5a8   :  { %1921 = vmatpush2.bf16.msra.mxu0 %v4096_v43  ;;  %1879 = vmatprep.subr.bf16.mxu1 %v1850_v15 }
 0x5a9   :  { %1922 = vmatprep.subr.bf16.mxu0 %v4097_v11 }
 0x5ab   :  { %1880 = vmatpush2.bf16.msra.mxu1 %v1849_v22 }
 0x5ac   :  { %1923 = vmatpush2.bf16.msra.mxu0 %v4098_v13  ;;  %1881 = vmatprep.subr.bf16.mxu1 %v1848_v5 }
 0x5ad   :  { %1924 = vmatprep.subr.bf16.mxu0 %v4099_v42 }
 0x5af   :  { %1882 = vmatpush2.bf16.msra.mxu1 %v1847_v24 }
 0x5b0   :  { %1925 = vmatpush2.bf16.msra.mxu0 %v4100_v63  ;;  %1883 = vmatprep.subr.bf16.mxu1 %v1846_v35 }
 0x5b1   :  { %1926 = vmatprep.subr.bf16.mxu0 %v4101_v6 }
 0x5b3   :  { %1884 = vmatpush2.bf16.msra.mxu1 %v1845_v20 }
 0x5b4   :  { %1927 = vmatpush2.bf16.msra.mxu0 %v4102_v31  ;;  %1885 = vmatprep.subr.bf16.mxu1 %v1844_v60 }
 0x5b5   :  { %1928 = vmatprep.subr.bf16.mxu0 %v4103_v45 }
 0x5b7   :  { %1886 = vmatpush2.bf16.msra.mxu1 %v1843_v56 }
 0x5b8   :  { %1929 = vmatpush2.bf16.msra.mxu0 %v4104_v57  ;;  %1887 = vmatprep.subr.bf16.mxu1 %v1842_v55 }
 0x5bb   :  { %1931 = vmatmul.mubr.bf16.vlgmr.msra.gmra.mxu0 %v4105_v41  ;;  %1888 = vmatpush2.bf16.msra.mxu1 %v1841_v61 }
 0x5be   :  { %1890 = vmatmul.mubr.bf16.vlgmr.msra.gmra.mxu1 %v1807_v51 }
 0x67b   :  { %v1932_v40 = vpop.f32.mrf.mxu0 }
 0x67d   :  { %v1934_v50 = vpop.f32.mrf.mxu0 }
 0x67e   :  { %v1891_v49 = vpop.f32.mrf.mxu1 }
 0x67f   :  { %v1936_v46 = vpop.f32.mrf.mxu0  ;;  %v3991_v28 = vadd.f32 %v1932_v40, %v1891_v49 }
 0x680   :  { %v1893_v48 = vpop.f32.mrf.mxu1 }
 0x681   :  { %v1937_v54 = vpop.f32.mrf.mxu0  ;;  %v3993_v62 = vadd.f32 %v1934_v50, %v1893_v48 }
 0x682   :  { %v1895_v30 = vpop.f32.mrf.mxu1 }
 0x684   :  { %v1896_v14 = vpop.f32.mrf.mxu1 }
 0x685   :  { %3521 = dma.done.wait [#allocation6 + $0x2], 4096 }
 0x686   :  { %3522 = vsyncadd [#allocation6 + $0x2], 4294963200  ;;  %2069 = vmatprep.mubr.bf16.mxu1 %v3801_v19  ;;  %2110 = vmatprep.mubr.bf16.mxu0 %v3803_v39  ;;  %v1948_v16 = vld [vmem:[#allocation3 + $0x238] sm:$0xff]  ;;  %v1947_v47 = vld [vmem:[#allocation3 + $0x230] sm:$0xff] }
 0x687   :  { %v1964_v33 = vld [vmem:[#allocation3 + $0x2b8] sm:$0xff]  ;;  %v1986_v44 = vunpack.c.l.s8.bf16 %v1948_v16  ;;  %v1988_v29 = vunpack.c.h.s8.bf16 %v1948_v16  ;;  %v1963_v18 = vld [vmem:[#allocation3 + $0x2b0] sm:$0xff]  ;;  %v1987_v26 = vunpack.c.h.s8.bf16 %v1947_v47  ;;  %v1946_v9 = vld [vmem:[#allocation3 + $0x228] sm:$0xff]  ;;  %v1985_v2 = vunpack.c.l.s8.bf16 %v1947_v47 }
 0x688   :  { %v2018_v10 = vunpack.c.l.s8.bf16 %v1964_v33  ;;  %v2020_v36 = vunpack.c.h.s8.bf16 %v1964_v33  ;;  %v2019_v25 = vunpack.c.h.s8.bf16 %v1963_v18  ;;  %v1962_v38 = vld [vmem:[#allocation3 + $0x2a8] sm:$0xff]  ;;  %v2017_v3 = vunpack.c.l.s8.bf16 %v1963_v18  ;;  %v1945_v8 = vld [vmem:[#allocation3 + $0x220] sm:$0xff]  ;;  %v1944_v43 = vld [vmem:[#allocation3 + $0x218] sm:$0xff] }
 0x689   :  { %2037 = vmatprep.subr.bf16.mxu1 %v1988_v29  ;;  %v1984_v27 = vunpack.c.h.s8.bf16 %v1946_v9  ;;  %v2016_v34 = vunpack.c.h.s8.bf16 %v1962_v38  ;;  %v1961_v1 = vld [vmem:[#allocation3 + $0x2a0] sm:$0xff]  ;;  %v1983_v4 = vunpack.c.h.s8.bf16 %v1945_v8  ;;  %v1982_v32 = vunpack.c.l.s8.bf16 %v1946_v9  ;;  %v1960_v11 = vld [vmem:[#allocation3 + $0x298] sm:$0xff]  ;;  %v1943_v42 = vld [vmem:[#allocation3 + $0x210] sm:$0xff] }
 0x68a   :  { %2078 = vmatprep.subr.bf16.mxu0 %v2020_v36  ;;  %2038 = vmatpush1.bf16.msra.mxu1 %v1987_v26  ;;  %v2015_v7 = vunpack.c.h.s8.bf16 %v1961_v1  ;;  %v2014_v0 = vunpack.c.l.s8.bf16 %v1962_v38  ;;  %v1981_v12 = vunpack.c.l.s8.bf16 %v1945_v8  ;;  %v2013_v15 = vunpack.c.l.s8.bf16 %v1961_v1  ;;  %v1959_v22 = vld [vmem:[#allocation3 + $0x290] sm:$0xff]  ;;  %v1942_v24 = vld [vmem:[#allocation3 + $0x208] sm:$0xff]  ;;  %v1941_v60 = vld [vmem:[#allocation3 + $0x200] sm:$0xff] }
 0x68b   :  { %2079 = vmatpush1.bf16.msra.mxu0 %v2019_v25  ;;  %2039 = vmatprep.subr.bf16.mxu1 %v1986_v44  ;;  %v1980_v13 = vunpack.c.h.s8.bf16 %v1944_v43  ;;  %v2012_v59 = vunpack.c.h.s8.bf16 %v1960_v11  ;;  %v1979_v5 = vunpack.c.h.s8.bf16 %v1943_v42  ;;  %v2011_v58 = vunpack.c.h.s8.bf16 %v1959_v22  ;;  %v1958_v35 = vld [vmem:[#allocation3 + $0x288] sm:$0xff]  ;;  %v1957_v52 = vld [vmem:[#allocation3 + $0x280] sm:$0xff]  ;;  %v1956_v61 = vld [vmem:[#allocation3 + $0x278] sm:$0xff] }
 0x68c   :  { %2080 = vmatprep.subr.bf16.mxu0 %v2018_v10  ;;  %v1978_v63 = vunpack.c.l.s8.bf16 %v1944_v43  ;;  %v2010_v6 = vunpack.c.l.s8.bf16 %v1960_v11  ;;  %v1977_v31 = vunpack.c.l.s8.bf16 %v1943_v42  ;;  %v2009_v53 = vunpack.c.l.s8.bf16 %v1959_v22  ;;  %v1972_v51 = vld [vmem:[#allocation3 + $0x2f8] sm:$0xff]  ;;  %v1955_v49 = vld [vmem:[#allocation3 + $0x270] sm:$0xff]  ;;  %v1954_v47 = vld [vmem:[#allocation3 + $0x268] sm:$0xff] }
 0x68d   :  { %v1976_v45 = vunpack.c.h.s8.bf16 %v1942_v24  ;;  %v2008_v20 = vunpack.c.h.s8.bf16 %v1958_v35  ;;  %v1975_v57 = vunpack.c.h.s8.bf16 %v1941_v60  ;;  %v2007_v56 = vunpack.c.h.s8.bf16 %v1957_v52  ;;  %v1971_v48 = vld [vmem:[#allocation3 + $0x2f0] sm:$0xff]  ;;  %v1970_v44 = vld [vmem:[#allocation3 + $0x2e8] sm:$0xff]  ;;  %v1953_v26 = vld [vmem:[#allocation3 + $0x260] sm:$0xff] }
 0x68e   :  { %2040 = vmatpush1.bf16.msra.mxu1 %v1985_v2  ;;  %v1974_v41 = vunpack.c.l.s8.bf16 %v1942_v24  ;;  %v2006_v55 = vunpack.c.l.s8.bf16 %v1958_v35  ;;  %v1973_v40 = vunpack.c.l.s8.bf16 %v1941_v60  ;;  %v2005_v50 = vunpack.c.l.s8.bf16 %v1957_v52  ;;  %v1969_v25 = vld [vmem:[#allocation3 + $0x2e0] sm:$0xff] }
 0x68f   :  { %2081 = vmatpush1.bf16.msra.mxu0 %v2017_v3  ;;  %2041 = vmatprep.subr.bf16.mxu1 %v1984_v27  ;;  %v2004_v46 = vunpack.c.h.s8.bf16 %v1956_v61  ;;  %v2036_v54 = vunpack.c.h.s8.bf16 %v1972_v51  ;;  %v2003_v30 = vunpack.c.h.s8.bf16 %v1955_v49  ;;  %v2035_v14 = vunpack.c.h.s8.bf16 %v1971_v48  ;;  %v1952_v27 = vld [vmem:[#allocation3 + $0x258] sm:$0xff]  ;;  %v2119_v60 = vld [vmem:[%s4074_s10 + $0x4] sm:$0x3] }
 0x690   :  { %2082 = vmatprep.subr.bf16.mxu0 %v2016_v34  ;;  %v2002_v16 = vunpack.c.l.s8.bf16 %v1956_v61  ;;  %v2034_v33 = vunpack.c.l.s8.bf16 %v1972_v51  ;;  %v2001_v29 = vunpack.c.l.s8.bf16 %v1955_v49  ;;  %v2033_v10 = vunpack.c.l.s8.bf16 %v1971_v48  ;;  %v1968_v34 = vld [vmem:[#allocation3 + $0x2d8] sm:$0xff]  ;;  %v2133_v52 = vld [vmem:[%s4075_s11 + $0x4] sm:$0x3] }
 0x691   :  { %v2000_v36 = vunpack.c.h.s8.bf16 %v1954_v47  ;;  %v2032_v18 = vunpack.c.h.s8.bf16 %v1970_v44  ;;  %v1999_v9 = vunpack.c.h.s8.bf16 %v1953_v26  ;;  %v2031_v38 = vunpack.c.h.s8.bf16 %v1969_v25 }
 0x692   :  { %2042 = vmatpush1.bf16.msra.mxu1 %v1983_v4  ;;  %v1998_v2 = vunpack.c.l.s8.bf16 %v1954_v47  ;;  %v2030_v3 = vunpack.c.l.s8.bf16 %v1970_v44  ;;  %v1997_v8 = vunpack.c.l.s8.bf16 %v1953_v26  ;;  %v2029_v1 = vunpack.c.l.s8.bf16 %v1969_v25 }
 0x693   :  { %2083 = vmatpush1.bf16.msra.mxu0 %v2015_v7  ;;  %2043 = vmatprep.subr.bf16.mxu1 %v1982_v32  ;;  %v1996_v4 = vunpack.c.h.s8.bf16 %v1952_v27  ;;  %v2028_v7 = vunpack.c.h.s8.bf16 %v1968_v34  ;;  %v1951_v32 = vld [vmem:[#allocation3 + $0x250] sm:$0xff]  ;;  %v2138_v61 = vrot.slane %v2133_v52, %v3738_v21  ;;  %v2128_v51 = vrot.slane %v2119_v60, %v3741_v23 }
 0x694   :  { %2084 = vmatprep.subr.bf16.mxu0 %v2014_v0  ;;  %v1967_v0 = vld [vmem:[#allocation3 + $0x2d0] sm:$0xff]  ;;  %v1995_v43 = vunpack.c.h.s8.bf16 %v1951_v32  ;;  %v1993_v42 = vunpack.c.l.s8.bf16 %v1951_v32  ;;  %v2142_v49 = vrot.slane %v2133_v52, %v3741_v23 }
 0x695   :  { %v2027_v11 = vunpack.c.h.s8.bf16 %v1967_v0  ;;  %v2025_v22 = vunpack.c.l.s8.bf16 %v1967_v0 }
 0x696   :  { %2044 = vmatpush1.bf16.msra.mxu1 %v1981_v12  ;;  %v1994_v12 = vunpack.c.l.s8.bf16 %v1952_v27 }
 0x697   :  { %2085 = vmatpush1.bf16.msra.mxu0 %v2013_v15  ;;  %2045 = vmatprep.subr.bf16.mxu1 %v1980_v13  ;;  %v2026_v15 = vunpack.c.l.s8.bf16 %v1968_v34  ;;  %v1950_v13 = vld [vmem:[#allocation3 + $0x248] sm:$0xff] }
 0x698   :  { %2086 = vmatprep.subr.bf16.mxu0 %v2012_v59  ;;  %v1966_v59 = vld [vmem:[#allocation3 + $0x2c8] sm:$0xff] }
 0x69a   :  { %2046 = vmatpush1.bf16.msra.mxu1 %v1979_v5  ;;  %v1992_v5 = vunpack.c.h.s8.bf16 %v1950_v13 }
 0x69b   :  { %2087 = vmatpush1.bf16.msra.mxu0 %v2011_v58  ;;  %2047 = vmatprep.subr.bf16.mxu1 %v1978_v63  ;;  %v2024_v58 = vunpack.c.h.s8.bf16 %v1966_v59  ;;  %v1949_v63 = vld [vmem:[#allocation3 + $0x240] sm:$0xff] }
 0x69c   :  { %2088 = vmatprep.subr.bf16.mxu0 %v2010_v6  ;;  %v1965_v6 = vld [vmem:[#allocation3 + $0x2c0] sm:$0xff]  ;;  %v1991_v24 = vunpack.c.h.s8.bf16 %v1949_v63 }
 0x69d   :  { %v2023_v35 = vunpack.c.h.s8.bf16 %v1965_v6 }
 0x69e   :  { %2048 = vmatpush1.bf16.msra.mxu1 %v1977_v31  ;;  %v1990_v31 = vunpack.c.l.s8.bf16 %v1950_v13 }
 0x69f   :  { %2089 = vmatpush1.bf16.msra.mxu0 %v2009_v53  ;;  %2049 = vmatprep.subr.bf16.mxu1 %v1976_v45  ;;  %v2022_v53 = vunpack.c.l.s8.bf16 %v1966_v59  ;;  %v1989_v45 = vunpack.c.l.s8.bf16 %v1949_v63 }
 0x6a0   :  { %2090 = vmatprep.subr.bf16.mxu0 %v2008_v20  ;;  %v2021_v20 = vunpack.c.l.s8.bf16 %v1965_v6 }
 0x6a2   :  { %2050 = vmatpush1.bf16.msra.mxu1 %v1975_v57  ;;  %v2124_v57 = vrot.slane %v2119_v60, %v3738_v21 }
 0x6a3   :  { %2091 = vmatpush1.bf16.msra.mxu0 %v2007_v56  ;;  %2051 = vmatprep.subr.bf16.mxu1 %v1974_v41 }
 0x6a4   :  { %2092 = vmatprep.subr.bf16.mxu0 %v2006_v55 }
 0x6a6   :  { %2052 = vmatpush1.bf16.msra.mxu1 %v1973_v40 }
 0x6a7   :  { %2093 = vmatpush1.bf16.msra.mxu0 %v2005_v50  ;;  %2053 = vmatprep.subr.bf16.mxu1 %v2004_v46 }
 0x6a8   :  { %2094 = vmatprep.subr.bf16.mxu0 %v2036_v54 }
 0x6aa   :  { %2054 = vmatpush2.bf16.msra.mxu1 %v2003_v30 }
 0x6ab   :  { %2095 = vmatpush2.bf16.msra.mxu0 %v2035_v14  ;;  %2055 = vmatprep.subr.bf16.mxu1 %v2002_v16 }
 0x6ac   :  { %2096 = vmatprep.subr.bf16.mxu0 %v2034_v33 }
 0x6ae   :  { %2056 = vmatpush2.bf16.msra.mxu1 %v2001_v29 }
 0x6af   :  { %2097 = vmatpush2.bf16.msra.mxu0 %v2033_v10  ;;  %2057 = vmatprep.subr.bf16.mxu1 %v2000_v36 }
 0x6b0   :  { %2098 = vmatprep.subr.bf16.mxu0 %v2032_v18 }
 0x6b2   :  { %2058 = vmatpush2.bf16.msra.mxu1 %v1999_v9 }
 0x6b3   :  { %2099 = vmatpush2.bf16.msra.mxu0 %v2031_v38  ;;  %2059 = vmatprep.subr.bf16.mxu1 %v1998_v2 }
 0x6b4   :  { %2100 = vmatprep.subr.bf16.mxu0 %v2030_v3 }
 0x6b6   :  { %2060 = vmatpush2.bf16.msra.mxu1 %v1997_v8 }
 0x6b7   :  { %2101 = vmatpush2.bf16.msra.mxu0 %v2029_v1  ;;  %2061 = vmatprep.subr.bf16.mxu1 %v1996_v4 }
 0x6b8   :  { %2102 = vmatprep.subr.bf16.mxu0 %v2028_v7 }
 0x6ba   :  { %2062 = vmatpush2.bf16.msra.mxu1 %v1995_v43 }
 0x6bb   :  { %2103 = vmatpush2.bf16.msra.mxu0 %v2027_v11  ;;  %2063 = vmatprep.subr.bf16.mxu1 %v1994_v12 }
 0x6bc   :  { %2104 = vmatprep.subr.bf16.mxu0 %v2026_v15 }
 0x6be   :  { %2064 = vmatpush2.bf16.msra.mxu1 %v1993_v42 }
 0x6bf   :  { %2105 = vmatpush2.bf16.msra.mxu0 %v2025_v22  ;;  %2065 = vmatprep.subr.bf16.mxu1 %v1992_v5 }
 0x6c0   :  { %2106 = vmatprep.subr.bf16.mxu0 %v2024_v58 }
 0x6c2   :  { %2066 = vmatpush2.bf16.msra.mxu1 %v1991_v24 }
 0x6c3   :  { %2107 = vmatpush2.bf16.msra.mxu0 %v2023_v35  ;;  %2067 = vmatprep.subr.bf16.mxu1 %v1990_v31 }
 0x6c4   :  { %2108 = vmatprep.subr.bf16.mxu0 %v2022_v53 }
 0x6c6   :  { %2068 = vmatpush2.bf16.msra.mxu1 %v1989_v45 }
 0x6c7   :  { %2109 = vmatpush2.bf16.msra.mxu0 %v2021_v20 }
 0x6c9   :  { %2070 = vmatmul.mubr.bf16.vlgmr.msra.gmra.mxu1 %v3796_v37 }
 0x6ca   :  { %2111 = vmatmul.mubr.bf16.vlgmr.msra.gmra.mxu0 %v3799_v17 }
 0x789   :  { %v2071_v56 = vpop.f32.mrf.mxu1 }
 0x78a   :  { %v2112_v41 = vpop.f32.mrf.mxu0 }
 0x78b   :  { %v2113_v55 = vadd.f32 %v2112_v41, %v2071_v56  ;;  %v2073_v40 = vpop.f32.mrf.mxu1 }
 0x78c   :  { %v2114_v50 = vpop.f32.mrf.mxu0 }
 0x78d   :  { %v2131_v46 = vmul.f32 %v2124_v57, %v2113_v55  ;;  %v2115_v54 = vadd.f32 %v2114_v50, %v2073_v40  ;;  %v2075_v48 = vpop.f32.mrf.mxu1  ;;  %v2153_v57 = vld [vmem:[#allocation22 + $0x4] sm:$0x3] }
 0x78e   :  { %v2116_v30 = vpop.f32.mrf.mxu0  ;;  %v2195_v56 = vrot.slane %v2153_v57, %v3738_v21  ;;  %v2199_v41 = vrot.slane %v2153_v57, %v3741_v23 }
 0x78f   :  { %v2145_v14 = vadd.f32 %v2138_v61, %v2131_v46  ;;  %v2132_v16 = vmul.f32 %v2128_v51, %v2115_v54  ;;  %v2076_v33 = vpop.f32.mrf.mxu1  ;;  %v2154_v61 = vld [vmem:[#allocation23 + $0x4] sm:$0x3] }
 0x790   :  { %v2117_v47 = vpop.f32.mrf.mxu0  ;;  %v2218_v46 = vrot.slane %v2154_v61, %v3738_v21  ;;  %v2222_v30 = vrot.slane %v2154_v61, %v3741_v23 }
 0x791   :  { %vm2147_vm10 = vcmp.gt.f32.partialorder %v2145_v14, 0.0  ;;  %v2149_v44 = vmul.f32 0.2, %v2145_v14  ;;  %v2146_v29 = vadd.f32 %v2142_v49, %v2132_v16 }
 0x793   :  { %v2151_v10 = vsel %vm2147_vm10, %v2145_v14, %v2149_v44  ;;  %vm2148_vm11 = vcmp.gt.f32.partialorder %v2146_v29, 0.0  ;;  %v2150_v36 = vmul.f32 0.2, %v2146_v29 }
 0x794   :  { %v2155_v18 = vrot.slane %v2151_v10, 4 }
 0x795   :  { %v2152_v26 = vsel %vm2148_vm11, %v2146_v29, %v2150_v36 }
 0x796   :  { %v2156_v25 = vadd.f32 %v2155_v18, %v2151_v10  ;;  %v2161_v9 = vrot.slane %v2152_v26, 4 }
 0x798   :  { %v2157_v38 = vrot.slane %v2156_v25, 2  ;;  %v2162_v2 = vadd.f32 %v2161_v9, %v2152_v26 }
 0x79a   :  { %v2158_v3 = vadd.f32 %v2157_v38, %v2156_v25  ;;  %v2163_v27 = vrot.slane %v2162_v2, 2 }
 0x79c   :  { %v2159_v34 = vrot.slane %v2158_v3, 1  ;;  %v2164_v8 = vadd.f32 %v2163_v27, %v2162_v2 }
 0x79e   :  { %v2160_v1 = vadd.f32 %v2159_v34, %v2158_v3  ;;  %v2165_v4 = vrot.slane %v2164_v8, 1 }
 0x7a0   :  { %v2167_v7 = vmul.f32 0.125, %v2160_v1  ;;  %v2166_v32 = vadd.f32 %v2165_v4, %v2164_v8 }
 0x7a2   :  { %v2169_v0 = vsub.f32 %v2151_v10, %v2167_v7  ;;  %v2168_v43 = vmul.f32 0.125, %v2166_v32 }
 0x7a4   :  { %v2171_v11 = vmul.f32 %v2169_v0, %v2169_v0  ;;  %v2170_v12 = vsub.f32 %v2152_v26, %v2168_v43 }
 0x7a6   :  { %v2173_v15 = vrot.slane %v2171_v11, 4  ;;  %v2172_v13 = vmul.f32 %v2170_v12, %v2170_v12 }
 0x7a8   :  { %v2174_v59 = vadd.f32 %v2173_v15, %v2171_v11  ;;  %v2179_v42 = vrot.slane %v2172_v13, 4 }
 0x7aa   :  { %v2175_v22 = vrot.slane %v2174_v59, 2  ;;  %v2180_v5 = vadd.f32 %v2179_v42, %v2172_v13 }
 0x7ac   :  { %v2176_v58 = vadd.f32 %v2175_v22, %v2174_v59  ;;  %v2181_v63 = vrot.slane %v2180_v5, 2 }
 0x7ae   :  { %v2177_v6 = vrot.slane %v2176_v58, 1  ;;  %v2182_v24 = vadd.f32 %v2181_v63, %v2180_v5 }
 0x7b0   :  { %v2178_v35 = vadd.f32 %v2177_v6, %v2176_v58  ;;  %v2183_v31 = vrot.slane %v2182_v24, 1 }
 0x7b2   :  { %v2185_v53 = vmul.f32 0.125, %v2178_v35  ;;  %v2184_v45 = vadd.f32 %v2183_v31, %v2182_v24 }
 0x7b4   :  { %v2187_v20 = vadd.f32 1e-05, %v2185_v53  ;;  %v2186_v60 = vmul.f32 0.125, %v2184_v45 }
 0x7b6   :  { %3069 = vrsqrt.f32 %v2187_v20  ;;  %v2188_v52 = vadd.f32 1e-05, %v2186_v60 }
 0x7b8   :  { %3071 = vrsqrt.f32 %v2188_v52 }
 0x7c3   :  { %v3070_v55 = vpop.eup %3069 }
 0x7c4   :  { %v2202_v51 = vmul.f32 %v3070_v55, %v2195_v56 }
 0x7c5   :  { %v3072_v40 = vpop.eup %3071 }
 0x7c6   :  { %v2207_v50 = vrot.slane %v2202_v51, %v3738_v21  ;;  %v2203_v54 = vmul.f32 %v3072_v40, %v2199_v41 }
 0x7c8   :  { %v2212_v49 = vmul.f32 %v2207_v50, %v2169_v0  ;;  %v2211_v48 = vrot.slane %v2203_v54, %v3738_v21 }
 0x7ca   :  { %v4015_v14 = vadd.f32 %v2218_v46, %v2212_v49  ;;  %v2213_v16 = vmul.f32 %v2211_v48, %v2170_v12 }
 0x7cc   :  { %v2226_v33 = vadd.f32 %v2222_v30, %v2213_v16 }
 0x7cd   :  { %3523 = dma.done.wait [#allocation7 + $0x2], 2048 }
 0x7ce   :  { %3524 = vsyncadd [#allocation7 + $0x2], 4294965248  ;;  %v2230_v47 = vpack.c.bf16 %v2226_v33, %v2226_v33  ;;  %v2238_v44 = vld [vmem:[#allocation4 + $0x138] sm:$0xff]  ;;  %v2237_v29 = vld [vmem:[#allocation4 + $0x130] sm:$0xff]  ;;  %v2229_v54 = vpack.c.bf16 %v4015_v14, %v4015_v14 }
 0x7cf   :  { %v2260_v10 = vunpack.c.l.s8.bf16 %v2238_v44  ;;  %v2262_v36 = vunpack.c.h.s8.bf16 %v2238_v44  ;;  %v2261_v18 = vunpack.c.h.s8.bf16 %v2237_v29  ;;  %v2236_v26 = vld [vmem:[#allocation4 + $0x128] sm:$0xff]  ;;  %v2259_v25 = vunpack.c.l.s8.bf16 %v2237_v29  ;;  %v2235_v38 = vld [vmem:[#allocation4 + $0x120] sm:$0xff]  ;;  %v2234_v27 = vld [vmem:[#allocation4 + $0x118] sm:$0xff] }
 0x7d0   :  { %2311 = vmatprep.mubr.bf16.mxu1 %v2230_v47  ;;  %v2258_v9 = vunpack.c.h.s8.bf16 %v2236_v26  ;;  %v2257_v2 = vunpack.c.h.s8.bf16 %v2235_v38  ;;  %v2256_v3 = vunpack.c.l.s8.bf16 %v2236_v26  ;;  %v2255_v34 = vunpack.c.l.s8.bf16 %v2235_v38  ;;  %v2233_v1 = vld [vmem:[#allocation4 + $0x110] sm:$0xff]  ;;  %v2232_v32 = vld [vmem:[#allocation4 + $0x108] sm:$0xff]  ;;  %v2231_v11 = vld [vmem:[#allocation4 + $0x100] sm:$0xff] }
 0x7d1   :  { %2279 = vmatprep.subr.bf16.mxu1 %v2262_v36  ;;  %v2254_v8 = vunpack.c.h.s8.bf16 %v2234_v27  ;;  %v2253_v4 = vunpack.c.h.s8.bf16 %v2233_v1  ;;  %v2252_v7 = vunpack.c.l.s8.bf16 %v2234_v27  ;;  %v2251_v0 = vunpack.c.l.s8.bf16 %v2233_v1  ;;  %v2246_v13 = vld [vmem:[#allocation4 + $0x178] sm:$0xff]  ;;  %v2245_v22 = vld [vmem:[#allocation4 + $0x170] sm:$0xff]  ;;  %v2244_v63 = vld [vmem:[#allocation4 + $0x168] sm:$0xff] }
 0x7d2   :  { %2280 = vmatpush1.bf16.msra.mxu1 %v2261_v18  ;;  %v2250_v43 = vunpack.c.h.s8.bf16 %v2232_v32  ;;  %v2249_v12 = vunpack.c.h.s8.bf16 %v2231_v11  ;;  %v2248_v15 = vunpack.c.l.s8.bf16 %v2232_v32  ;;  %v2247_v59 = vunpack.c.l.s8.bf16 %v2231_v11  ;;  %v2243_v35 = vld [vmem:[#allocation4 + $0x160] sm:$0xff]  ;;  %v2242_v45 = vld [vmem:[#allocation4 + $0x158] sm:$0xff]  ;;  %v2241_v52 = vld [vmem:[#allocation4 + $0x150] sm:$0xff] }
 0x7d3   :  { %2281 = vmatprep.subr.bf16.mxu1 %v2260_v10  ;;  %v2278_v42 = vunpack.c.h.s8.bf16 %v2246_v13  ;;  %v2277_v5 = vunpack.c.h.s8.bf16 %v2245_v22  ;;  %v2276_v58 = vunpack.c.l.s8.bf16 %v2246_v13  ;;  %v2275_v6 = vunpack.c.l.s8.bf16 %v2245_v22  ;;  %v2240_v41 = vld [vmem:[#allocation4 + $0x148] sm:$0xff]  ;;  %v2239_v51 = vld [vmem:[#allocation4 + $0x140] sm:$0xff] }
 0x7d4   :  { %v2274_v24 = vunpack.c.h.s8.bf16 %v2244_v63  ;;  %v2273_v31 = vunpack.c.h.s8.bf16 %v2243_v35  ;;  %v2272_v53 = vunpack.c.l.s8.bf16 %v2244_v63  ;;  %v2271_v20 = vunpack.c.l.s8.bf16 %v2243_v35 }
 0x7d5   :  { %v2270_v60 = vunpack.c.h.s8.bf16 %v2242_v45  ;;  %v2269_v57 = vunpack.c.h.s8.bf16 %v2241_v52  ;;  %v2268_v56 = vunpack.c.l.s8.bf16 %v2242_v45  ;;  %v2267_v55 = vunpack.c.l.s8.bf16 %v2241_v52 }
 0x7d6   :  { %2282 = vmatpush1.bf16.msra.mxu1 %v2259_v25  ;;  %v2266_v61 = vunpack.c.h.s8.bf16 %v2240_v41  ;;  %v2265_v40 = vunpack.c.h.s8.bf16 %v2239_v51  ;;  %v2264_v50 = vunpack.c.l.s8.bf16 %v2240_v41  ;;  %v2263_v46 = vunpack.c.l.s8.bf16 %v2239_v51 }
 0x7d7   :  { %2283 = vmatprep.subr.bf16.mxu1 %v2258_v9 }
 0x7da   :  { %2284 = vmatpush1.bf16.msra.mxu1 %v2257_v2 }
 0x7db   :  { %2285 = vmatprep.subr.bf16.mxu1 %v2256_v3 }
 0x7de   :  { %2286 = vmatpush1.bf16.msra.mxu1 %v2255_v34 }
 0x7df   :  { %2287 = vmatprep.subr.bf16.mxu1 %v2254_v8 }
 0x7e2   :  { %2288 = vmatpush1.bf16.msra.mxu1 %v2253_v4 }
 0x7e3   :  { %2289 = vmatprep.subr.bf16.mxu1 %v2252_v7 }
 0x7e6   :  { %2290 = vmatpush1.bf16.msra.mxu1 %v2251_v0 }
 0x7e7   :  { %2291 = vmatprep.subr.bf16.mxu1 %v2250_v43 }
 0x7ea   :  { %2292 = vmatpush1.bf16.msra.mxu1 %v2249_v12 }
 0x7eb   :  { %2293 = vmatprep.subr.bf16.mxu1 %v2248_v15 }
 0x7ee   :  { %2294 = vmatpush1.bf16.msra.mxu1 %v2247_v59 }
 0x7ef   :  { %2295 = vmatprep.subr.bf16.mxu1 %v2278_v42 }
 0x7f2   :  { %2296 = vmatpush2.bf16.msra.mxu1 %v2277_v5 }
 0x7f3   :  { %2297 = vmatprep.subr.bf16.mxu1 %v2276_v58 }
 0x7f6   :  { %2298 = vmatpush2.bf16.msra.mxu1 %v2275_v6 }
 0x7f7   :  { %2299 = vmatprep.subr.bf16.mxu1 %v2274_v24 }
 0x7fa   :  { %2300 = vmatpush2.bf16.msra.mxu1 %v2273_v31 }
 0x7fb   :  { %2301 = vmatprep.subr.bf16.mxu1 %v2272_v53 }
 0x7fe   :  { %2302 = vmatpush2.bf16.msra.mxu1 %v2271_v20 }
 0x7ff   :  { %2303 = vmatprep.subr.bf16.mxu1 %v2270_v60 }
 0x802   :  { %2304 = vmatpush2.bf16.msra.mxu1 %v2269_v57 }
 0x803   :  { %2305 = vmatprep.subr.bf16.mxu1 %v2268_v56 }
 0x806   :  { %2306 = vmatpush2.bf16.msra.mxu1 %v2267_v55 }
 0x807   :  { %2307 = vmatprep.subr.bf16.mxu1 %v2266_v61 }
 0x80a   :  { %2308 = vmatpush2.bf16.msra.mxu1 %v2265_v40 }
 0x80b   :  { %2309 = vmatprep.subr.bf16.mxu1 %v2264_v50 }
 0x80e   :  { %2310 = vmatpush2.bf16.msra.mxu1 %v2263_v46 }
 0x811   :  { %2312 = vmatmul.mubr.bf16.vlgmr.msra.gmra.mxu1 %v2229_v54 }
 0x8d1   :  { %v2313_v49 = vpop.f32.mrf.mxu1 }
 0x8d2   :  { %v4020_v48 = vadd.f32 %v2313_v49, %v3991_v28 }
 0x8d3   :  { %v2315_v30 = vpop.f32.mrf.mxu1 }
 0x8d4   :  { %v4023_v16 = vadd.f32 %v2315_v30, %v3993_v62 }
 0x8d5   :  { %v2317_v33 = vpop.f32.mrf.mxu1 }
 0x8d7   :  { %v2318_v47 = vpop.f32.mrf.mxu1 }
 0x8d8   :  { %3525 = dma.done.wait [#allocation6 + $0x3], 4096 }
 0x8d9   :  { %3526 = vsyncadd [#allocation6 + $0x3], 4294963200  ;;  %2452 = vmatprep.mubr.bf16.mxu0 %v3801_v19  ;;  %2493 = vmatprep.mubr.bf16.mxu1 %v3803_v39  ;;  %v2331_v44 = vld [vmem:[#allocation3 + $0x338] sm:$0xff]  ;;  %v2330_v29 = vld [vmem:[#allocation3 + $0x330] sm:$0xff] }
 0x8da   :  { %v2347_v14 = vld [vmem:[#allocation3 + $0x3b8] sm:$0xff]  ;;  %v2369_v10 = vunpack.c.l.s8.bf16 %v2331_v44  ;;  %v2371_v36 = vunpack.c.h.s8.bf16 %v2331_v44  ;;  %v2346_v26 = vld [vmem:[#allocation3 + $0x3b0] sm:$0xff]  ;;  %v2370_v25 = vunpack.c.h.s8.bf16 %v2330_v29  ;;  %v2329_v62 = vld [vmem:[#allocation3 + $0x328] sm:$0xff]  ;;  %v2368_v2 = vunpack.c.l.s8.bf16 %v2330_v29 }
 0x8db   :  { %v2401_v18 = vunpack.c.l.s8.bf16 %v2347_v14  ;;  %v2403_v28 = vunpack.c.h.s8.bf16 %v2347_v14  ;;  %v2402_v9 = vunpack.c.h.s8.bf16 %v2346_v26  ;;  %v2345_v38 = vld [vmem:[#allocation3 + $0x3a8] sm:$0xff]  ;;  %v2400_v3 = vunpack.c.l.s8.bf16 %v2346_v26  ;;  %v2328_v27 = vld [vmem:[#allocation3 + $0x320] sm:$0xff]  ;;  %v2327_v32 = vld [vmem:[#allocation3 + $0x318] sm:$0xff] }
 0x8dc   :  { %2420 = vmatprep.subr.bf16.mxu0 %v2371_v36  ;;  %v2367_v19 = vunpack.c.h.s8.bf16 %v2329_v62  ;;  %v2399_v39 = vunpack.c.h.s8.bf16 %v2345_v38  ;;  %v2344_v34 = vld [vmem:[#allocation3 + $0x3a0] sm:$0xff]  ;;  %v2366_v8 = vunpack.c.h.s8.bf16 %v2328_v27  ;;  %v2365_v4 = vunpack.c.l.s8.bf16 %v2329_v62  ;;  %v2343_v0 = vld [vmem:[#allocation3 + $0x398] sm:$0xff]  ;;  %v2326_v13 = vld [vmem:[#allocation3 + $0x310] sm:$0xff] }
 0x8dd   :  { %2461 = vmatprep.subr.bf16.mxu1 %v2403_v28  ;;  %2421 = vmatpush1.bf16.msra.mxu0 %v2370_v25  ;;  %v2398_v1 = vunpack.c.h.s8.bf16 %v2344_v34  ;;  %v2397_v7 = vunpack.c.l.s8.bf16 %v2345_v38  ;;  %v2364_v43 = vunpack.c.l.s8.bf16 %v2328_v27  ;;  %v2396_v11 = vunpack.c.l.s8.bf16 %v2344_v34  ;;  %v2342_v59 = vld [vmem:[#allocation3 + $0x390] sm:$0xff]  ;;  %v2325_v63 = vld [vmem:[#allocation3 + $0x308] sm:$0xff]  ;;  %v2324_v45 = vld [vmem:[#allocation3 + $0x300] sm:$0xff] }
 0x8de   :  { %2462 = vmatpush1.bf16.msra.mxu1 %v2402_v9  ;;  %2422 = vmatprep.subr.bf16.mxu0 %v2369_v10  ;;  %v2363_v12 = vunpack.c.h.s8.bf16 %v2327_v32  ;;  %v2395_v15 = vunpack.c.h.s8.bf16 %v2343_v0  ;;  %v2362_v42 = vunpack.c.h.s8.bf16 %v2326_v13  ;;  %v2394_v22 = vunpack.c.h.s8.bf16 %v2342_v59  ;;  %v2341_v6 = vld [vmem:[#allocation3 + $0x388] sm:$0xff]  ;;  %v2340_v20 = vld [vmem:[#allocation3 + $0x380] sm:$0xff]  ;;  %v2339_v41 = vld [vmem:[#allocation3 + $0x378] sm:$0xff] }
 0x8df   :  { %2463 = vmatprep.subr.bf16.mxu1 %v2401_v18  ;;  %v2361_v5 = vunpack.c.l.s8.bf16 %v2327_v32  ;;  %v2393_v58 = vunpack.c.l.s8.bf16 %v2343_v0  ;;  %v2360_v24 = vunpack.c.l.s8.bf16 %v2326_v13  ;;  %v2392_v35 = vunpack.c.l.s8.bf16 %v2342_v59  ;;  %v2355_v55 = vld [vmem:[#allocation3 + $0x3f8] sm:$0xff]  ;;  %v2338_v46 = vld [vmem:[#allocation3 + $0x370] sm:$0xff]  ;;  %v2337_v44 = vld [vmem:[#allocation3 + $0x368] sm:$0xff] }
 0x8e0   :  { %v2359_v31 = vunpack.c.h.s8.bf16 %v2325_v63  ;;  %v2391_v53 = vunpack.c.h.s8.bf16 %v2341_v6  ;;  %v2358_v60 = vunpack.c.h.s8.bf16 %v2324_v45  ;;  %v2390_v52 = vunpack.c.h.s8.bf16 %v2340_v20  ;;  %v2354_v54 = vld [vmem:[#allocation3 + $0x3f0] sm:$0xff]  ;;  %v2353_v14 = vld [vmem:[#allocation3 + $0x3e8] sm:$0xff]  ;;  %v2336_v28 = vld [vmem:[#allocation3 + $0x360] sm:$0xff] }
 0x8e1   :  { %2423 = vmatpush1.bf16.msra.mxu0 %v2368_v2  ;;  %v2357_v57 = vunpack.c.l.s8.bf16 %v2325_v63  ;;  %v2389_v56 = vunpack.c.l.s8.bf16 %v2341_v6  ;;  %v2356_v61 = vunpack.c.l.s8.bf16 %v2324_v45  ;;  %v2388_v51 = vunpack.c.l.s8.bf16 %v2340_v20  ;;  %v2352_v26 = vld [vmem:[#allocation3 + $0x3e0] sm:$0xff]  ;;  %v2335_v2 = vld [vmem:[#allocation3 + $0x358] sm:$0xff] }
 0x8e2   :  { %2464 = vmatpush1.bf16.msra.mxu1 %v2400_v3  ;;  %2424 = vmatprep.subr.bf16.mxu0 %v2367_v19  ;;  %v2387_v40 = vunpack.c.h.s8.bf16 %v2339_v41  ;;  %v2419_v50 = vunpack.c.h.s8.bf16 %v2355_v55  ;;  %v2386_v49 = vunpack.c.h.s8.bf16 %v2338_v46  ;;  %v2418_v30 = vunpack.c.h.s8.bf16 %v2354_v54  ;;  %v2351_v3 = vld [vmem:[#allocation3 + $0x3d8] sm:$0xff] }
 0x8e3   :  { %2465 = vmatprep.subr.bf16.mxu1 %v2399_v39  ;;  %v2385_v33 = vunpack.c.l.s8.bf16 %v2339_v41  ;;  %v2417_v47 = vunpack.c.l.s8.bf16 %v2355_v55  ;;  %v2384_v29 = vunpack.c.l.s8.bf16 %v2338_v46  ;;  %v2416_v10 = vunpack.c.l.s8.bf16 %v2354_v54 }
 0x8e4   :  { %v2383_v36 = vunpack.c.h.s8.bf16 %v2337_v44  ;;  %v2415_v18 = vunpack.c.h.s8.bf16 %v2353_v14  ;;  %v2382_v25 = vunpack.c.h.s8.bf16 %v2336_v28  ;;  %v2414_v9 = vunpack.c.h.s8.bf16 %v2352_v26 }
 0x8e5   :  { %2425 = vmatpush1.bf16.msra.mxu0 %v2366_v8  ;;  %v2381_v62 = vunpack.c.l.s8.bf16 %v2337_v44  ;;  %v2413_v38 = vunpack.c.l.s8.bf16 %v2353_v14  ;;  %v2380_v19 = vunpack.c.l.s8.bf16 %v2336_v28  ;;  %v2412_v39 = vunpack.c.l.s8.bf16 %v2352_v26  ;;  %v2334_v8 = vld [vmem:[#allocation3 + $0x350] sm:$0xff] }
 0x8e6   :  { %2466 = vmatpush1.bf16.msra.mxu1 %v2398_v1  ;;  %2426 = vmatprep.subr.bf16.mxu0 %v2365_v4  ;;  %v2379_v27 = vunpack.c.h.s8.bf16 %v2335_v2  ;;  %v2411_v34 = vunpack.c.h.s8.bf16 %v2351_v3  ;;  %v2350_v1 = vld [vmem:[#allocation3 + $0x3d0] sm:$0xff]  ;;  %v2378_v4 = vunpack.c.h.s8.bf16 %v2334_v8  ;;  %v2377_v32 = vunpack.c.l.s8.bf16 %v2335_v2 }
 0x8e7   :  { %2467 = vmatprep.subr.bf16.mxu1 %v2397_v7  ;;  %v2410_v7 = vunpack.c.h.s8.bf16 %v2350_v1  ;;  %v2409_v0 = vunpack.c.l.s8.bf16 %v2351_v3 }
 0x8e9   :  { %2427 = vmatpush1.bf16.msra.mxu0 %v2364_v43  ;;  %v2333_v43 = vld [vmem:[#allocation3 + $0x348] sm:$0xff] }
 0x8ea   :  { %2468 = vmatpush1.bf16.msra.mxu1 %v2396_v11  ;;  %2428 = vmatprep.subr.bf16.mxu0 %v2363_v12  ;;  %v2349_v11 = vld [vmem:[#allocation3 + $0x3c8] sm:$0xff]  ;;  %v2376_v12 = vunpack.c.l.s8.bf16 %v2334_v8  ;;  %v2375_v13 = vunpack.c.h.s8.bf16 %v2333_v43  ;;  %v2373_v63 = vunpack.c.l.s8.bf16 %v2333_v43 }
 0x8eb   :  { %2469 = vmatprep.subr.bf16.mxu1 %v2395_v15  ;;  %v2408_v15 = vunpack.c.l.s8.bf16 %v2350_v1  ;;  %v2407_v59 = vunpack.c.h.s8.bf16 %v2349_v11  ;;  %v2405_v6 = vunpack.c.l.s8.bf16 %v2349_v11 }
 0x8ed   :  { %2429 = vmatpush1.bf16.msra.mxu0 %v2362_v42  ;;  %v2332_v42 = vld [vmem:[#allocation3 + $0x340] sm:$0xff] }
 0x8ee   :  { %2470 = vmatpush1.bf16.msra.mxu1 %v2394_v22  ;;  %2430 = vmatprep.subr.bf16.mxu0 %v2361_v5  ;;  %v2348_v22 = vld [vmem:[#allocation3 + $0x3c0] sm:$0xff]  ;;  %v2374_v5 = vunpack.c.h.s8.bf16 %v2332_v42 }
 0x8ef   :  { %2471 = vmatprep.subr.bf16.mxu1 %v2393_v58  ;;  %v2406_v58 = vunpack.c.h.s8.bf16 %v2348_v22 }
 0x8f1   :  { %2431 = vmatpush1.bf16.msra.mxu0 %v2360_v24  ;;  %v2372_v24 = vunpack.c.l.s8.bf16 %v2332_v42 }
 0x8f2   :  { %2472 = vmatpush1.bf16.msra.mxu1 %v2392_v35  ;;  %2432 = vmatprep.subr.bf16.mxu0 %v2359_v31  ;;  %v2404_v35 = vunpack.c.l.s8.bf16 %v2348_v22  ;;  %v2502_v31 = vld [vmem:[%s4074_s10 + $0x6] sm:$0x3] }
 0x8f3   :  { %2473 = vmatprep.subr.bf16.mxu1 %v2391_v53  ;;  %v2516_v53 = vld [vmem:[%s4075_s11 + $0x6] sm:$0x3]  ;;  %v2507_v45 = vrot.slane %v2502_v31, %v3738_v21 }
 0x8f5   :  { %2433 = vmatpush1.bf16.msra.mxu0 %v2358_v60 }
 0x8f6   :  { %2474 = vmatpush1.bf16.msra.mxu1 %v2390_v52  ;;  %2434 = vmatprep.subr.bf16.mxu0 %v2357_v57  ;;  %v2521_v57 = vrot.slane %v2516_v53, %v3738_v21 }
 0x8f7   :  { %2475 = vmatprep.subr.bf16.mxu1 %v2389_v56  ;;  %v2511_v56 = vrot.slane %v2502_v31, %v3741_v23 }
 0x8f9   :  { %2435 = vmatpush1.bf16.msra.mxu0 %v2356_v61  ;;  %v2525_v61 = vrot.slane %v2516_v53, %v3741_v23 }
 0x8fa   :  { %2476 = vmatpush1.bf16.msra.mxu1 %v2388_v51  ;;  %2436 = vmatprep.subr.bf16.mxu0 %v2387_v40 }
 0x8fb   :  { %2477 = vmatprep.subr.bf16.mxu1 %v2419_v50 }
 0x8fd   :  { %2437 = vmatpush2.bf16.msra.mxu0 %v2386_v49 }
 0x8fe   :  { %2478 = vmatpush2.bf16.msra.mxu1 %v2418_v30  ;;  %2438 = vmatprep.subr.bf16.mxu0 %v2385_v33 }
 0x8ff   :  { %2479 = vmatprep.subr.bf16.mxu1 %v2417_v47 }
 0x901   :  { %2439 = vmatpush2.bf16.msra.mxu0 %v2384_v29 }
 0x902   :  { %2480 = vmatpush2.bf16.msra.mxu1 %v2416_v10  ;;  %2440 = vmatprep.subr.bf16.mxu0 %v2383_v36 }
 0x903   :  { %2481 = vmatprep.subr.bf16.mxu1 %v2415_v18 }
 0x905   :  { %2441 = vmatpush2.bf16.msra.mxu0 %v2382_v25 }
 0x906   :  { %2482 = vmatpush2.bf16.msra.mxu1 %v2414_v9  ;;  %2442 = vmatprep.subr.bf16.mxu0 %v2381_v62 }
 0x907   :  { %2483 = vmatprep.subr.bf16.mxu1 %v2413_v38 }
 0x909   :  { %2443 = vmatpush2.bf16.msra.mxu0 %v2380_v19 }
 0x90a   :  { %2484 = vmatpush2.bf16.msra.mxu1 %v2412_v39  ;;  %2444 = vmatprep.subr.bf16.mxu0 %v2379_v27 }
 0x90b   :  { %2485 = vmatprep.subr.bf16.mxu1 %v2411_v34 }
 0x90d   :  { %2445 = vmatpush2.bf16.msra.mxu0 %v2378_v4 }
 0x90e   :  { %2486 = vmatpush2.bf16.msra.mxu1 %v2410_v7  ;;  %2446 = vmatprep.subr.bf16.mxu0 %v2377_v32 }
 0x90f   :  { %2487 = vmatprep.subr.bf16.mxu1 %v2409_v0 }
 0x911   :  { %2447 = vmatpush2.bf16.msra.mxu0 %v2376_v12 }
 0x912   :  { %2488 = vmatpush2.bf16.msra.mxu1 %v2408_v15  ;;  %2448 = vmatprep.subr.bf16.mxu0 %v2375_v13 }
 0x913   :  { %2489 = vmatprep.subr.bf16.mxu1 %v2407_v59 }
 0x915   :  { %2449 = vmatpush2.bf16.msra.mxu0 %v2374_v5 }
 0x916   :  { %2490 = vmatpush2.bf16.msra.mxu1 %v2406_v58  ;;  %2450 = vmatprep.subr.bf16.mxu0 %v2373_v63 }
 0x917   :  { %2491 = vmatprep.subr.bf16.mxu1 %v2405_v6 }
 0x919   :  { %2451 = vmatpush2.bf16.msra.mxu0 %v2372_v24  ;;  %v2536_v24 = vld [vmem:[#allocation22 + $0x6] sm:$0x3] }
 0x91a   :  { %2492 = vmatpush2.bf16.msra.mxu1 %v2404_v35  ;;  %v2578_v35 = vrot.slane %v2536_v24, %v3738_v21  ;;  %v2582_v31 = vrot.slane %v2536_v24, %v3741_v23 }
 0x91c   :  { %2453 = vmatmul.mubr.bf16.vlgmr.msra.gmra.mxu0 %v3796_v37 }
 0x91d   :  { %2494 = vmatmul.mubr.bf16.vlgmr.msra.gmra.mxu1 %v3799_v17 }
 0x9dc   :  { %v2454_v20 = vpop.f32.mrf.mxu0 }
 0x9dd   :  { %v2495_v60 = vpop.f32.mrf.mxu1 }
 0x9de   :  { %v2496_v52 = vadd.f32 %v2495_v60, %v2454_v20  ;;  %v2456_v37 = vpop.f32.mrf.mxu0 }
 0x9df   :  { %v2497_v41 = vpop.f32.mrf.mxu1 }
 0x9e0   :  { %v2514_v17 = vmul.f32 %v2507_v45, %v2496_v52  ;;  %v2498_v55 = vadd.f32 %v2497_v41, %v2456_v37  ;;  %v2458_v51 = vpop.f32.mrf.mxu0  ;;  %v2537_v45 = vld [vmem:[#allocation23 + $0x6] sm:$0x3] }
 0x9e1   :  { %v2499_v40 = vpop.f32.mrf.mxu1 }
 0x9e2   :  { %v2528_v50 = vadd.f32 %v2521_v57, %v2514_v17  ;;  %v2515_v46 = vmul.f32 %v2511_v56, %v2498_v55  ;;  %v2459_v54 = vpop.f32.mrf.mxu0  ;;  %v2601_v57 = vrot.slane %v2537_v45, %v3738_v21  ;;  %v2605_v17 = vrot.slane %v2537_v45, %v3741_v23 }
 0x9e3   :  { %v2500_v49 = vpop.f32.mrf.mxu1 }
 0x9e4   :  { %vm2530_vm12 = vcmp.gt.f32.partialorder %v2528_v50, 0.0  ;;  %v2532_v30 = vmul.f32 0.2, %v2528_v50  ;;  %v2529_v33 = vadd.f32 %v2525_v61, %v2515_v46 }
 0x9e6   :  { %v2534_v47 = vsel %vm2530_vm12, %v2528_v50, %v2532_v30  ;;  %vm2531_vm13 = vcmp.gt.f32.partialorder %v2529_v33, 0.0  ;;  %v2533_v44 = vmul.f32 0.2, %v2529_v33 }
 0x9e7   :  { %v2538_v14 = vrot.slane %v2534_v47, 4 }
 0x9e8   :  { %v2535_v29 = vsel %vm2531_vm13, %v2529_v33, %v2533_v44 }
 0x9e9   :  { %v2539_v10 = vadd.f32 %v2538_v14, %v2534_v47  ;;  %v2544_v36 = vrot.slane %v2535_v29, 4 }
 0x9eb   :  { %v2540_v18 = vrot.slane %v2539_v10, 2  ;;  %v2545_v28 = vadd.f32 %v2544_v36, %v2535_v29 }
 0x9ed   :  { %v2541_v26 = vadd.f32 %v2540_v18, %v2539_v10  ;;  %v2546_v25 = vrot.slane %v2545_v28, 2 }
 0x9ef   :  { %v2542_v9 = vrot.slane %v2541_v26, 1  ;;  %v2547_v62 = vadd.f32 %v2546_v25, %v2545_v28 }
 0x9f1   :  { %v2543_v38 = vadd.f32 %v2542_v9, %v2541_v26  ;;  %v2548_v2 = vrot.slane %v2547_v62, 1 }
 0x9f3   :  { %v2550_v3 = vmul.f32 0.125, %v2543_v38  ;;  %v2549_v19 = vadd.f32 %v2548_v2, %v2547_v62 }
 0x9f5   :  { %v2552_v39 = vsub.f32 %v2534_v47, %v2550_v3  ;;  %v2551_v27 = vmul.f32 0.125, %v2549_v19 }
 0x9f7   :  { %v2554_v34 = vmul.f32 %v2552_v39, %v2552_v39  ;;  %v2553_v8 = vsub.f32 %v2535_v29, %v2551_v27 }
 0x9f9   :  { %v2556_v1 = vrot.slane %v2554_v34, 4  ;;  %v2555_v4 = vmul.f32 %v2553_v8, %v2553_v8 }
 0x9fb   :  { %v2557_v7 = vadd.f32 %v2556_v1, %v2554_v34  ;;  %v2562_v32 = vrot.slane %v2555_v4, 4 }
 0x9fd   :  { %v2558_v0 = vrot.slane %v2557_v7, 2  ;;  %v2563_v43 = vadd.f32 %v2562_v32, %v2555_v4 }
 0x9ff   :  { %v2559_v11 = vadd.f32 %v2558_v0, %v2557_v7  ;;  %v2564_v12 = vrot.slane %v2563_v43, 2 }
 0xa01   :  { %v2560_v15 = vrot.slane %v2559_v11, 1  ;;  %v2565_v13 = vadd.f32 %v2564_v12, %v2563_v43 }
 0xa03   :  { %v2561_v59 = vadd.f32 %v2560_v15, %v2559_v11  ;;  %v2566_v42 = vrot.slane %v2565_v13, 1 }
 0xa05   :  { %v2568_v22 = vmul.f32 0.125, %v2561_v59  ;;  %v2567_v5 = vadd.f32 %v2566_v42, %v2565_v13 }
 0xa07   :  { %v2570_v58 = vadd.f32 1e-05, %v2568_v22  ;;  %v2569_v63 = vmul.f32 0.125, %v2567_v5 }
 0xa09   :  { %3073 = vrsqrt.f32 %v2570_v58  ;;  %v2571_v6 = vadd.f32 1e-05, %v2569_v63 }
 0xa0b   :  { %3075 = vrsqrt.f32 %v2571_v6 }
 0xa16   :  { %v3074_v53 = vpop.eup %3073 }
 0xa17   :  { %v2585_v20 = vmul.f32 %v3074_v53, %v2578_v35 }
 0xa18   :  { %v3076_v60 = vpop.eup %3075 }
 0xa19   :  { %v2590_v52 = vrot.slane %v2585_v20, %v3738_v21  ;;  %v2586_v56 = vmul.f32 %v3076_v60, %v2582_v31 }
 0xa1b   :  { %v2595_v37 = vmul.f32 %v2590_v52, %v2552_v39  ;;  %v2594_v41 = vrot.slane %v2586_v56, %v3738_v21 }
 0xa1d   :  { %v4045_v55 = vadd.f32 %v2601_v57, %v2595_v37  ;;  %v2596_v61 = vmul.f32 %v2594_v41, %v2553_v8 }
 0xa1f   :  { %v2609_v51 = vadd.f32 %v2605_v17, %v2596_v61 }
 0xa20   :  { %3527 = dma.done.wait [#allocation7 + $0x3], 2048 }
 0xa21   :  { %3528 = vsyncadd [#allocation7 + $0x3], 4294965248  ;;  %v2613_v40 = vpack.c.bf16 %v2609_v51, %v2609_v51  ;;  %v2621_v50 = vld [vmem:[#allocation4 + $0x1b8] sm:$0xff]  ;;  %v2620_v46 = vld [vmem:[#allocation4 + $0x1b0] sm:$0xff]  ;;  %v2612_v20 = vpack.c.bf16 %v4045_v55, %v4045_v55 }
 0xa22   :  { %v2643_v54 = vunpack.c.l.s8.bf16 %v2621_v50  ;;  %v2645_v49 = vunpack.c.h.s8.bf16 %v2621_v50  ;;  %v2644_v30 = vunpack.c.h.s8.bf16 %v2620_v46  ;;  %v2619_v33 = vld [vmem:[#allocation4 + $0x1a8] sm:$0xff]  ;;  %v2642_v47 = vunpack.c.l.s8.bf16 %v2620_v46  ;;  %v2618_v14 = vld [vmem:[#allocation4 + $0x1a0] sm:$0xff]  ;;  %v2617_v36 = vld [vmem:[#allocation4 + $0x198] sm:$0xff] }
 0xa23   :  { %2694 = vmatprep.mubr.bf16.mxu0 %v2613_v40  ;;  %v2641_v44 = vunpack.c.h.s8.bf16 %v2619_v33  ;;  %v2640_v29 = vunpack.c.h.s8.bf16 %v2618_v14  ;;  %v2639_v10 = vunpack.c.l.s8.bf16 %v2619_v33  ;;  %v2638_v18 = vunpack.c.l.s8.bf16 %v2618_v14  ;;  %v2616_v26 = vld [vmem:[#allocation4 + $0x190] sm:$0xff]  ;;  %v2615_v62 = vld [vmem:[#allocation4 + $0x188] sm:$0xff]  ;;  %v2614_v3 = vld [vmem:[#allocation4 + $0x180] sm:$0xff] }
 0xa24   :  { %2662 = vmatprep.subr.bf16.mxu0 %v2645_v49  ;;  %v2637_v28 = vunpack.c.h.s8.bf16 %v2617_v36  ;;  %v2636_v25 = vunpack.c.h.s8.bf16 %v2616_v26  ;;  %v2635_v9 = vunpack.c.l.s8.bf16 %v2617_v36  ;;  %v2634_v38 = vunpack.c.l.s8.bf16 %v2616_v26  ;;  %v2629_v27 = vld [vmem:[#allocation4 + $0x1f8] sm:$0xff]  ;;  %v2628_v1 = vld [vmem:[#allocation4 + $0x1f0] sm:$0xff]  ;;  %v2627_v32 = vld [vmem:[#allocation4 + $0x1e8] sm:$0xff] }
 0xa25   :  { %2663 = vmatpush1.bf16.msra.mxu0 %v2644_v30  ;;  %v2633_v2 = vunpack.c.h.s8.bf16 %v2615_v62  ;;  %v2632_v19 = vunpack.c.h.s8.bf16 %v2614_v3  ;;  %v2631_v39 = vunpack.c.l.s8.bf16 %v2615_v62  ;;  %v2630_v34 = vunpack.c.l.s8.bf16 %v2614_v3  ;;  %v2626_v11 = vld [vmem:[#allocation4 + $0x1e0] sm:$0xff]  ;;  %v2625_v13 = vld [vmem:[#allocation4 + $0x1d8] sm:$0xff]  ;;  %v2624_v22 = vld [vmem:[#allocation4 + $0x1d0] sm:$0xff] }
 0xa26   :  { %2664 = vmatprep.subr.bf16.mxu0 %v2643_v54  ;;  %v2661_v8 = vunpack.c.h.s8.bf16 %v2629_v27  ;;  %v2660_v4 = vunpack.c.h.s8.bf16 %v2628_v1  ;;  %v2659_v7 = vunpack.c.l.s8.bf16 %v2629_v27  ;;  %v2658_v0 = vunpack.c.l.s8.bf16 %v2628_v1  ;;  %v2623_v63 = vld [vmem:[#allocation4 + $0x1c8] sm:$0xff]  ;;  %v2622_v35 = vld [vmem:[#allocation4 + $0x1c0] sm:$0xff] }
 0xa27   :  { %v2657_v43 = vunpack.c.h.s8.bf16 %v2627_v32  ;;  %v2656_v12 = vunpack.c.h.s8.bf16 %v2626_v11  ;;  %v2655_v15 = vunpack.c.l.s8.bf16 %v2627_v32  ;;  %v2654_v59 = vunpack.c.l.s8.bf16 %v2626_v11  ;;  %v2705_v60 = vld [vmem:[%s4079_s15] sm:$0x3]  ;;  %s3553_s15 = smov [#allocation25]  }
 0xa28   :  { %v2653_v42 = vunpack.c.h.s8.bf16 %v2625_v13  ;;  %v2652_v5 = vunpack.c.h.s8.bf16 %v2624_v22  ;;  %v2651_v58 = vunpack.c.l.s8.bf16 %v2625_v13  ;;  %v2650_v6 = vunpack.c.l.s8.bf16 %v2624_v22  ;;  %v2719_v52 = vld [vmem:[%s4080_s16] sm:$0x3]  ;;  %s2743_s16 = sshll.u32 %s3553_s15, 4  ;;  %s2744_s16 = int_to_ptr.vmem [resolvable:$true] %s2743_s16 }
 0xa29   :  { %2665 = vmatpush1.bf16.msra.mxu0 %v2642_v47  ;;  %v2649_v24 = vunpack.c.h.s8.bf16 %v2623_v63  ;;  %v2648_v31 = vunpack.c.h.s8.bf16 %v2622_v35  ;;  %v2647_v53 = vunpack.c.l.s8.bf16 %v2623_v63  ;;  %v2646_v45 = vunpack.c.l.s8.bf16 %v2622_v35  ;;  %s3479_s28 = scalar_lea.vmem %s2744_s16, 256  ;;  %p3484_p12 = scmp.lt.s32.totalorder %s2744_s16, %s2744_s16 }
 0xa2a   :  { %2666 = vmatprep.subr.bf16.mxu0 %v2641_v44  ;;  %v2710_v57 = vrot.slane %v2705_v60, %v3738_v21  ;;  %v2724_v41 = vrot.slane %v2719_v52, %v3738_v21  ;;  %v2714_v17 = vrot.slane %v2705_v60, %v3741_v23  ;;  %v2728_v40 = vrot.slane %v2719_v52, %v3741_v23  ;;  %p3480_p11 = scmp.ne.s32.totalorder %s2744_s16, %s3479_s28  ;;  %p3485_p13 = scmp.lt.s32.totalorder %s3479_s28, %s3479_s28 }
 0xa2c   :  { %p3486_p0 = por %p3485_p13, %p3484_p12 }
 0xa2d   :  { %2667 = vmatpush1.bf16.msra.mxu0 %v2640_v29 }
 0xa2e   :  { %2668 = vmatprep.subr.bf16.mxu0 %v2639_v10  ;;  %p3487_p1 = pnand %p3486_p0, %p3480_p11 }
 0xa31   :  { %2669 = vmatpush1.bf16.msra.mxu0 %v2638_v18 }
 0xa32   :  { %2670 = vmatprep.subr.bf16.mxu0 %v2637_v28 }
 0xa35   :  { %2671 = vmatpush1.bf16.msra.mxu0 %v2636_v25 }
 0xa36   :  { %2672 = vmatprep.subr.bf16.mxu0 %v2635_v9 }
 0xa39   :  { %2673 = vmatpush1.bf16.msra.mxu0 %v2634_v38 }
 0xa3a   :  { %2674 = vmatprep.subr.bf16.mxu0 %v2633_v2 }
 0xa3d   :  { %2675 = vmatpush1.bf16.msra.mxu0 %v2632_v19 }
 0xa3e   :  { %2676 = vmatprep.subr.bf16.mxu0 %v2631_v39 }
 0xa41   :  { %2677 = vmatpush1.bf16.msra.mxu0 %v2630_v34 }
 0xa42   :  { %2678 = vmatprep.subr.bf16.mxu0 %v2661_v8 }
 0xa45   :  { %2679 = vmatpush2.bf16.msra.mxu0 %v2660_v4 }
 0xa46   :  { %2680 = vmatprep.subr.bf16.mxu0 %v2659_v7 }
 0xa49   :  { %2681 = vmatpush2.bf16.msra.mxu0 %v2658_v0 }
 0xa4a   :  { %2682 = vmatprep.subr.bf16.mxu0 %v2657_v43 }
 0xa4d   :  { %2683 = vmatpush2.bf16.msra.mxu0 %v2656_v12 }
 0xa4e   :  { %2684 = vmatprep.subr.bf16.mxu0 %v2655_v15 }
 0xa51   :  { %2685 = vmatpush2.bf16.msra.mxu0 %v2654_v59 }
 0xa52   :  { %2686 = vmatprep.subr.bf16.mxu0 %v2653_v42 }
 0xa55   :  { %2687 = vmatpush2.bf16.msra.mxu0 %v2652_v5 }
 0xa56   :  { %2688 = vmatprep.subr.bf16.mxu0 %v2651_v58 }
 0xa59   :  { %2689 = vmatpush2.bf16.msra.mxu0 %v2650_v6 }
 0xa5a   :  { %2690 = vmatprep.subr.bf16.mxu0 %v2649_v24 }
 0xa5d   :  { %2691 = vmatpush2.bf16.msra.mxu0 %v2648_v31 }
 0xa5e   :  { %2692 = vmatprep.subr.bf16.mxu0 %v2647_v53 }
 0xa61   :  { %2693 = vmatpush2.bf16.msra.mxu0 %v2646_v45 }
 0xa64   :  { %2695 = vmatmul.mubr.bf16.vlgmr.msra.gmra.mxu0 %v2612_v20 }
 0xb24   :  { %v2696_v56 = vpop.f32.mrf.mxu0 }
 0xb25   :  { %v2703_v37 = vadd.f32 %v2696_v56, %v4020_v48 }
 0xb26   :  { %v2698_v55 = vpop.f32.mrf.mxu0 }
 0xb27   :  { %v2717_v61 = vmul.f32 %v2710_v57, %v2703_v37  ;;  %v2704_v51 = vadd.f32 %v2698_v55, %v4023_v16 }
 0xb28   :  { %v2700_v50 = vpop.f32.mrf.mxu0 }
 0xb29   :  { %v2731_v46 = vadd.f32 %v2724_v41, %v2717_v61  ;;  %v2718_v54 = vmul.f32 %v2714_v17, %v2704_v51 }
 0xb2a   :  { %v2701_v49 = vpop.f32.mrf.mxu0 }
 0xb2b   :  { %3077 = vtanh.f32 %v2731_v46  ;;  %v2732_v30 = vadd.f32 %v2728_v40, %v2718_v54 }
 0xb2d   :  { %3079 = vtanh.f32 %v2732_v30 }
 0xb38   :  { %v3078_v48 = vpop.eup %3077 }
 0xb39   :  { %2735 = vst [vmem:[#allocation25] sm:$0xff] %v3078_v48 }
 0xb3a   :  { %v3080_v21 = vpop.eup %3079 }
 0xb3b   :  { %2736 = vst [vmem:[#allocation25 + $0x8] sm:$0xff] %v3080_v21 }
 0xb3c   :  { %3490 = shalt.err (!%p3487_p1)
}
 0xb3d   :  { %2746 = dma.vmem_to_hbm [thread:$0]  %s2744_s16, 256, %s4081_s17, [#allocation10]  }
 0xb3e   :  { %3529 = dma.done.wait [#allocation10], 256  }
 0xb3f   :  { %3530 = vsyncadd [#allocation10], 4294967040 }
 0xb40   :  { %2750 = vsyncpa [#allocation9], 1 }
 0xb41   :  { %2751 = vsyncpa [#allocation12], 1 }
 0xb42   :  { %2752 = vsyncpa [#allocation15], 1 }
 0xb43   :  { %2753 = vsyncpa [#allocation18], 1 }
 0xb44   :  { %2754 = vsyncpa [#allocation21], 1 }
 0xb45   :  { %2755 = vsyncpa [#allocation24], 1 }
 0xb46   :  { %2756 = vsyncpa [#allocation10], 1 }
 0xb47   :  { %2757 = vsyncmov [#allocation5] }
 0xb4a   :  { %s2758_s3 = vpop.sfrf %2757 }
 0xb4b   :  { %p2897_p2 = scmp.ne.s32.totalorder %s2758_s3, 0 }
 0xb4d   :  { %2762 = shalt.err (%p2897_p2)  }
 0xb4e   :  { %2763 = vsyncmov [#allocation6] }
 0xb51   :  { %s2764_s9 = vpop.sfrf %2763 }
 0xb52   :  { %p2898_p3 = scmp.ne.s32.totalorder %s2764_s9, 0 }
 0xb54   :  { %2768 = shalt.err (%p2898_p3)  }
 0xb55   :  { %2770 = vsyncmov [#allocation6 + $0x1] }
 0xb58   :  { %s2771_s18 = vpop.sfrf %2770 }
 0xb59   :  { %p2899_p4 = scmp.ne.s32.totalorder %s2771_s18, 0 }
 0xb5b   :  { %2775 = shalt.err (%p2899_p4)  }
 0xb5c   :  { %2777 = vsyncmov [#allocation6 + $0x2] }
 0xb5f   :  { %s2778_s17 = vpop.sfrf %2777 }
 0xb60   :  { %p2900_p5 = scmp.ne.s32.totalorder %s2778_s17, 0 }
 0xb62   :  { %2782 = shalt.err (%p2900_p5)  }
 0xb63   :  { %2784 = vsyncmov [#allocation6 + $0x3] }
 0xb66   :  { %s2785_s19 = vpop.sfrf %2784 }
 0xb67   :  { %p2901_p6 = scmp.ne.s32.totalorder %s2785_s19, 0 }
 0xb69   :  { %2789 = shalt.err (%p2901_p6)  }
 0xb6a   :  { %2790 = vsyncmov [#allocation7] }
 0xb6d   :  { %s2791_s5 = vpop.sfrf %2790 }
 0xb6e   :  { %p2902_p7 = scmp.ne.s32.totalorder %s2791_s5, 0 }
 0xb70   :  { %2795 = shalt.err (%p2902_p7)  }
 0xb71   :  { %2797 = vsyncmov [#allocation7 + $0x1] }
 0xb74   :  { %s2798_s14 = vpop.sfrf %2797 }
 0xb75   :  { %p2903_p8 = scmp.ne.s32.totalorder %s2798_s14, 0 }
 0xb77   :  { %2802 = shalt.err (%p2903_p8)  }
 0xb78   :  { %2804 = vsyncmov [#allocation7 + $0x2] }
 0xb7b   :  { %s2805_s13 = vpop.sfrf %2804 }
 0xb7c   :  { %p2904_p9 = scmp.ne.s32.totalorder %s2805_s13, 0 }
 0xb7e   :  { %2809 = shalt.err (%p2904_p9)  }
 0xb7f   :  { %2811 = vsyncmov [#allocation7 + $0x3] }
 0xb82   :  { %s2812_s8 = vpop.sfrf %2811 }
 0xb83   :  { %p2905_p10 = scmp.ne.s32.totalorder %s2812_s8, 0 }
 0xb85   :  { %2816 = shalt.err (%p2905_p10)  }

</bundles_post_ra>
